<compile_context>
chip_gen: v5e
topology: v5e:2x2
jax: 0.10.0
libtpu: 0.0.40
codegen_flags: <defaults>
</compile_context>

<pallas_src>
import functools

import jax
import jax.numpy as jnp
from jax.experimental import pallas as pl
from jax.experimental.pallas import tpu as pltpu

_BN_EPS = 1e-5
_LANE = 128
# Per-step footprint here is well under 2 MiB (one image's planes + packed
# weights + one output slab + a small scratch), so 32 MiB leaves ample
# headroom on every generation (v7x only has 64 MiB physical VMEM per TC).
_VMEM_LIMIT = 32 * 1024 * 1024


def _round_up(v, m):
    return (v + m - 1) // m * m


def _pad_last(x, target):
    pad = target - x.shape[-1]
    if pad == 0:
        return x
    return jnp.pad(x, [(0, 0)] * (x.ndim - 1) + [(0, pad)])


# ----------------------------------------------------------------------------
# Pallas kernel: one full ResidualBlock for one batch image
#   out = bn2(conv2(relu(bn1(conv1(x))))) + shortcut(x)     (no ReLU after add)
# ----------------------------------------------------------------------------
def _residual_block_kernel(xq_ref, w1_ref, b1_ref, *rest, stride, kh, kw,
                           pad, oh, ow, has_proj):
    """Refs:
      xq_ref : (1, n_planes, Hq, Wq, Cin_p) bf16  padded (+ space-to-depth) x
      w1_ref : (kh, kw*Cin_p, Cout_p)       bf16  conv1 weight, BN1 folded
      b1_ref : (1, Cout_p)                  f32   folded BN1 bias
      wsc_ref: (Cin_p, Cout_p)              bf16  (projection only)
      bsc_ref: (1, Cout_p)                  f32   (projection only)
      w2_ref : (kh, kw*Cout_p, Cout_p)      bf16  conv2 weight, BN2 folded
      b2_ref : (1, Cout_p)                  f32
      o_ref  : (1, oh*ow, Cout_p)           bf16  lane-dense output slab
      hpad_ref: (oh+2, ow+2, Cout_p)        f32   scratch: conv2's padded input
    """
    if has_proj:
        wsc_ref, bsc_ref, w2_ref, b2_ref, o_ref, hpad_ref = rest
    else:
        w2_ref, b2_ref, o_ref, hpad_ref = rest
    s = stride
    cin = xq_ref.shape[-1]
    cout = o_ref.shape[-1]
    m = oh * ow

    # ---- conv1 (+ folded BN1) + ReLU: kh dots of (m, kw*Cin) @ (kw*Cin, Cout)
    acc = jnp.broadcast_to(b1_ref[...], (m, cout))            # f32 bias init
    for di in range(kh):
        r0 = di // s
        loaded = {}
        parts = []
        for dj in range(kw):
            plane = (di % s) * s + (dj % s)
            if plane not in loaded:
                loaded[plane] = xq_ref[0, plane, r0:r0 + oh, :, :]
            c0 = dj // s
            parts.append(loaded[plane][:, c0:c0 + ow, :])
        a = jnp.concatenate(parts, axis=-1).reshape(m, kw * cin)
        acc = acc + jnp.dot(a, w1_ref[di], preferred_element_type=jnp.float32)
    h = jnp.maximum(acc, 0.0)

    # ---- stage the ReLU output into a zero-padded VMEM scratch for conv2 ---
    hpad_ref[...] = jnp.zeros_like(hpad_ref)
    hpad_ref[1:1 + oh, 1:1 + ow, :] = h.reshape(oh, ow, cout)

    # ---- shortcut -----------------------------------------------------------
    if has_proj:
        # 1x1 stride-s projection on the ORIGINAL x: x[s*i, s*j] lives in the
        # parity plane (pad % s, pad % s) at element offset pad // s.
        plane = (pad % s) * s + (pad % s)
        o0 = pad // s
        a_sc = xq_ref[0, plane, o0:o0 + oh, :, :][:, o0:o0 + ow, :]
        res = jnp.broadcast_to(bsc_ref[...], (m, cout)) + jnp.dot(
            a_sc.reshape(m, cin), wsc_ref[...],
            preferred_element_type=jnp.float32)
    else:
        # identity shortcut = interior of the spatially padded input
        res = xq_ref[0, 0, pad:pad + oh, :, :][:, pad:pad + ow, :].reshape(
            m, cout).astype(jnp.float32)

    # ---- conv2 (+ folded BN2), accumulated on top of (bias2 + residual) ----
    # Reference block has NO activation after the residual add.
    acc2 = res + jnp.broadcast_to(b2_ref[...], (m, cout))
    for di in range(kh):
        rows = hpad_ref[di:di + oh, :, :].astype(jnp.bfloat16)  # (oh, ow+2, C)
        a = jnp.concatenate([rows[:, dj:dj + ow, :] for dj in range(kw)],
                            axis=-1).reshape(m, kw * cout)
        acc2 = acc2 + jnp.dot(a, w2_ref[di], preferred_element_type=jnp.float32)

    o_ref[...] = acc2.reshape(1, m, cout).astype(o_ref.dtype)


# ----------------------------------------------------------------------------
# One-time parameter preparation (hoisted out of the per-forward path)
# ----------------------------------------------------------------------------
def _fold_conv_bn(w, bn, cin_p, cout_p):
    """Fold eval-mode BN into the conv.  Returns
       ((kh, kw*cin_p, cout_p) bf16 weight, (1, cout_p) f32 bias)."""
    cout, cin, kh, kw = w.shape
    scale = bn["gamma"] * jax.lax.rsqrt(bn["var"] + _BN_EPS)
    bias = bn["beta"] - bn["mean"] * scale
    wt = jnp.transpose(w, (2, 3, 1, 0)) * scale[None, None, None, :]
    wt = jnp.pad(wt, ((0, 0), (0, 0), (0, cin_p - cin), (0, cout_p - cout)))
    wt = wt.reshape(kh, kw * cin_p, cout_p).astype(jnp.bfloat16)
    bias_p = jnp.pad(bias, (0, cout_p - cout)).reshape(1, cout_p)
    return wt, bias_p.astype(jnp.float32)


def prepare_params(params):
    """BN fold + K-packing + 128-pad + bf16 cast, done once (not per forward)."""
    prep = {}
    for name, p in params.items():
        cout, cin = p["w1"].shape[0], p["w1"].shape[1]
        cin_p, cout_p = _round_up(cin, _LANE), _round_up(cout, _LANE)
        bp = {}
        bp["w1"], bp["b1"] = _fold_conv_bn(p["w1"], p["bn1"], cin_p, cout_p)
        bp["w2"], bp["b2"] = _fold_conv_bn(p["w2"], p["bn2"], cout_p, cout_p)
        if "sc_w" in p:
            wsc, bsc = _fold_conv_bn(p["sc_w"], p["sc_bn"], cin_p, cout_p)
            bp["wsc"], bp["bsc"] = wsc[0], bsc
        prep[name] = bp
    return prep


# ----------------------------------------------------------------------------
# pallas_call wrapper: one fused ResidualBlock
# ----------------------------------------------------------------------------
def _residual_block(x, bp):
    """x: (B, H, W, Cin_p) bf16  ->  (B, OH, OW, Cout_p) bf16, one pallas_call."""
    has_proj = "wsc" in bp
    s = 2 if has_proj else 1          # reference: stride 2 iff projection
    kh = kw = 3
    pad = 1
    b, h, wd, cin_p = x.shape
    kh_w, k_w1, cout_p = bp["w1"].shape
    assert kh_w == kh and k_w1 == kw * cin_p
    if not has_proj:
        assert cin_p == cout_p
    oh = (h + 2 * pad - kh) // s + 1
    ow = (wd + 2 * pad - kw) // s + 1
    m = oh * ow

    # Spatial zero-pad (+ stride-parity space-to-depth when s == 2), computed
    # ONCE per block input and shared by conv1 and the projection shortcut
    # inside the fused kernel.
    hp, wp = h + 2 * pad, wd + 2 * pad
    hq, wq = -(-hp // s), -(-wp // s)
    xp = jnp.pad(x, ((0, 0), (pad, pad + hq * s - hp),
                     (pad, pad + wq * s - wp), (0, 0)))
    if s == 1:
        xq = xp[:, None]                                     # (B, 1, Hq, Wq, C)
    else:
        xq = xp.reshape(b, hq, s, wq, s, cin_p)
        xq = xq.transpose(0, 2, 4, 1, 3, 5).reshape(b, s * s, hq, wq, cin_p)
    n_planes = xq.shape[1]

    kernel = functools.partial(_residual_block_kernel, stride=s, kh=kh, kw=kw,
                               pad=pad, oh=oh, ow=ow, has_proj=has_proj)

    in_specs = [
        pl.BlockSpec((1, n_planes, hq, wq, cin_p), lambda bi: (bi, 0, 0, 0, 0)),
        pl.BlockSpec((kh, kw * cin_p, cout_p), lambda bi: (0, 0, 0)),
        pl.BlockSpec((1, cout_p), lambda bi: (0, 0)),
    ]
    inputs = [xq, bp["w1"], bp["b1"]]
    if has_proj:
        in_specs += [pl.BlockSpec((cin_p, cout_p), lambda bi: (0, 0)),
                     pl.BlockSpec((1, cout_p), lambda bi: (0, 0))]
        inputs += [bp["wsc"], bp["bsc"]]
    in_specs += [pl.BlockSpec((kh, kw * cout_p, cout_p), lambda bi: (0, 0, 0)),
                 pl.BlockSpec((1, cout_p), lambda bi: (0, 0))]
    inputs += [bp["w2"], bp["b2"]]

    flops = 2 * b * m * (kh * kw * cin_p * cout_p + kh * kw * cout_p * cout_p
                         + (cin_p * cout_p if has_proj else 0))
    bytes_accessed = int(xq.size * 2 + bp["w1"].size * 2 + bp["w2"].size * 2
                         + (bp["wsc"].size * 2 if has_proj else 0)
                         + b * m * cout_p * 2)

    out = pl.pallas_call(
        kernel,
        out_shape=jax.ShapeDtypeStruct((b, m, cout_p), jnp.bfloat16),
        grid=(b,),
        in_specs=in_specs,
        out_specs=pl.BlockSpec((1, m, cout_p), lambda bi: (bi, 0, 0)),
        scratch_shapes=[pltpu.VMEM((oh + 2, ow + 2, cout_p), jnp.float32)],
        compiler_params=pltpu.CompilerParams(
            dimension_semantics=("parallel",),
            vmem_limit_bytes=_VMEM_LIMIT),
        cost_estimate=pl.CostEstimate(flops=flops, transcendentals=0,
                                      bytes_accessed=bytes_accessed),
    )(*inputs)
    return out.reshape(b, oh, ow, cout_p)


# ----------------------------------------------------------------------------
# Model definition (parameters + forward)
# ----------------------------------------------------------------------------
def build_params(key, in_channels, out_channels):
    keys = iter(jax.random.split(key, 32))

    def conv_w(cout, cin, k):
        fan_in = cin * k * k
        return jax.random.normal(next(keys), (cout, cin, k, k),
                                 jnp.float32) * fan_in ** -0.5

    def bn_p(c):
        return dict(
            gamma=1.0 + 0.1 * jax.random.normal(next(keys), (c,), jnp.float32),
            beta=0.1 * jax.random.normal(next(keys), (c,), jnp.float32),
            mean=jnp.zeros((c,), jnp.float32),
            var=jnp.ones((c,), jnp.float32),
        )

    def block_p(cin, cout):
        p = dict(w1=conv_w(cout, cin, 3), bn1=bn_p(cout),
                 w2=conv_w(cout, cout, 3), bn2=bn_p(cout))
        if cin != cout:                       # projection shortcut (1x1, s=2)
            p["sc_w"] = conv_w(cout, cin, 1)
            p["sc_bn"] = bn_p(cout)
        return p

    return dict(block1=block_p(in_channels, out_channels),
                block2=block_p(out_channels, out_channels))


@functools.partial(jax.jit, static_argnames="out_channels")
def resnet_layer_forward(prep, x_nchw, *, out_channels):
    cin_p = prep["block1"]["w1"].shape[1] // 3
    x = jnp.transpose(x_nchw, (0, 2, 3, 1))                    # NCHW -> NHWC
    x = _pad_last(x, cin_p).astype(jnp.bfloat16)
    x = _residual_block(x, prep["block1"])
    x = _residual_block(x, prep["block2"])
    x = x[..., :out_channels].astype(jnp.float32)
    return jnp.transpose(x, (0, 3, 1, 2))                      # NHWC -> NCHW


# ----------------------------------------------------------------------------
# Plain-JAX f32 reference (correctness check in __main__)
# ----------------------------------------------------------------------------
def _ref_conv(x, w, stride, padding):
    return jax.lax.conv_general_dilated(
        x, w, (stride, stride), [(padding, padding)] * 2,
        dimension_numbers=("NCHW", "OIHW", "NCHW"))


def _ref_bn(x, bn):
    scale = bn["gamma"] * jax.lax.rsqrt(bn["var"] + _BN_EPS)
    bias = bn["beta"] - bn["mean"] * scale
    return x * scale[None, :, None, None] + bias[None, :, None, None]


def _ref_block(x, p):
    stride = 2 if "sc_w" in p else 1
    res = x if "sc_w" not in p else _ref_bn(
        _ref_conv(x, p["sc_w"], stride, 0), p["sc_bn"])
    h = jax.nn.relu(_ref_bn(_ref_conv(x, p["w1"], stride, 1), p["bn1"]))
    h = _ref_bn(_ref_conv(h, p["w2"], 1, 1), p["bn2"])
    return h + res


def _ref_forward(params, x):
    return _ref_block(_ref_block(x, params["block1"]), params["block2"])


# ----------------------------------------------------------------------------
if __name__ == "__main__":
    key = jax.random.PRNGKey(0)
    pkey, xkey = jax.random.split(key)
    in_channels, out_channels = 64, 128
    params = build_params(pkey, in_channels, out_channels)
    prep = prepare_params(params)        # one-time weight prep (BN fold, pack)
    # PyTorch-style NCHW input: batch=2, channels=64, 16x16 feature map.
    x = jax.random.normal(xkey, (2, in_channels, 16, 16), jnp.float32)

    y = resnet_layer_forward(prep, x, out_channels=out_channels)
    jax.block_until_ready(y)
    assert y.shape == (2, out_channels, 8, 8), y.shape
    assert bool(jnp.all(jnp.isfinite(y)))

    # Check vs. a plain-JAX f32 reference (kernel uses bf16 MXU operands with
    # f32 accumulation, so small numeric drift is expected).
    y_ref = _ref_forward(params, x)
    err = float(jnp.max(jnp.abs(y - y_ref)) /
                jnp.maximum(1.0, jnp.max(jnp.abs(y_ref))))
    assert err < 2e-2, f"mismatch vs reference: {err}"
    print("KERNEL_OK")
</pallas_src>

<mosaic_0001>
module attributes {stable_mosaic.version = 11 : i64} {
  func.func @_residual_block_kernel(%arg0: i32, %arg1: memref<1x4x9x9x128xbf16, #tpu.memory_space<vmem>>, %arg2: memref<3x384x128xbf16, #tpu.memory_space<vmem>>, %arg3: memref<1x128xf32, #tpu.memory_space<vmem>>, %arg4: memref<128x128xbf16, #tpu.memory_space<vmem>>, %arg5: memref<1x128xf32, #tpu.memory_space<vmem>>, %arg6: memref<3x384x128xbf16, #tpu.memory_space<vmem>>, %arg7: memref<1x128xf32, #tpu.memory_space<vmem>>, %arg8: memref<1x64x128xbf16, #tpu.memory_space<vmem>>, %arg9: memref<10x10x128xf32, #tpu.memory_space<vmem>>) attributes {dimension_semantics = [#tpu.dimension_semantics<parallel>], iteration_bounds = array<i64: 2>, scalar_prefetch = 0 : i64, scratch_operands = 1 : i64, tpu.core_type = #tpu.core_type<tc>, window_params = [{transform_indices = @transform_0, window_bounds = array<i64: 1, 4, 9, 9, 128>}, {pipeline_mode = #tpu.pipeline_mode<synchronous>, transform_indices = @transform_1, window_bounds = array<i64: 3, 384, 128>}, {pipeline_mode = #tpu.pipeline_mode<synchronous>, transform_indices = @transform_2, window_bounds = array<i64: 1, 128>}, {pipeline_mode = #tpu.pipeline_mode<synchronous>, transform_indices = @transform_3, window_bounds = array<i64: 128, 128>}, {pipeline_mode = #tpu.pipeline_mode<synchronous>, transform_indices = @transform_4, window_bounds = array<i64: 1, 128>}, {pipeline_mode = #tpu.pipeline_mode<synchronous>, transform_indices = @transform_5, window_bounds = array<i64: 3, 384, 128>}, {pipeline_mode = #tpu.pipeline_mode<synchronous>, transform_indices = @transform_6, window_bounds = array<i64: 1, 128>}, {transform_indices = @transform_7, window_bounds = array<i64: 1, 64, 128>}]} {
    %c0 = arith.constant 0 : index
    %c0_0 = arith.constant 0 : index
    %0 = vector.load %arg3[%c0, %c0_0] : memref<1x128xf32, #tpu.memory_space<vmem>>, vector<1x128xf32>
    %1 = vector.shape_cast %0 : vector<1x128xf32> to vector<1x128xf32>
    %2 = vector.broadcast %1 : vector<1x128xf32> to vector<64x128xf32>
    %c0_1 = arith.constant 0 : index
    %c0_2 = arith.constant 0 : index
    %c0_3 = arith.constant 0 : index
    %c0_4 = arith.constant 0 : index
    %c0_5 = arith.constant 0 : index
    %3 = vector.load %arg1[%c0_1, %c0_2, %c0_3, %c0_4, %c0_5] : memref<1x4x9x9x128xbf16, #tpu.memory_space<vmem>>, vector<1x1x8x9x128xbf16>
    %4 = vector.shape_cast %3 : vector<1x1x8x9x128xbf16> to vector<8x9x128xbf16>
    %5 = vector.extract_strided_slice %4 {offsets = [0, 0, 0], sizes = [8, 8, 128], strides = [1, 1, 1]} : vector<8x9x128xbf16> to vector<8x8x128xbf16>
    %c0_6 = arith.constant 0 : index
    %c1 = arith.constant 1 : index
    %c0_7 = arith.constant 0 : index
    %c0_8 = arith.constant 0 : index
    %c0_9 = arith.constant 0 : index
    %6 = vector.load %arg1[%c0_6, %c1, %c0_7, %c0_8, %c0_9] : memref<1x4x9x9x128xbf16, #tpu.memory_space<vmem>>, vector<1x1x8x9x128xbf16>
    %7 = vector.shape_cast %6 : vector<1x1x8x9x128xbf16> to vector<8x9x128xbf16>
    %8 = vector.extract_strided_slice %7 {offsets = [0, 0, 0], sizes = [8, 8, 128], strides = [1, 1, 1]} : vector<8x9x128xbf16> to vector<8x8x128xbf16>
    %9 = vector.extract_strided_slice %4 {offsets = [0, 1, 0], sizes = [8, 8, 128], strides = [1, 1, 1]} : vector<8x9x128xbf16> to vector<8x8x128xbf16>
    %10 = tpu.concatenate %5, %8, %9 in 2 : vector<8x8x128xbf16>, vector<8x8x128xbf16>, vector<8x8x128xbf16> -> vector<8x8x384xbf16>
    %11 = vector.shape_cast %10 : vector<8x8x384xbf16> to vector<64x384xbf16>
    %c0_10 = arith.constant 0 : index
    %c0_11 = arith.constant 0 : index
    %c0_12 = arith.constant 0 : index
    %12 = vector.load %arg2[%c0_10, %c0_11, %c0_12] : memref<3x384x128xbf16, #tpu.memory_space<vmem>>, vector<1x384x128xbf16>
    %13 = vector.shape_cast %12 : vector<1x384x128xbf16> to vector<384x128xbf16>
    %cst = arith.constant dense<0.000000e+00> : vector<64x128xf32>
    %14 = tpu.matmul %11, %13, %cst {dimension_numbers = #tpu.dot_dimension_numbers<[1], [0], [0], [1], [0, 0, 1, 1], [], []>} : vector<64x384xbf16>, vector<384x128xbf16>, vector<64x128xf32> -> vector<64x128xf32>
    %15 = arith.addf %2, %14 : vector<64x128xf32>
    %c0_13 = arith.constant 0 : index
    %c2 = arith.constant 2 : index
    %c0_14 = arith.constant 0 : index
    %c0_15 = arith.constant 0 : index
    %c0_16 = arith.constant 0 : index
    %16 = vector.load %arg1[%c0_13, %c2, %c0_14, %c0_15, %c0_16] : memref<1x4x9x9x128xbf16, #tpu.memory_space<vmem>>, vector<1x1x8x9x128xbf16>
    %17 = vector.shape_cast %16 : vector<1x1x8x9x128xbf16> to vector<8x9x128xbf16>
    %18 = vector.extract_strided_slice %17 {offsets = [0, 0, 0], sizes = [8, 8, 128], strides = [1, 1, 1]} : vector<8x9x128xbf16> to vector<8x8x128xbf16>
    %c0_17 = arith.constant 0 : index
    %c3 = arith.constant 3 : index
    %c0_18 = arith.constant 0 : index
    %c0_19 = arith.constant 0 : index
    %c0_20 = arith.constant 0 : index
    %19 = vector.load %arg1[%c0_17, %c3, %c0_18, %c0_19, %c0_20] : memref<1x4x9x9x128xbf16, #tpu.memory_space<vmem>>, vector<1x1x8x9x128xbf16>
    %20 = vector.shape_cast %19 : vector<1x1x8x9x128xbf16> to vector<8x9x128xbf16>
    %21 = vector.extract_strided_slice %20 {offsets = [0, 0, 0], sizes = [8, 8, 128], strides = [1, 1, 1]} : vector<8x9x128xbf16> to vector<8x8x128xbf16>
    %22 = vector.extract_strided_slice %17 {offsets = [0, 1, 0], sizes = [8, 8, 128], strides = [1, 1, 1]} : vector<8x9x128xbf16> to vector<8x8x128xbf16>
    %23 = tpu.concatenate %18, %21, %22 in 2 : vector<8x8x128xbf16>, vector<8x8x128xbf16>, vector<8x8x128xbf16> -> vector<8x8x384xbf16>
    %24 = vector.shape_cast %23 : vector<8x8x384xbf16> to vector<64x384xbf16>
    %c1_21 = arith.constant 1 : index
    %c0_22 = arith.constant 0 : index
    %c0_23 = arith.constant 0 : index
    %25 = vector.load %arg2[%c1_21, %c0_22, %c0_23] : memref<3x384x128xbf16, #tpu.memory_space<vmem>>, vector<1x384x128xbf16>
    %26 = vector.shape_cast %25 : vector<1x384x128xbf16> to vector<384x128xbf16>
    %cst_24 = arith.constant dense<0.000000e+00> : vector<64x128xf32>
    %27 = tpu.matmul %24, %26, %cst_24 {dimension_numbers = #tpu.dot_dimension_numbers<[1], [0], [0], [1], [0, 0, 1, 1], [], []>} : vector<64x384xbf16>, vector<384x128xbf16>, vector<64x128xf32> -> vector<64x128xf32>
    %28 = arith.addf %15, %27 : vector<64x128xf32>
    %c0_25 = arith.constant 0 : index
    %c0_26 = arith.constant 0 : index
    %c1_27 = arith.constant 1 : index
    %c0_28 = arith.constant 0 : index
    %c0_29 = arith.constant 0 : index
    %29 = vector.load %arg1[%c0_25, %c0_26, %c1_27, %c0_28, %c0_29] : memref<1x4x9x9x128xbf16, #tpu.memory_space<vmem>>, vector<1x1x8x9x128xbf16>
    %30 = vector.shape_cast %29 : vector<1x1x8x9x128xbf16> to vector<8x9x128xbf16>
    %31 = vector.extract_strided_slice %30 {offsets = [0, 0, 0], sizes = [8, 8, 128], strides = [1, 1, 1]} : vector<8x9x128xbf16> to vector<8x8x128xbf16>
    %c0_30 = arith.constant 0 : index
    %c1_31 = arith.constant 1 : index
    %c1_32 = arith.constant 1 : index
    %c0_33 = arith.constant 0 : index
    %c0_34 = arith.constant 0 : index
    %32 = vector.load %arg1[%c0_30, %c1_31, %c1_32, %c0_33, %c0_34] : memref<1x4x9x9x128xbf16, #tpu.memory_space<vmem>>, vector<1x1x8x9x128xbf16>
    %33 = vector.shape_cast %32 : vector<1x1x8x9x128xbf16> to vector<8x9x128xbf16>
    %34 = vector.extract_strided_slice %33 {offsets = [0, 0, 0], sizes = [8, 8, 128], strides = [1, 1, 1]} : vector<8x9x128xbf16> to vector<8x8x128xbf16>
    %35 = vector.extract_strided_slice %30 {offsets = [0, 1, 0], sizes = [8, 8, 128], strides = [1, 1, 1]} : vector<8x9x128xbf16> to vector<8x8x128xbf16>
    %36 = tpu.concatenate %31, %34, %35 in 2 : vector<8x8x128xbf16>, vector<8x8x128xbf16>, vector<8x8x128xbf16> -> vector<8x8x384xbf16>
    %37 = vector.shape_cast %36 : vector<8x8x384xbf16> to vector<64x384xbf16>
    %c2_35 = arith.constant 2 : index
    %c0_36 = arith.constant 0 : index
    %c0_37 = arith.constant 0 : index
    %38 = vector.load %arg2[%c2_35, %c0_36, %c0_37] : memref<3x384x128xbf16, #tpu.memory_space<vmem>>, vector<1x384x128xbf16>
    %39 = vector.shape_cast %38 : vector<1x384x128xbf16> to vector<384x128xbf16>
    %cst_38 = arith.constant dense<0.000000e+00> : vector<64x128xf32>
    %40 = tpu.matmul %37, %39, %cst_38 {dimension_numbers = #tpu.dot_dimension_numbers<[1], [0], [0], [1], [0, 0, 1, 1], [], []>} : vector<64x384xbf16>, vector<384x128xbf16>, vector<64x128xf32> -> vector<64x128xf32>
    %41 = arith.addf %28, %40 : vector<64x128xf32>
    %cst_39 = arith.constant 0.000000e+00 : f32
    %42 = vector.broadcast %cst_39 : f32 to vector<64x128xf32>
    %43 = arith.maximumf %41, %42 : vector<64x128xf32>
    %cst_40 = arith.constant 0.000000e+00 : f32
    %44 = vector.broadcast %cst_40 : f32 to vector<10x10x128xf32>
    %c0_41 = arith.constant 0 : index
    %c0_42 = arith.constant 0 : index
    %c0_43 = arith.constant 0 : index
    %45 = vector.load %arg9[%c0_41, %c0_42, %c0_43] : memref<10x10x128xf32, #tpu.memory_space<vmem>>, vector<10x10x128xf32>
    tpu.vector_store %arg9[%c0_41, %c0_42, %c0_43], %44 {strides = array<i32>} : memref<10x10x128xf32, #tpu.memory_space<vmem>>, vector<10x10x128xf32>,
    %46 = vector.shape_cast %43 : vector<64x128xf32> to vector<8x8x128xf32>
    %c1_44 = arith.constant 1 : index
    %c1_45 = arith.constant 1 : index
    %c0_46 = arith.constant 0 : index
    %47 = vector.load %arg9[%c1_44, %c1_45, %c0_46] : memref<10x10x128xf32, #tpu.memory_space<vmem>>, vector<8x8x128xf32>
    tpu.vector_store %arg9[%c1_44, %c1_45, %c0_46], %46 {strides = array<i32>} : memref<10x10x128xf32, #tpu.memory_space<vmem>>, vector<8x8x128xf32>,
    %c0_47 = arith.constant 0 : index
    %c3_48 = arith.constant 3 : index
    %c0_49 = arith.constant 0 : index
    %c0_50 = arith.constant 0 : index
    %c0_51 = arith.constant 0 : index
    %48 = vector.load %arg1[%c0_47, %c3_48, %c0_49, %c0_50, %c0_51] : memref<1x4x9x9x128xbf16, #tpu.memory_space<vmem>>, vector<1x1x8x9x128xbf16>
    %49 = vector.shape_cast %48 : vector<1x1x8x9x128xbf16> to vector<8x9x128xbf16>
    %50 = vector.extract_strided_slice %49 {offsets = [0, 0, 0], sizes = [8, 8, 128], strides = [1, 1, 1]} : vector<8x9x128xbf16> to vector<8x8x128xbf16>
    %c0_52 = arith.constant 0 : index
    %c0_53 = arith.constant 0 : index
    %51 = vector.load %arg5[%c0_52, %c0_53] : memref<1x128xf32, #tpu.memory_space<vmem>>, vector<1x128xf32>
    %52 = vector.shape_cast %51 : vector<1x128xf32> to vector<1x128xf32>
    %53 = vector.broadcast %52 : vector<1x128xf32> to vector<64x128xf32>
    %54 = vector.shape_cast %50 : vector<8x8x128xbf16> to vector<64x128xbf16>
    %c0_54 = arith.constant 0 : index
    %c0_55 = arith.constant 0 : index
    %55 = vector.load %arg4[%c0_54, %c0_55] : memref<128x128xbf16, #tpu.memory_space<vmem>>, vector<128x128xbf16>
    %cst_56 = arith.constant dense<0.000000e+00> : vector<64x128xf32>
    %56 = tpu.matmul %54, %55, %cst_56 {dimension_numbers = #tpu.dot_dimension_numbers<[1], [0], [0], [1], [0, 0, 1, 1], [], []>} : vector<64x128xbf16>, vector<128x128xbf16>, vector<64x128xf32> -> vector<64x128xf32>
    %57 = arith.addf %53, %56 : vector<64x128xf32>
    %c0_57 = arith.constant 0 : index
    %c0_58 = arith.constant 0 : index
    %58 = vector.load %arg7[%c0_57, %c0_58] : memref<1x128xf32, #tpu.memory_space<vmem>>, vector<1x128xf32>
    %59 = vector.shape_cast %58 : vector<1x128xf32> to vector<1x128xf32>
    %60 = vector.broadcast %59 : vector<1x128xf32> to vector<64x128xf32>
    %61 = arith.addf %57, %60 : vector<64x128xf32>
    %c0_59 = arith.constant 0 : index
    %c0_60 = arith.constant 0 : index
    %c0_61 = arith.constant 0 : index
    %62 = vector.load %arg9[%c0_59, %c0_60, %c0_61] : memref<10x10x128xf32, #tpu.memory_space<vmem>>, vector<8x10x128xf32>
    %63 = arith.truncf %62 : vector<8x10x128xf32> to vector<8x10x128xbf16>
    %64 = vector.extract_strided_slice %63 {offsets = [0, 0, 0], sizes = [8, 8, 128], strides = [1, 1, 1]} : vector<8x10x128xbf16> to vector<8x8x128xbf16>
    %65 = vector.extract_strided_slice %63 {offsets = [0, 1, 0], sizes = [8, 8, 128], strides = [1, 1, 1]} : vector<8x10x128xbf16> to vector<8x8x128xbf16>
    %66 = vector.extract_strided_slice %63 {offsets = [0, 2, 0], sizes = [8, 8, 128], strides = [1, 1, 1]} : vector<8x10x128xbf16> to vector<8x8x128xbf16>
    %67 = tpu.concatenate %64, %65, %66 in 2 : vector<8x8x128xbf16>, vector<8x8x128xbf16>, vector<8x8x128xbf16> -> vector<8x8x384xbf16>
    %68 = vector.shape_cast %67 : vector<8x8x384xbf16> to vector<64x384xbf16>
    %c0_62 = arith.constant 0 : index
    %c0_63 = arith.constant 0 : index
    %c0_64 = arith.constant 0 : index
    %69 = vector.load %arg6[%c0_62, %c0_63, %c0_64] : memref<3x384x128xbf16, #tpu.memory_space<vmem>>, vector<1x384x128xbf16>
    %70 = vector.shape_cast %69 : vector<1x384x128xbf16> to vector<384x128xbf16>
    %cst_65 = arith.constant dense<0.000000e+00> : vector<64x128xf32>
    %71 = tpu.matmul %68, %70, %cst_65 {dimension_numbers = #tpu.dot_dimension_numbers<[1], [0], [0], [1], [0, 0, 1, 1], [], []>} : vector<64x384xbf16>, vector<384x128xbf16>, vector<64x128xf32> -> vector<64x128xf32>
    %72 = arith.addf %61, %71 : vector<64x128xf32>
    %c1_66 = arith.constant 1 : index
    %c0_67 = arith.constant 0 : index
    %c0_68 = arith.constant 0 : index
    %73 = vector.load %arg9[%c1_66, %c0_67, %c0_68] : memref<10x10x128xf32, #tpu.memory_space<vmem>>, vector<8x10x128xf32>
    %74 = arith.truncf %73 : vector<8x10x128xf32> to vector<8x10x128xbf16>
    %75 = vector.extract_strided_slice %74 {offsets = [0, 0, 0], sizes = [8, 8, 128], strides = [1, 1, 1]} : vector<8x10x128xbf16> to vector<8x8x128xbf16>
    %76 = vector.extract_strided_slice %74 {offsets = [0, 1, 0], sizes = [8, 8, 128], strides = [1, 1, 1]} : vector<8x10x128xbf16> to vector<8x8x128xbf16>
    %77 = vector.extract_strided_slice %74 {offsets = [0, 2, 0], sizes = [8, 8, 128], strides = [1, 1, 1]} : vector<8x10x128xbf16> to vector<8x8x128xbf16>
    %78 = tpu.concatenate %75, %76, %77 in 2 : vector<8x8x128xbf16>, vector<8x8x128xbf16>, vector<8x8x128xbf16> -> vector<8x8x384xbf16>
    %79 = vector.shape_cast %78 : vector<8x8x384xbf16> to vector<64x384xbf16>
    %c1_69 = arith.constant 1 : index
    %c0_70 = arith.constant 0 : index
    %c0_71 = arith.constant 0 : index
    %80 = vector.load %arg6[%c1_69, %c0_70, %c0_71] : memref<3x384x128xbf16, #tpu.memory_space<vmem>>, vector<1x384x128xbf16>
    %81 = vector.shape_cast %80 : vector<1x384x128xbf16> to vector<384x128xbf16>
    %cst_72 = arith.constant dense<0.000000e+00> : vector<64x128xf32>
    %82 = tpu.matmul %79, %81, %cst_72 {dimension_numbers = #tpu.dot_dimension_numbers<[1], [0], [0], [1], [0, 0, 1, 1], [], []>} : vector<64x384xbf16>, vector<384x128xbf16>, vector<64x128xf32> -> vector<64x128xf32>
    %83 = arith.addf %72, %82 : vector<64x128xf32>
    %c2_73 = arith.constant 2 : index
    %c0_74 = arith.constant 0 : index
    %c0_75 = arith.constant 0 : index
    %84 = vector.load %arg9[%c2_73, %c0_74, %c0_75] : memref<10x10x128xf32, #tpu.memory_space<vmem>>, vector<8x10x128xf32>
    %85 = arith.truncf %84 : vector<8x10x128xf32> to vector<8x10x128xbf16>
    %86 = vector.extract_strided_slice %85 {offsets = [0, 0, 0], sizes = [8, 8, 128], strides = [1, 1, 1]} : vector<8x10x128xbf16> to vector<8x8x128xbf16>
    %87 = vector.extract_strided_slice %85 {offsets = [0, 1, 0], sizes = [8, 8, 128], strides = [1, 1, 1]} : vector<8x10x128xbf16> to vector<8x8x128xbf16>
    %88 = vector.extract_strided_slice %85 {offsets = [0, 2, 0], sizes = [8, 8, 128], strides = [1, 1, 1]} : vector<8x10x128xbf16> to vector<8x8x128xbf16>
    %89 = tpu.concatenate %86, %87, %88 in 2 : vector<8x8x128xbf16>, vector<8x8x128xbf16>, vector<8x8x128xbf16> -> vector<8x8x384xbf16>
    %90 = vector.shape_cast %89 : vector<8x8x384xbf16> to vector<64x384xbf16>
    %c2_76 = arith.constant 2 : index
    %c0_77 = arith.constant 0 : index
    %c0_78 = arith.constant 0 : index
    %91 = vector.load %arg6[%c2_76, %c0_77, %c0_78] : memref<3x384x128xbf16, #tpu.memory_space<vmem>>, vector<1x384x128xbf16>
    %92 = vector.shape_cast %91 : vector<1x384x128xbf16> to vector<384x128xbf16>
    %cst_79 = arith.constant dense<0.000000e+00> : vector<64x128xf32>
    %93 = tpu.matmul %90, %92, %cst_79 {dimension_numbers = #tpu.dot_dimension_numbers<[1], [0], [0], [1], [0, 0, 1, 1], [], []>} : vector<64x384xbf16>, vector<384x128xbf16>, vector<64x128xf32> -> vector<64x128xf32>
    %94 = arith.addf %83, %93 : vector<64x128xf32>
    %95 = vector.shape_cast %94 : vector<64x128xf32> to vector<1x64x128xf32>
    %96 = arith.truncf %95 : vector<1x64x128xf32> to vector<1x64x128xbf16>
    %c0_80 = arith.constant 0 : index
    %c0_81 = arith.constant 0 : index
    %c0_82 = arith.constant 0 : index
    %97 = vector.load %arg8[%c0_80, %c0_81, %c0_82] : memref<1x64x128xbf16, #tpu.memory_space<vmem>>, vector<1x64x128xbf16>
    tpu.vector_store %arg8[%c0_80, %c0_81, %c0_82], %96 {strides = array<i32>} : memref<1x64x128xbf16, #tpu.memory_space<vmem>>, vector<1x64x128xbf16>,
    return
  }
  func.func @transform_0(%arg0: i32) -> (i32, i32, i32, i32, i32) {
    %c0_i32 = arith.constant 0 : i32
    %c0_i32_0 = arith.constant 0 : i32
    %c0_i32_1 = arith.constant 0 : i32
    %c0_i32_2 = arith.constant 0 : i32
    %c0_i32_3 = arith.constant 0 : i32
    return %arg0, %c0_i32, %c0_i32_0, %c0_i32_1, %c0_i32_2 : i32, i32, i32, i32, i32
  }
  func.func @transform_1(%arg0: i32) -> (i32, i32, i32) {
    %c0_i32 = arith.constant 0 : i32
    %c0_i32_0 = arith.constant 0 : i32
    %c0_i32_1 = arith.constant 0 : i32
    %c0_i32_2 = arith.constant 0 : i32
    return %c0_i32, %c0_i32_0, %c0_i32_1 : i32, i32, i32
  }
  func.func @transform_2(%arg0: i32) -> (i32, i32) {
    %c0_i32 = arith.constant 0 : i32
    %c0_i32_0 = arith.constant 0 : i32
    %c0_i32_1 = arith.constant 0 : i32
    return %c0_i32, %c0_i32_0 : i32, i32
  }
  func.func @transform_3(%arg0: i32) -> (i32, i32) {
    %c0_i32 = arith.constant 0 : i32
    %c0_i32_0 = arith.constant 0 : i32
    %c0_i32_1 = arith.constant 0 : i32
    return %c0_i32, %c0_i32_0 : i32, i32
  }
  func.func @transform_4(%arg0: i32) -> (i32, i32) {
    %c0_i32 = arith.constant 0 : i32
    %c0_i32_0 = arith.constant 0 : i32
    %c0_i32_1 = arith.constant 0 : i32
    return %c0_i32, %c0_i32_0 : i32, i32
  }
  func.func @transform_5(%arg0: i32) -> (i32, i32, i32) {
    %c0_i32 = arith.constant 0 : i32
    %c0_i32_0 = arith.constant 0 : i32
    %c0_i32_1 = arith.constant 0 : i32
    %c0_i32_2 = arith.constant 0 : i32
    return %c0_i32, %c0_i32_0, %c0_i32_1 : i32, i32, i32
  }
  func.func @transform_6(%arg0: i32) -> (i32, i32) {
    %c0_i32 = arith.constant 0 : i32
    %c0_i32_0 = arith.constant 0 : i32
    %c0_i32_1 = arith.constant 0 : i32
    return %c0_i32, %c0_i32_0 : i32, i32
  }
  func.func @transform_7(%arg0: i32) -> (i32, i32, i32) {
    %c0_i32 = arith.constant 0 : i32
    %c0_i32_0 = arith.constant 0 : i32
    %c0_i32_1 = arith.constant 0 : i32
    return %arg0, %c0_i32, %c0_i32_0 : i32, i32, i32
  }
}

module attributes {stable_mosaic.version = 11 : i64} {
  func.func @_residual_block_kernel(%arg0: i32, %arg1: memref<1x1x10x10x128xbf16, #tpu.memory_space<vmem>>, %arg2: memref<3x384x128xbf16, #tpu.memory_space<vmem>>, %arg3: memref<1x128xf32, #tpu.memory_space<vmem>>, %arg4: memref<3x384x128xbf16, #tpu.memory_space<vmem>>, %arg5: memref<1x128xf32, #tpu.memory_space<vmem>>, %arg6: memref<1x64x128xbf16, #tpu.memory_space<vmem>>, %arg7: memref<10x10x128xf32, #tpu.memory_space<vmem>>) attributes {dimension_semantics = [#tpu.dimension_semantics<parallel>], iteration_bounds = array<i64: 2>, scalar_prefetch = 0 : i64, scratch_operands = 1 : i64, tpu.core_type = #tpu.core_type<tc>, window_params = [{transform_indices = @transform_0, window_bounds = array<i64: 1, 1, 10, 10, 128>}, {pipeline_mode = #tpu.pipeline_mode<synchronous>, transform_indices = @transform_1, window_bounds = array<i64: 3, 384, 128>}, {pipeline_mode = #tpu.pipeline_mode<synchronous>, transform_indices = @transform_2, window_bounds = array<i64: 1, 128>}, {pipeline_mode = #tpu.pipeline_mode<synchronous>, transform_indices = @transform_3, window_bounds = array<i64: 3, 384, 128>}, {pipeline_mode = #tpu.pipeline_mode<synchronous>, transform_indices = @transform_4, window_bounds = array<i64: 1, 128>}, {transform_indices = @transform_5, window_bounds = array<i64: 1, 64, 128>}]} {
    %c0 = arith.constant 0 : index
    %c0_0 = arith.constant 0 : index
    %0 = vector.load %arg3[%c0, %c0_0] : memref<1x128xf32, #tpu.memory_space<vmem>>, vector<1x128xf32>
    %1 = vector.shape_cast %0 : vector<1x128xf32> to vector<1x128xf32>
    %2 = vector.broadcast %1 : vector<1x128xf32> to vector<64x128xf32>
    %c0_1 = arith.constant 0 : index
    %c0_2 = arith.constant 0 : index
    %c0_3 = arith.constant 0 : index
    %c0_4 = arith.constant 0 : index
    %c0_5 = arith.constant 0 : index
    %3 = vector.load %arg1[%c0_1, %c0_2, %c0_3, %c0_4, %c0_5] : memref<1x1x10x10x128xbf16, #tpu.memory_space<vmem>>, vector<1x1x8x10x128xbf16>
    %4 = vector.shape_cast %3 : vector<1x1x8x10x128xbf16> to vector<8x10x128xbf16>
    %5 = vector.extract_strided_slice %4 {offsets = [0, 0, 0], sizes = [8, 8, 128], strides = [1, 1, 1]} : vector<8x10x128xbf16> to vector<8x8x128xbf16>
    %6 = vector.extract_strided_slice %4 {offsets = [0, 1, 0], sizes = [8, 8, 128], strides = [1, 1, 1]} : vector<8x10x128xbf16> to vector<8x8x128xbf16>
    %7 = vector.extract_strided_slice %4 {offsets = [0, 2, 0], sizes = [8, 8, 128], strides = [1, 1, 1]} : vector<8x10x128xbf16> to vector<8x8x128xbf16>
    %8 = tpu.concatenate %5, %6, %7 in 2 : vector<8x8x128xbf16>, vector<8x8x128xbf16>, vector<8x8x128xbf16> -> vector<8x8x384xbf16>
    %9 = vector.shape_cast %8 : vector<8x8x384xbf16> to vector<64x384xbf16>
    %c0_6 = arith.constant 0 : index
    %c0_7 = arith.constant 0 : index
    %c0_8 = arith.constant 0 : index
    %10 = vector.load %arg2[%c0_6, %c0_7, %c0_8] : memref<3x384x128xbf16, #tpu.memory_space<vmem>>, vector<1x384x128xbf16>
    %11 = vector.shape_cast %10 : vector<1x384x128xbf16> to vector<384x128xbf16>
    %cst = arith.constant dense<0.000000e+00> : vector<64x128xf32>
    %12 = tpu.matmul %9, %11, %cst {dimension_numbers = #tpu.dot_dimension_numbers<[1], [0], [0], [1], [0, 0, 1, 1], [], []>} : vector<64x384xbf16>, vector<384x128xbf16>, vector<64x128xf32> -> vector<64x128xf32>
    %13 = arith.addf %2, %12 : vector<64x128xf32>
    %c0_9 = arith.constant 0 : index
    %c0_10 = arith.constant 0 : index
    %c1 = arith.constant 1 : index
    %c0_11 = arith.constant 0 : index
    %c0_12 = arith.constant 0 : index
    %14 = vector.load %arg1[%c0_9, %c0_10, %c1, %c0_11, %c0_12] : memref<1x1x10x10x128xbf16, #tpu.memory_space<vmem>>, vector<1x1x8x10x128xbf16>
    %15 = vector.shape_cast %14 : vector<1x1x8x10x128xbf16> to vector<8x10x128xbf16>
    %16 = vector.extract_strided_slice %15 {offsets = [0, 0, 0], sizes = [8, 8, 128], strides = [1, 1, 1]} : vector<8x10x128xbf16> to vector<8x8x128xbf16>
    %17 = vector.extract_strided_slice %15 {offsets = [0, 1, 0], sizes = [8, 8, 128], strides = [1, 1, 1]} : vector<8x10x128xbf16> to vector<8x8x128xbf16>
    %18 = vector.extract_strided_slice %15 {offsets = [0, 2, 0], sizes = [8, 8, 128], strides = [1, 1, 1]} : vector<8x10x128xbf16> to vector<8x8x128xbf16>
    %19 = tpu.concatenate %16, %17, %18 in 2 : vector<8x8x128xbf16>, vector<8x8x128xbf16>, vector<8x8x128xbf16> -> vector<8x8x384xbf16>
    %20 = vector.shape_cast %19 : vector<8x8x384xbf16> to vector<64x384xbf16>
    %c1_13 = arith.constant 1 : index
    %c0_14 = arith.constant 0 : index
    %c0_15 = arith.constant 0 : index
    %21 = vector.load %arg2[%c1_13, %c0_14, %c0_15] : memref<3x384x128xbf16, #tpu.memory_space<vmem>>, vector<1x384x128xbf16>
    %22 = vector.shape_cast %21 : vector<1x384x128xbf16> to vector<384x128xbf16>
    %cst_16 = arith.constant dense<0.000000e+00> : vector<64x128xf32>
    %23 = tpu.matmul %20, %22, %cst_16 {dimension_numbers = #tpu.dot_dimension_numbers<[1], [0], [0], [1], [0, 0, 1, 1], [], []>} : vector<64x384xbf16>, vector<384x128xbf16>, vector<64x128xf32> -> vector<64x128xf32>
    %24 = arith.addf %13, %23 : vector<64x128xf32>
    %c0_17 = arith.constant 0 : index
    %c0_18 = arith.constant 0 : index
    %c2 = arith.constant 2 : index
    %c0_19 = arith.constant 0 : index
    %c0_20 = arith.constant 0 : index
    %25 = vector.load %arg1[%c0_17, %c0_18, %c2, %c0_19, %c0_20] : memref<1x1x10x10x128xbf16, #tpu.memory_space<vmem>>, vector<1x1x8x10x128xbf16>
    %26 = vector.shape_cast %25 : vector<1x1x8x10x128xbf16> to vector<8x10x128xbf16>
    %27 = vector.extract_strided_slice %26 {offsets = [0, 0, 0], sizes = [8, 8, 128], strides = [1, 1, 1]} : vector<8x10x128xbf16> to vector<8x8x128xbf16>
    %28 = vector.extract_strided_slice %26 {offsets = [0, 1, 0], sizes = [8, 8, 128], strides = [1, 1, 1]} : vector<8x10x128xbf16> to vector<8x8x128xbf16>
    %29 = vector.extract_strided_slice %26 {offsets = [0, 2, 0], sizes = [8, 8, 128], strides = [1, 1, 1]} : vector<8x10x128xbf16> to vector<8x8x128xbf16>
    %30 = tpu.concatenate %27, %28, %29 in 2 : vector<8x8x128xbf16>, vector<8x8x128xbf16>, vector<8x8x128xbf16> -> vector<8x8x384xbf16>
    %31 = vector.shape_cast %30 : vector<8x8x384xbf16> to vector<64x384xbf16>
    %c2_21 = arith.constant 2 : index
    %c0_22 = arith.constant 0 : index
    %c0_23 = arith.constant 0 : index
    %32 = vector.load %arg2[%c2_21, %c0_22, %c0_23] : memref<3x384x128xbf16, #tpu.memory_space<vmem>>, vector<1x384x128xbf16>
    %33 = vector.shape_cast %32 : vector<1x384x128xbf16> to vector<384x128xbf16>
    %cst_24 = arith.constant dense<0.000000e+00> : vector<64x128xf32>
    %34 = tpu.matmul %31, %33, %cst_24 {dimension_numbers = #tpu.dot_dimension_numbers<[1], [0], [0], [1], [0, 0, 1, 1], [], []>} : vector<64x384xbf16>, vector<384x128xbf16>, vector<64x128xf32> -> vector<64x128xf32>
    %35 = arith.addf %24, %34 : vector<64x128xf32>
    %cst_25 = arith.constant 0.000000e+00 : f32
    %36 = vector.broadcast %cst_25 : f32 to vector<64x128xf32>
    %37 = arith.maximumf %35, %36 : vector<64x128xf32>
    %cst_26 = arith.constant 0.000000e+00 : f32
    %38 = vector.broadcast %cst_26 : f32 to vector<10x10x128xf32>
    %c0_27 = arith.constant 0 : index
    %c0_28 = arith.constant 0 : index
    %c0_29 = arith.constant 0 : index
    %39 = vector.load %arg7[%c0_27, %c0_28, %c0_29] : memref<10x10x128xf32, #tpu.memory_space<vmem>>, vector<10x10x128xf32>
    tpu.vector_store %arg7[%c0_27, %c0_28, %c0_29], %38 {strides = array<i32>} : memref<10x10x128xf32, #tpu.memory_space<vmem>>, vector<10x10x128xf32>,
    %40 = vector.shape_cast %37 : vector<64x128xf32> to vector<8x8x128xf32>
    %c1_30 = arith.constant 1 : index
    %c1_31 = arith.constant 1 : index
    %c0_32 = arith.constant 0 : index
    %41 = vector.load %arg7[%c1_30, %c1_31, %c0_32] : memref<10x10x128xf32, #tpu.memory_space<vmem>>, vector<8x8x128xf32>
    tpu.vector_store %arg7[%c1_30, %c1_31, %c0_32], %40 {strides = array<i32>} : memref<10x10x128xf32, #tpu.memory_space<vmem>>, vector<8x8x128xf32>,
    %c0_33 = arith.constant 0 : index
    %c0_34 = arith.constant 0 : index
    %c1_35 = arith.constant 1 : index
    %c0_36 = arith.constant 0 : index
    %c0_37 = arith.constant 0 : index
    %42 = vector.load %arg1[%c0_33, %c0_34, %c1_35, %c0_36, %c0_37] : memref<1x1x10x10x128xbf16, #tpu.memory_space<vmem>>, vector<1x1x8x10x128xbf16>
    %43 = vector.shape_cast %42 : vector<1x1x8x10x128xbf16> to vector<8x10x128xbf16>
    %44 = vector.extract_strided_slice %43 {offsets = [0, 1, 0], sizes = [8, 8, 128], strides = [1, 1, 1]} : vector<8x10x128xbf16> to vector<8x8x128xbf16>
    %45 = vector.shape_cast %44 : vector<8x8x128xbf16> to vector<64x128xbf16>
    %46 = arith.extf %45 : vector<64x128xbf16> to vector<64x128xf32>
    %c0_38 = arith.constant 0 : index
    %c0_39 = arith.constant 0 : index
    %47 = vector.load %arg5[%c0_38, %c0_39] : memref<1x128xf32, #tpu.memory_space<vmem>>, vector<1x128xf32>
    %48 = vector.shape_cast %47 : vector<1x128xf32> to vector<1x128xf32>
    %49 = vector.broadcast %48 : vector<1x128xf32> to vector<64x128xf32>
    %50 = arith.addf %46, %49 : vector<64x128xf32>
    %c0_40 = arith.constant 0 : index
    %c0_41 = arith.constant 0 : index
    %c0_42 = arith.constant 0 : index
    %51 = vector.load %arg7[%c0_40, %c0_41, %c0_42] : memref<10x10x128xf32, #tpu.memory_space<vmem>>, vector<8x10x128xf32>
    %52 = arith.truncf %51 : vector<8x10x128xf32> to vector<8x10x128xbf16>
    %53 = vector.extract_strided_slice %52 {offsets = [0, 0, 0], sizes = [8, 8, 128], strides = [1, 1, 1]} : vector<8x10x128xbf16> to vector<8x8x128xbf16>
    %54 = vector.extract_strided_slice %52 {offsets = [0, 1, 0], sizes = [8, 8, 128], strides = [1, 1, 1]} : vector<8x10x128xbf16> to vector<8x8x128xbf16>
    %55 = vector.extract_strided_slice %52 {offsets = [0, 2, 0], sizes = [8, 8, 128], strides = [1, 1, 1]} : vector<8x10x128xbf16> to vector<8x8x128xbf16>
    %56 = tpu.concatenate %53, %54, %55 in 2 : vector<8x8x128xbf16>, vector<8x8x128xbf16>, vector<8x8x128xbf16> -> vector<8x8x384xbf16>
    %57 = vector.shape_cast %56 : vector<8x8x384xbf16> to vector<64x384xbf16>
    %c0_43 = arith.constant 0 : index
    %c0_44 = arith.constant 0 : index
    %c0_45 = arith.constant 0 : index
    %58 = vector.load %arg4[%c0_43, %c0_44, %c0_45] : memref<3x384x128xbf16, #tpu.memory_space<vmem>>, vector<1x384x128xbf16>
    %59 = vector.shape_cast %58 : vector<1x384x128xbf16> to vector<384x128xbf16>
    %cst_46 = arith.constant dense<0.000000e+00> : vector<64x128xf32>
    %60 = tpu.matmul %57, %59, %cst_46 {dimension_numbers = #tpu.dot_dimension_numbers<[1], [0], [0], [1], [0, 0, 1, 1], [], []>} : vector<64x384xbf16>, vector<384x128xbf16>, vector<64x128xf32> -> vector<64x128xf32>
    %61 = arith.addf %50, %60 : vector<64x128xf32>
    %c1_47 = arith.constant 1 : index
    %c0_48 = arith.constant 0 : index
    %c0_49 = arith.constant 0 : index
    %62 = vector.load %arg7[%c1_47, %c0_48, %c0_49] : memref<10x10x128xf32, #tpu.memory_space<vmem>>, vector<8x10x128xf32>
    %63 = arith.truncf %62 : vector<8x10x128xf32> to vector<8x10x128xbf16>
    %64 = vector.extract_strided_slice %63 {offsets = [0, 0, 0], sizes = [8, 8, 128], strides = [1, 1, 1]} : vector<8x10x128xbf16> to vector<8x8x128xbf16>
    %65 = vector.extract_strided_slice %63 {offsets = [0, 1, 0], sizes = [8, 8, 128], strides = [1, 1, 1]} : vector<8x10x128xbf16> to vector<8x8x128xbf16>
    %66 = vector.extract_strided_slice %63 {offsets = [0, 2, 0], sizes = [8, 8, 128], strides = [1, 1, 1]} : vector<8x10x128xbf16> to vector<8x8x128xbf16>
    %67 = tpu.concatenate %64, %65, %66 in 2 : vector<8x8x128xbf16>, vector<8x8x128xbf16>, vector<8x8x128xbf16> -> vector<8x8x384xbf16>
    %68 = vector.shape_cast %67 : vector<8x8x384xbf16> to vector<64x384xbf16>
    %c1_50 = arith.constant 1 : index
    %c0_51 = arith.constant 0 : index
    %c0_52 = arith.constant 0 : index
    %69 = vector.load %arg4[%c1_50, %c0_51, %c0_52] : memref<3x384x128xbf16, #tpu.memory_space<vmem>>, vector<1x384x128xbf16>
    %70 = vector.shape_cast %69 : vector<1x384x128xbf16> to vector<384x128xbf16>
    %cst_53 = arith.constant dense<0.000000e+00> : vector<64x128xf32>
    %71 = tpu.matmul %68, %70, %cst_53 {dimension_numbers = #tpu.dot_dimension_numbers<[1], [0], [0], [1], [0, 0, 1, 1], [], []>} : vector<64x384xbf16>, vector<384x128xbf16>, vector<64x128xf32> -> vector<64x128xf32>
    %72 = arith.addf %61, %71 : vector<64x128xf32>
    %c2_54 = arith.constant 2 : index
    %c0_55 = arith.constant 0 : index
    %c0_56 = arith.constant 0 : index
    %73 = vector.load %arg7[%c2_54, %c0_55, %c0_56] : memref<10x10x128xf32, #tpu.memory_space<vmem>>, vector<8x10x128xf32>
    %74 = arith.truncf %73 : vector<8x10x128xf32> to vector<8x10x128xbf16>
    %75 = vector.extract_strided_slice %74 {offsets = [0, 0, 0], sizes = [8, 8, 128], strides = [1, 1, 1]} : vector<8x10x128xbf16> to vector<8x8x128xbf16>
    %76 = vector.extract_strided_slice %74 {offsets = [0, 1, 0], sizes = [8, 8, 128], strides = [1, 1, 1]} : vector<8x10x128xbf16> to vector<8x8x128xbf16>
    %77 = vector.extract_strided_slice %74 {offsets = [0, 2, 0], sizes = [8, 8, 128], strides = [1, 1, 1]} : vector<8x10x128xbf16> to vector<8x8x128xbf16>
    %78 = tpu.concatenate %75, %76, %77 in 2 : vector<8x8x128xbf16>, vector<8x8x128xbf16>, vector<8x8x128xbf16> -> vector<8x8x384xbf16>
    %79 = vector.shape_cast %78 : vector<8x8x384xbf16> to vector<64x384xbf16>
    %c2_57 = arith.constant 2 : index
    %c0_58 = arith.constant 0 : index
    %c0_59 = arith.constant 0 : index
    %80 = vector.load %arg4[%c2_57, %c0_58, %c0_59] : memref<3x384x128xbf16, #tpu.memory_space<vmem>>, vector<1x384x128xbf16>
    %81 = vector.shape_cast %80 : vector<1x384x128xbf16> to vector<384x128xbf16>
    %cst_60 = arith.constant dense<0.000000e+00> : vector<64x128xf32>
    %82 = tpu.matmul %79, %81, %cst_60 {dimension_numbers = #tpu.dot_dimension_numbers<[1], [0], [0], [1], [0, 0, 1, 1], [], []>} : vector<64x384xbf16>, vector<384x128xbf16>, vector<64x128xf32> -> vector<64x128xf32>
    %83 = arith.addf %72, %82 : vector<64x128xf32>
    %84 = vector.shape_cast %83 : vector<64x128xf32> to vector<1x64x128xf32>
    %85 = arith.truncf %84 : vector<1x64x128xf32> to vector<1x64x128xbf16>
    %c0_61 = arith.constant 0 : index
    %c0_62 = arith.constant 0 : index
    %c0_63 = arith.constant 0 : index
    %86 = vector.load %arg6[%c0_61, %c0_62, %c0_63] : memref<1x64x128xbf16, #tpu.memory_space<vmem>>, vector<1x64x128xbf16>
    tpu.vector_store %arg6[%c0_61, %c0_62, %c0_63], %85 {strides = array<i32>} : memref<1x64x128xbf16, #tpu.memory_space<vmem>>, vector<1x64x128xbf16>,
    return
  }
  func.func @transform_0(%arg0: i32) -> (i32, i32, i32, i32, i32) {
    %c0_i32 = arith.constant 0 : i32
    %c0_i32_0 = arith.constant 0 : i32
    %c0_i32_1 = arith.constant 0 : i32
    %c0_i32_2 = arith.constant 0 : i32
    %c0_i32_3 = arith.constant 0 : i32
    return %arg0, %c0_i32, %c0_i32_0, %c0_i32_1, %c0_i32_2 : i32, i32, i32, i32, i32
  }
  func.func @transform_1(%arg0: i32) -> (i32, i32, i32) {
    %c0_i32 = arith.constant 0 : i32
    %c0_i32_0 = arith.constant 0 : i32
    %c0_i32_1 = arith.constant 0 : i32
    %c0_i32_2 = arith.constant 0 : i32
    return %c0_i32, %c0_i32_0, %c0_i32_1 : i32, i32, i32
  }
  func.func @transform_2(%arg0: i32) -> (i32, i32) {
    %c0_i32 = arith.constant 0 : i32
    %c0_i32_0 = arith.constant 0 : i32
    %c0_i32_1 = arith.constant 0 : i32
    return %c0_i32, %c0_i32_0 : i32, i32
  }
  func.func @transform_3(%arg0: i32) -> (i32, i32, i32) {
    %c0_i32 = arith.constant 0 : i32
    %c0_i32_0 = arith.constant 0 : i32
    %c0_i32_1 = arith.constant 0 : i32
    %c0_i32_2 = arith.constant 0 : i32
    return %c0_i32, %c0_i32_0, %c0_i32_1 : i32, i32, i32
  }
  func.func @transform_4(%arg0: i32) -> (i32, i32) {
    %c0_i32 = arith.constant 0 : i32
    %c0_i32_0 = arith.constant 0 : i32
    %c0_i32_1 = arith.constant 0 : i32
    return %c0_i32, %c0_i32_0 : i32, i32
  }
  func.func @transform_5(%arg0: i32) -> (i32, i32, i32) {
    %c0_i32 = arith.constant 0 : i32
    %c0_i32_0 = arith.constant 0 : i32
    %c0_i32_1 = arith.constant 0 : i32
    return %arg0, %c0_i32, %c0_i32_0 : i32, i32, i32
  }
}

</mosaic_0001>

<bundles_post_ra>
// kernel: resnet_layer_forward.2
= control target key start
LH: loop header
LB: loop body
LE: loop exit
PB: predicated region body
PF: predicated region fallthrough
CT: control target
= control target key end

     0   :  { %s4522_s24 = smov 0   ;;  %s5576_s0 = inlined_call_operand.vmem [shape: bf16[2,4,9,9,128], index: 0, kind: input, shape index: {}]   ;;  %s5577_s1 = inlined_call_operand.vmem [shape: bf16[3,384,128], index: 1, kind: input, shape index: {}]   ;;  %s5578_s2 = inlined_call_operand.vmem [shape: f32[1,128], index: 2, kind: input, shape index: {}]   ;;  %s5579_s3 = inlined_call_operand.vmem [shape: bf16[128,128], index: 3, kind: input, shape index: {}]   ;;  %s5580_s4 = inlined_call_operand.vmem [shape: f32[1,128], index: 4, kind: input, shape index: {}]   ;;  %s5581_s5 = inlined_call_operand.vmem [shape: bf16[3,384,128], index: 5, kind: input, shape index: {}]   ;;  %s5582_s6 = inlined_call_operand.vmem [shape: f32[1,128], index: 6, kind: input, shape index: {}]   ;;  %s5583_s7 = inlined_call_operand.vmem [shape: bf16[2,64,128], index: 7, kind: output, shape index: {}]  }
   0x1 LB: > { %s3304_s25 = sadd.s32 4294967295, %s4478_s24   ;;  %p3308_p0 = scmp.ge.s32.totalorder %s4478_s24, 1  ;;  %s4478_s24 = sphi %s4522_s24, %s17_s24  }
   0x2   : > { %p237_p1 = scmp.lt.s32.totalorder %s4478_s24, 3 }
   0x4   : > { %p238_p2 = pnand %p3308_p0, %p237_p1 }
   0x5   : > { %p269_p3 = scmp.lt.s32.totalorder (!%p238_p2), %s3304_s25, 1 }
   0x6   : > { %241 = sbr.rel (%p238_p2) target bundleno = 600 (0x258), region = 48 }
   0xb   : > { %v4254_v0 = vld [vmem:[%s5577_s1 + $0x38] sm:$0xff]  ;;  %v4253_v3 = vld [vmem:[%s5577_s1 + $0x30] sm:$0xff]  ;;  %s5585_s25 = smov (!%p269_p3, %s3304_s25), 1  ;;  %v4252_v6 = vld [vmem:[%s5577_s1 + $0x28] sm:$0xff] }
   0xc   : > { %v4262_v1 = vld [vmem:[%s5577_s1 + $0x78] sm:$0xff]  ;;  %644 = vmatpush.bf16.msra.mxu0 %v4254_v0  ;;  %4434 = vmatpush.bf16.msra.mxu3 %v4254_v0  ;;  %v4261_v4 = vld [vmem:[%s5577_s1 + $0x70] sm:$0xff]  ;;  %s4458_s15 = smul.u32 288, %s5585_s25  ;;  %v4260_v7 = vld [vmem:[%s5577_s1 + $0x68] sm:$0xff]  ;;  %s4242_s10 = sshll.u32 %s5585_s25, 5 }
   0xd   : > { %v4270_v2 = vld [vmem:[%s5577_s1 + $0xb8] sm:$0xff]  ;;  %673 = vmatpush.bf16.msra.mxu1 %v4262_v1  ;;  %v4269_v5 = vld [vmem:[%s5577_s1 + $0xb0] sm:$0xff]  ;;  %v4268_v8 = vld [vmem:[%s5577_s1 + $0xa8] sm:$0xff]  ;;  %s5564_s13 = scalar_lea.vmem %s5583_s7, %s4242_s10 }
   0xe   : > { %702 = vmatpush.bf16.msra.mxu2 %v4270_v2  ;;  %s4557_s20 = scalar_lea.vmem %s5576_s0, %s4458_s15  ;;  %v4251_v16 = vld [vmem:[%s5577_s1 + $0x20] sm:$0xff]  ;;  %v4250_v22 = vld [vmem:[%s5577_s1 + $0x18] sm:$0xff]  ;;  %v4249_v27 = vld [vmem:[%s5577_s1 + $0x10] sm:$0xff] }
   0xf   : > { %v4566_v9 = vld [vmem:[%s4557_s20] sm:$0xf]  ;;  %v284_v10 = vld [vmem:[%s4557_s20 + $0x4] sm:$0x1]  ;;  %v4570_v11 = vld [vmem:[%s4557_s20 + $0x8] sm:$0xf] }
  0x10   : > { %645 = vmatpush.bf16.msra.mxu0 %v4253_v3  ;;  %4435 = vmatpush.bf16.msra.mxu3 %v4253_v3  ;;  %v286_v12 = vld [vmem:[%s4557_s20 + $0xc] sm:$0x1]  ;;  %v324_v13 = vunpack.c.l.b16 %v4566_v9  ;;  %v325_v14 = vunpack.c.l.b16 %v284_v10  ;;  %v326_v15 = vunpack.c.l.b16 %v4570_v11  ;;  %v4259_v18 = vld [vmem:[%s5577_s1 + $0x60] sm:$0xff]  ;;  %v4258_v25 = vld [vmem:[%s5577_s1 + $0x58] sm:$0xff] }
  0x11   : > { %674 = vmatpush.bf16.msra.mxu1 %v4261_v4  ;;  %v327_v17 = vunpack.c.l.b16 %v286_v12  ;;  %v4267_v19 = vld [vmem:[%s5577_s1 + $0xa0] sm:$0xff]  ;;  %v4266_v26 = vld [vmem:[%s5577_s1 + $0x98] sm:$0xff]  ;;  %v4257_v28 = vld [vmem:[%s5577_s1 + $0x50] sm:$0xff] }
  0x12   : > { %703 = vmatpush.bf16.msra.mxu2 %v4269_v5  ;;  %v340_v20 = vpack.c.b16 %v325_v14, %v324_v13  ;;  %v4265_v29 = vld [vmem:[%s5577_s1 + $0x90] sm:$0xff]  ;;  %v4611_v36 = vld [vmem:[%s4557_s20 + $0x18] sm:$0xf]  ;;  %v290_v37 = vld [vmem:[%s4557_s20 + $0x1c] sm:$0x1]  ;;  %v476_v62 = vpack.c.b16 %v326_v15, %v324_v13 }
  0x13   : > { %v341_v21 = vpack.c.b16 %v327_v17, %v326_v15  ;;  %v4607_v32 = vld [vmem:[%s4557_s20 + $0x10] sm:$0xf]  ;;  %v288_v35 = vld [vmem:[%s4557_s20 + $0x14] sm:$0x1]  ;;  %v4248_v40 = vld [vmem:[%s5577_s1 + $0x8] sm:$0xff]  ;;  %v330_v45 = vunpack.c.l.b16 %v4611_v36  ;;  %v331_v46 = vunpack.c.l.b16 %v290_v37 }
  0x14   : > { %646 = vmatpush.bf16.msra.mxu0 %v4252_v6  ;;  %4436 = vmatpush.bf16.msra.mxu3 %v4252_v6  ;;  %v351_v23 = vshll.u32 %v340_v20, 16  ;;  %v349_v30 = vshrl.u32 %v340_v20, 16  ;;  %v328_v38 = vunpack.c.l.b16 %v4607_v32  ;;  %v329_v39 = vunpack.c.l.b16 %v288_v35  ;;  %v4619_v41 = vld [vmem:[%s4557_s20 + $0x20] sm:$0xf]  ;;  %v4622_v42 = vld [vmem:[%s4557_s20 + $0x28] sm:$0xf] }
  0x15   : > { %675 = vmatpush.bf16.msra.mxu1 %v4260_v7  ;;  %v358_v24 = vshll.u32 %v341_v21, 16  ;;  %v356_v31 = vshrl.u32 %v341_v21, 16  ;;  %v4256_v47 = vld [vmem:[%s5577_s1 + $0x48] sm:$0xff]  ;;  %v332_v49 = vunpack.c.l.b16 %v4619_v41  ;;  %v334_v50 = vunpack.c.l.b16 %v4622_v42  ;;  %v4247_v51 = vld [vmem:[%s5577_s1] sm:$0xff]  ;;  %v4243_v59 = vld [vmem:[%s4557_s20 + $0x4c] sm:$0xf0] }
  0x16   : > { %704 = vmatpush.bf16.msra.mxu2 %v4268_v8  ;;  %v353_v33 = vrot.slane %v351_v23, 1  ;;  %v4264_v48 = vld [vmem:[%s5577_s1 + $0x88] sm:$0xff]  ;;  %v4255_v52 = vld [vmem:[%s5577_s1 + $0x40] sm:$0xff]  ;;  %v342_v55 = vpack.c.b16 %v329_v39, %v328_v38  ;;  %v343_v56 = vpack.c.b16 %v331_v46, %v330_v45  ;;  %v4282_v60 = vld [vmem:[%s5577_s1 + $0xf8] sm:$0xff]  ;;  %v479_v41 = vpack.c.b16 %v330_v45, %v328_v38 }
  0x17   : > { %v360_v34 = vrot.slane %v358_v24, 1  ;;  %v4263_v57 = vld [vmem:[%s5577_s1 + $0x80] sm:$0xff]  ;;  %v3322_v58 = vld [vmem:[%s4557_s20 + $0x48] sm:$0xf]  ;;  %v4290_v61 = vld [vmem:[%s5577_s1 + $0x138] sm:$0xff]  ;;  %v482_v63 = vpack.c.b16 %v334_v50, %v332_v49 }
  0x18   : > { %647 = vmatpush.bf16.msra.mxu0 %v4251_v16  ;;  %4437 = vmatpush.bf16.msra.mxu3 %v4251_v16  ;;  %v354_v43 = vor.u32 %v353_v33, %v349_v30  ;;  %v3323_v0 = vor.u32 %v4243_v59, %v3322_v58  ;;  %v365_v2 = vshll.u32 %v342_v55, 16  ;;  %v372_v3 = vshll.u32 %v343_v56, 16  ;;  %v4281_v4 = vld [vmem:[%s5577_s1 + $0xf0] sm:$0xff]  ;;  %v4298_v6 = vld [vmem:[%s5577_s1 + $0x178] sm:$0xff]  ;;  %v292_v12 = vld [vmem:[%s4557_s20 + $0x24] sm:$0x1] }
  0x19   : > { %676 = vmatpush.bf16.msra.mxu1 %v4259_v18  ;;  %v361_v44 = vor.u32 %v360_v34, %v356_v31  ;;  %v4289_v5 = vld [vmem:[%s5577_s1 + $0x130] sm:$0xff]  ;;  %v363_v7 = vshrl.u32 %v342_v55, 16  ;;  %v370_v9 = vshrl.u32 %v343_v56, 16  ;;  %v4310_v11 = vld [vmem:[%s5577_s1 + $0x1b8] sm:$0xff]  ;;  %v294_v13 = vld [vmem:[%s4557_s20 + $0x2c] sm:$0x1]  ;;  %v333_v18 = vunpack.c.l.b16 %v292_v12 }
  0x1a   : > { %705 = vmatpush.bf16.msra.mxu2 %v4267_v19  ;;  %v413_v53 = vunpack.c.l.b16 %v354_v43  ;;  %v367_v8 = vrot.slane %v365_v2, 1  ;;  %v374_v10 = vrot.slane %v372_v3, 1  ;;  %v4297_v14 = vld [vmem:[%s5577_s1 + $0x170] sm:$0xff]  ;;  %v4280_v15 = vld [vmem:[%s5577_s1 + $0xe8] sm:$0xff]  ;;  %v335_v19 = vunpack.c.l.b16 %v294_v13  ;;  %v4692_v21 = vld [vmem:[%s4557_s20 + $0x38] sm:$0xf] }
  0x1b   : > { %v415_v54 = vunpack.c.l.b16 %v361_v44  ;;  %v4288_v16 = vld [vmem:[%s5577_s1 + $0x128] sm:$0xff]  ;;  %v4309_v17 = vld [vmem:[%s5577_s1 + $0x1b0] sm:$0xff]  ;;  %v3326_v34 = vld [vmem:[%s4557_s20 + $0x58] sm:$0xf] }
  0x1c   : > { %648 = vmatpush.bf16.msra.mxu0 %v4250_v22  ;;  %4438 = vmatpush.bf16.msra.mxu3 %v4250_v22  ;;  %v4689_v20 = vld [vmem:[%s4557_s20 + $0x30] sm:$0xf]  ;;  %v368_v22 = vor.u32 %v367_v8, %v363_v7  ;;  %v375_v23 = vor.u32 %v374_v10, %v370_v9  ;;  %v4296_v24 = vld [vmem:[%s5577_s1 + $0x168] sm:$0xff]  ;;  %v345_v30 = vpack.c.b16 %v335_v19, %v334_v50  ;;  %v4244_v35 = vld [vmem:[%s4557_s20 + $0x5c] sm:$0xf0] }
  0x1d   : > { %677 = vmatpush.bf16.msra.mxu1 %v4258_v25  ;;  %v478_v1 = vpack.c.b16 %v415_v54, %v413_v53  ;;  %v4279_v25 = vld [vmem:[%s5577_s1 + $0xe0] sm:$0xff]  ;;  %v4278_v39 = vld [vmem:[%s5577_s1 + $0xd8] sm:$0xff]  ;;  %v3327_v43 = vor.u32 %v4244_v35, %v3326_v34  ;;  %v4277_v32 = vld [vmem:[%s5577_s1 + $0xd0] sm:$0xff] }
  0x1e   : > { %706 = vmatpush.bf16.msra.mxu2 %v4266_v26  ;;  %v4287_v26 = vld [vmem:[%s5577_s1 + $0x120] sm:$0xff]  ;;  %v417_v31 = vunpack.c.l.b16 %v368_v22  ;;  %v419_v33 = vunpack.c.l.b16 %v375_v23  ;;  %v4285_v36 = vld [vmem:[%s5577_s1 + $0x110] sm:$0xff]  ;;  %v4294_v38 = vld [vmem:[%s5577_s1 + $0x158] sm:$0xff] }
  0x1f   : > { %v4295_v37 = vld [vmem:[%s5577_s1 + $0x160] sm:$0xff]  ;;  %v298_v53 = vld [vmem:[%s4557_s20 + $0x3c] sm:$0x1]  ;;  %v4293_v54 = vld [vmem:[%s5577_s1 + $0x150] sm:$0xff] }
  0x20   : > { %649 = vmatpush.bf16.msra.mxu0 %v4249_v27  ;;  %4439 = vmatpush.bf16.msra.mxu3 %v4249_v27  ;;  %v336_v27 = vunpack.c.l.b16 %v4689_v20  ;;  %v481_v44 = vpack.c.b16 %v419_v33, %v417_v31  ;;  %v4276_v55 = vld [vmem:[%s5577_s1 + $0xc8] sm:$0xff]  ;;  %v339_v59 = vunpack.c.l.b16 %v298_v53  ;;  %v4283_v2 = vld [vmem:[%s5577_s1 + $0x100] sm:$0xff]  ;;  %v4317_v22 = vld [vmem:[%s5577_s1 + $0x1f0] sm:$0xff] }
  0x21   : > { %678 = vmatpush.bf16.msra.mxu1 %v4257_v28  ;;  %v338_v28 = vunpack.c.l.b16 %v4692_v21  ;;  %v4284_v56 = vld [vmem:[%s5577_s1 + $0x108] sm:$0xff]  ;;  %v4271_v12 = vld [vmem:[%s4557_s20 + $0xdc] sm:$0xf0]  ;;  %v4325_v23 = vld [vmem:[%s5577_s1 + $0x230] sm:$0xff] }
  0x22   : > { %707 = vmatpush.bf16.msra.mxu2 %v4265_v29  ;;  %v344_v29 = vpack.c.b16 %v333_v18, %v332_v49  ;;  %v384_v49 = vshrl.u32 %v345_v30, 16  ;;  %v3330_v13 = vld [vmem:[%s4557_s20 + $0x68] sm:$0xf]  ;;  %v4305_v34 = vld [vmem:[%s5577_s1 + $0x190] sm:$0xff]  ;;  %v4322_v53 = vld [vmem:[%s5577_s1 + $0x218] sm:$0xff] }
  0x23   : > { %v485_v42 = vpack.c.b16 %v338_v28, %v336_v27  ;;  %v347_v8 = vpack.c.b16 %v339_v59, %v338_v28  ;;  %v4316_v31 = vld [vmem:[%s5577_s1 + $0x1e8] sm:$0xff] }
  0x24   : > { %650 = vmatpush.bf16.msra.mxu0 %v4248_v40  ;;  %4440 = vmatpush.bf16.msra.mxu3 %v4248_v40  ;;  %v4286_v40 = vld [vmem:[%s5577_s1 + $0x118] sm:$0xff]  ;;  %v379_v46 = vshll.u32 %v344_v29, 16  ;;  %v377_v45 = vshrl.u32 %v344_v29, 16  ;;  %v4324_v33 = vld [vmem:[%s5577_s1 + $0x228] sm:$0xff] }
  0x25   : > { %679 = vmatpush.bf16.msra.mxu1 %v4256_v47  ;;  %v386_v47 = vshll.u32 %v345_v30, 16  ;;  %v400_v21 = vshll.u32 %v347_v8, 16  ;;  %v4306_v29 = vld [vmem:[%s5577_s1 + $0x198] sm:$0xff] }
  0x26   : > { %708 = vmatpush.bf16.msra.mxu2 %v4264_v48  ;;  %v381_v48 = vrot.slane %v379_v46, 1  ;;  %v3435_v30 = vld [vmem:[%s4557_s20 + $0x9c] sm:$0x1] }
  0x27   : > { %v388_v50 = vrot.slane %v386_v47, 1  ;;  %v402_v28 = vrot.slane %v400_v21, 1 }
  0x28   : > { %651 = vmatpush.bf16.msra.mxu0 %v4247_v51  ;;  %4441 = vmatpush.bf16.msra.mxu3 %v4247_v51  ;;  %v4308_v51 = vld [vmem:[%s5577_s1 + $0x1a8] sm:$0xff] }
  0x29   : > { %680 = vmatpush.bf16.msra.mxu1 %v4255_v52  ;;  %v296_v52 = vld [vmem:[%s4557_s20 + $0x34] sm:$0x1] }
  0x2a   : > { %709 = vmatpush.bf16.msra.mxu2 %v4263_v57  ;;  %v4307_v57 = vld [vmem:[%s5577_s1 + $0x1a0] sm:$0xff]  ;;  %v337_v58 = vunpack.c.l.b16 %v296_v52  ;;  %v4314_v52 = vld [vmem:[%s5577_s1 + $0x1d8] sm:$0xff] }
  0x2b   : > { %652 = vmatmul.bf16.vlgmr.msra.gmra.mxu0 %v476_v62  ;;  %662 = vmatmul.bf16.vlgmr.msra.gmra.mxu3 %v482_v63  ;;  %v4755_v62 = vld [vmem:[%s4557_s20 + $0x90] sm:$0xf]  ;;  %v4758_v63 = vld [vmem:[%s4557_s20 + $0x98] sm:$0xf] }
  0x2c   : > { %1102 = vmatpush.bf16.msrb.mxu3 %v4282_v60  ;;  %1131 = vmatpush.bf16.msrb.mxu0 %v4290_v61  ;;  %v382_v60 = vor.u32 %v381_v48, %v377_v45  ;;  %v389_v61 = vor.u32 %v388_v50, %v384_v49  ;;  %v781_v3 = vunpack.c.l.b16 %v4755_v62  ;;  %v346_v7 = vpack.c.b16 %v337_v58, %v336_v27  ;;  %v3510_v49 = vld [vmem:[%s4557_s20 + $0xe8] sm:$0xf]  ;;  %v4272_v50 = vld [vmem:[%s4557_s20 + $0xec] sm:$0xf0] }
  0x2d   : > { %681 = vmatmul.bf16.vlgmr.msra.gmra.mxu1 %v3323_v0  ;;  %710 = vmatmul.bf16.vlgmr.msra.gmra.mxu2 %v478_v1  ;;  %v4292_v0 = vld [vmem:[%s5577_s1 + $0x148] sm:$0xff]  ;;  %v4275_v1 = vld [vmem:[%s5577_s1 + $0xc0] sm:$0xff]  ;;  %v398_v27 = vshrl.u32 %v347_v8, 16 }
  0x2e   : > { %1160 = vmatpush.bf16.msrb.mxu1 %v4298_v6  ;;  %1560 = vmatpush.bf16.msrb.mxu2 %v4310_v11  ;;  %v4326_v6 = vld [vmem:[%s5577_s1 + $0x238] sm:$0xff]  ;;  %v421_v9 = vunpack.c.l.b16 %v382_v60  ;;  %v423_v10 = vunpack.c.l.b16 %v389_v61  ;;  %v393_v20 = vshll.u32 %v346_v7, 16  ;;  %v4313_v60 = vld [vmem:[%s5577_s1 + $0x1d0] sm:$0xff]  ;;  %v3437_v61 = vld [vmem:[%s4557_s20 + $0xa4] sm:$0x1] }
  0x2f   : > { %v3506_v11 = vld [vmem:[%s4557_s20 + $0xd8] sm:$0xf]  ;;  %v4304_v62 = vld [vmem:[%s5577_s1 + $0x188] sm:$0xff]  ;;  %v786_v8 = vunpack.c.l.b16 %v3437_v61 }
  0x30   : > { %1103 = vmatpush.bf16.msrb.mxu3 %v4281_v4  ;;  %1132 = vmatpush.bf16.msrb.mxu0 %v4289_v5  ;;  %v783_v4 = vunpack.c.l.b16 %v4758_v63  ;;  %v4318_v5 = vld [vmem:[%s5577_s1 + $0x1f8] sm:$0xff]  ;;  %v484_v19 = vpack.c.b16 %v423_v10, %v421_v9  ;;  %v3440_v10 = vld [vmem:[%s4557_s20 + $0xb0] sm:$0xf] }
  0x32   : > { %1161 = vmatpush.bf16.msrb.mxu1 %v4297_v14  ;;  %1561 = vmatpush.bf16.msrb.mxu2 %v4309_v17  ;;  %v4245_v14 = vld [vmem:[%s4557_s20 + $0x6c] sm:$0xf0]  ;;  %v3507_v17 = vor.u32 %v4271_v12, %v3506_v11  ;;  %v3442_v11 = vld [vmem:[%s4557_s20 + $0xb8] sm:$0xf] }
  0x33   : > { %v3331_v18 = vor.u32 %v4245_v14, %v3330_v13  ;;  %v4311_v14 = vld [vmem:[%s5577_s1 + $0x1c0] sm:$0xff] }
  0x34   : > { %1104 = vmatpush.bf16.msrb.mxu3 %v4280_v15  ;;  %1133 = vmatpush.bf16.msrb.mxu0 %v4288_v16  ;;  %v4291_v15 = vld [vmem:[%s5577_s1 + $0x140] sm:$0xff]  ;;  %v934_v16 = vpack.c.b16 %v783_v4, %v781_v3 }
  0x36   : > { %1162 = vmatpush.bf16.msrb.mxu1 %v4296_v24  ;;  %1562 = vmatpush.bf16.msrb.mxu2 %v4308_v51  ;;  %v3433_v24 = vld [vmem:[%s4557_s20 + $0x94] sm:$0x1]  ;;  %v4246_v51 = vld [vmem:[%s4557_s20 + $0x7c] sm:$0xf0] }
  0x37   : > { %v782_v35 = vunpack.c.l.b16 %v3433_v24 }
  0x38   : > { %1105 = vmatpush.bf16.msrb.mxu3 %v4279_v25  ;;  %1134 = vmatpush.bf16.msrb.mxu0 %v4287_v26  ;;  %v391_v25 = vshrl.u32 %v346_v7, 16  ;;  %v395_v26 = vrot.slane %v393_v20, 1  ;;  %v4320_v7 = vld [vmem:[%s5577_s1 + $0x208] sm:$0xff]  ;;  %v3618_v20 = vld [vmem:[%s4557_s20 + $0x10] sm:$0xf] }
  0x3a   : > { %1163 = vmatpush.bf16.msrb.mxu1 %v4295_v37  ;;  %1563 = vmatpush.bf16.msrb.mxu2 %v4307_v57  ;;  %v784_v37 = vunpack.c.l.b16 %v3435_v30 }
  0x3b   : > { %657 = vmatmul.bf16.gmra.mxu0 %v479_v41  ;;  %667 = vmatmul.bf16.gmra.mxu3 %v485_v42  ;;  %v3436_v41 = vld [vmem:[%s4557_s20 + $0xa0] sm:$0xf]  ;;  %v4810_v42 = vld [vmem:[%s4557_s20 + $0xa8] sm:$0xf] }
  0x3c   : > { %1106 = vmatpush.bf16.msrb.mxu3 %v4278_v39  ;;  %1135 = vmatpush.bf16.msrb.mxu0 %v4286_v40  ;;  %v396_v39 = vor.u32 %v395_v26, %v391_v25  ;;  %v403_v40 = vor.u32 %v402_v28, %v398_v27  ;;  %v785_v46 = vunpack.c.l.b16 %v3436_v41  ;;  %v787_v47 = vunpack.c.l.b16 %v4810_v42  ;;  %v3617_v41 = vld [vmem:[%s4557_s20 + $0xc] sm:$0x1]  ;;  %v3619_v42 = vld [vmem:[%s4557_s20 + $0x14] sm:$0x1] }
  0x3d   : > { %686 = vmatmul.bf16.gmra.mxu1 %v3327_v43  ;;  %715 = vmatmul.bf16.gmra.mxu2 %v481_v44  ;;  %v4315_v43 = vld [vmem:[%s5577_s1 + $0x1e0] sm:$0xff]  ;;  %v1241_v27 = vunpack.c.l.b16 %v3618_v20 }
  0x3e   : > { %1164 = vmatpush.bf16.msrb.mxu1 %v4294_v38  ;;  %1564 = vmatpush.bf16.msrb.mxu2 %v4306_v29  ;;  %v4323_v44 = vld [vmem:[%s5577_s1 + $0x220] sm:$0xff]  ;;  %v3334_v38 = vld [vmem:[%s4557_s20 + $0x78] sm:$0xf]  ;;  %v425_v45 = vunpack.c.l.b16 %v396_v39  ;;  %v427_v48 = vunpack.c.l.b16 %v403_v40 }
  0x40   : > { %1107 = vmatpush.bf16.msrb.mxu3 %v4277_v32  ;;  %1136 = vmatpush.bf16.msrb.mxu0 %v4285_v36  ;;  %v797_v32 = vpack.c.b16 %v782_v35, %v781_v3  ;;  %v798_v36 = vpack.c.b16 %v784_v37, %v783_v4  ;;  %v487_v57 = vpack.c.b16 %v427_v48, %v425_v45  ;;  %v4321_v3 = vld [vmem:[%s5577_s1 + $0x210] sm:$0xff]  ;;  %v3439_v4 = vld [vmem:[%s4557_s20 + $0xac] sm:$0x1]  ;;  %v3446_v45 = vld [vmem:[%s4557_s20 + $0xc8] sm:$0xf] }
  0x41   : > { %v788_v9 = vunpack.c.l.b16 %v3439_v4 }
  0x42   : > { %1165 = vmatpush.bf16.msrb.mxu1 %v4293_v54  ;;  %1565 = vmatpush.bf16.msrb.mxu2 %v4305_v34  ;;  %v937_v54 = vpack.c.b16 %v787_v47, %v785_v46  ;;  %v808_v58 = vshll.u32 %v797_v32, 16  ;;  %v815_v59 = vshll.u32 %v798_v36, 16  ;;  %v806_v63 = vshrl.u32 %v797_v32, 16 }
  0x43   : > { %v800_v21 = vpack.c.b16 %v788_v9, %v787_v47  ;;  %v1242_v47 = vunpack.c.l.b16 %v3619_v42  ;;  %v4299_v42 = vld [vmem:[%s4557_s20 + $0x54] sm:$0xf0] }
  0x44   : > { %1108 = vmatpush.bf16.msrb.mxu3 %v4276_v55  ;;  %1137 = vmatpush.bf16.msrb.mxu0 %v4284_v56  ;;  %v3511_v55 = vor.u32 %v4272_v50, %v3510_v49  ;;  %v3335_v56 = vor.u32 %v4246_v51, %v3334_v38  ;;  %v3444_v38 = vld [vmem:[%s4557_s20 + $0xc0] sm:$0xf]  ;;  %v795_v51 = vunpack.c.l.b16 %v3446_v45 }
  0x45   : > { %v827_v39 = vshrl.u32 %v800_v21, 16  ;;  %v793_v50 = vunpack.c.l.b16 %v3444_v38 }
  0x46   : > { %1166 = vmatpush.bf16.msrb.mxu1 %v4292_v0  ;;  %v810_v0 = vrot.slane %v808_v58, 1  ;;  %1566 = vmatpush.bf16.msrb.mxu2 %v4304_v62  ;;  %v3518_v58 = vld [vmem:[%s4557_s20 + $0x108] sm:$0xf] }
  0x48   : > { %1109 = vmatpush.bf16.msrb.mxu3 %v4275_v1  ;;  %1138 = vmatpush.bf16.msrb.mxu0 %v4283_v2  ;;  %v813_v1 = vshrl.u32 %v798_v36, 16  ;;  %v817_v2 = vrot.slane %v815_v59, 1  ;;  %v811_v12 = vor.u32 %v810_v0, %v806_v63  ;;  %v4274_v59 = vld [vmem:[%s4557_s20 + $0x10c] sm:$0xf0]  ;;  %v943_v0 = vpack.c.b16 %v795_v51, %v793_v50 }
  0x4a   : > { %1167 = vmatpush.bf16.msrb.mxu1 %v4291_v15  ;;  %v818_v13 = vor.u32 %v817_v2, %v813_v1  ;;  %v4319_v15 = vld [vmem:[%s5577_s1 + $0x200] sm:$0xff]  ;;  %v870_v24 = vunpack.c.l.b16 %v811_v12  ;;  %v3519_v1 = vor.u32 %v4274_v59, %v3518_v58  ;;  %v3625_v58 = vld [vmem:[%s4557_s20 + $0x2c] sm:$0x1]  ;;  %v3627_v59 = vld [vmem:[%s4557_s20 + $0x34] sm:$0x1] }
  0x4b   : > { %1110 = vmatmul.bf16.vlgmr.msrb.gmra.mxu3 %v934_v16  ;;  %1139 = vmatmul.bf16.vlgmr.msrb.gmra.mxu0 %v3507_v17  ;;  %v799_v16 = vpack.c.b16 %v786_v8, %v785_v46  ;;  %v789_v17 = vunpack.c.l.b16 %v3440_v10  ;;  %v1240_v46 = vunpack.c.l.b16 %v3617_v41  ;;  %v3690_v41 = vld [vmem:[%s4557_s20 + $0x50] sm:$0xf] }
  0x4c   : > { %1589 = vmatpush.bf16.msra.mxu3 %v4318_v5  ;;  %1618 = vmatpush.bf16.msra.mxu0 %v4326_v6  ;;  %v4312_v5 = vld [vmem:[%s5577_s1 + $0x1c8] sm:$0xff]  ;;  %v4303_v6 = vld [vmem:[%s5577_s1 + $0x180] sm:$0xff]  ;;  %v872_v25 = vunpack.c.l.b16 %v818_v13 }
  0x4d   : > { %691 = vmatmul.bf16.gmra.mxu1 %v3331_v18  ;;  %720 = vmatmul.bf16.gmra.mxu2 %v484_v19  ;;  %v791_v18 = vunpack.c.l.b16 %v3442_v11  ;;  %v3616_v19 = vld [vmem:[%s4557_s20 + $0x8] sm:$0xf]  ;;  %v822_v30 = vshll.u32 %v799_v16, 16  ;;  %v820_v35 = vshrl.u32 %v799_v16, 16  ;;  %v3621_v16 = vld [vmem:[%s4557_s20 + $0x1c] sm:$0x1] }
  0x4e   : > { %1567 = vmatpush.bf16.msrb.mxu2 %v4303_v6  ;;  %v1239_v26 = vunpack.c.l.b16 %v3616_v19  ;;  %v3447_v19 = vld [vmem:[%s4557_s20 + $0xcc] sm:$0x1] }
  0x4f   : > { %v940_v28 = vpack.c.b16 %v791_v18, %v789_v17  ;;  %v824_v37 = vrot.slane %v822_v30, 1 }
  0x50   : > { %1590 = vmatpush.bf16.msra.mxu3 %v4317_v22  ;;  %1619 = vmatpush.bf16.msra.mxu0 %v4325_v23  ;;  %v3514_v22 = vld [vmem:[%s4557_s20 + $0xf8] sm:$0xf]  ;;  %v4273_v23 = vld [vmem:[%s4557_s20 + $0xfc] sm:$0xf0]  ;;  %v1392_v34 = vpack.c.b16 %v1241_v27, %v1239_v26 }
  0x51   : > { %v3515_v29 = vor.u32 %v4273_v23, %v3514_v22  ;;  %v825_v48 = vor.u32 %v824_v37, %v820_v35  ;;  %v1244_v22 = vunpack.c.l.b16 %v3621_v16 }
  0x54   : > { %1591 = vmatpush.bf16.msra.mxu3 %v4316_v31  ;;  %1620 = vmatpush.bf16.msra.mxu0 %v4324_v33  ;;  %v936_v31 = vpack.c.b16 %v872_v25, %v870_v24  ;;  %v829_v33 = vshll.u32 %v800_v21, 16  ;;  %v796_v25 = vunpack.c.l.b16 %v3447_v19 }
  0x56   : > { %v831_v40 = vrot.slane %v829_v33, 1  ;;  %v3624_v33 = vld [vmem:[%s4557_s20 + $0x28] sm:$0xf]  ;;  %v804_v37 = vpack.c.b16 %v796_v25, %v795_v51  ;;  %v3631_v25 = vld [vmem:[%s4557_s20 + $0x44] sm:$0x1] }
  0x58   : > { %1592 = vmatpush.bf16.msra.mxu3 %v4315_v43  ;;  %1621 = vmatpush.bf16.msra.mxu0 %v4323_v44  ;;  %v3441_v43 = vld [vmem:[%s4557_s20 + $0xb4] sm:$0x1]  ;;  %v3443_v44 = vld [vmem:[%s4557_s20 + $0xbc] sm:$0x1]  ;;  %v832_v49 = vor.u32 %v831_v40, %v827_v39 }
  0x59   : > { %v790_v32 = vunpack.c.l.b16 %v3441_v43  ;;  %v792_v36 = vunpack.c.l.b16 %v3443_v44  ;;  %v1247_v43 = vunpack.c.l.b16 %v3624_v33 }
  0x5a   : > { %v876_v61 = vunpack.c.l.b16 %v832_v49 }
  0x5b   : > { %1115 = vmatmul.bf16.gmra.mxu3 %v937_v54  ;;  %1144 = vmatmul.bf16.gmra.mxu0 %v3511_v55  ;;  %v3620_v54 = vld [vmem:[%s4557_s20 + $0x18] sm:$0xf]  ;;  %v3622_v55 = vld [vmem:[%s4557_s20 + $0x20] sm:$0xf] }
  0x5c   : > { %1593 = vmatpush.bf16.msra.mxu3 %v4314_v52  ;;  %1622 = vmatpush.bf16.msra.mxu0 %v4322_v53  ;;  %v1255_v52 = vpack.c.b16 %v1240_v46, %v1239_v26  ;;  %v1256_v53 = vpack.c.b16 %v1242_v47, %v1241_v27  ;;  %v1243_v62 = vunpack.c.l.b16 %v3620_v54  ;;  %v1245_v63 = vunpack.c.l.b16 %v3622_v55 }
  0x5d   : > { %696 = vmatmul.bf16.gmra.mxu1 %v3335_v56  ;;  %725 = vmatmul.bf16.gmra.mxu2 %v487_v57  ;;  %v801_v56 = vpack.c.b16 %v790_v32, %v789_v17  ;;  %v802_v57 = vpack.c.b16 %v792_v36, %v791_v18  ;;  %v3623_v17 = vld [vmem:[%s4557_s20 + $0x24] sm:$0x1]  ;;  %v3691_v46 = vor.u32 %v4299_v42, %v3690_v41 }
  0x5e   : > { %v1266_v2 = vshll.u32 %v1255_v52, 16  ;;  %v1264_v10 = vshrl.u32 %v1255_v52, 16  ;;  %v1271_v12 = vshrl.u32 %v1256_v53, 16  ;;  %v3445_v18 = vld [vmem:[%s4557_s20 + $0xc4] sm:$0x1]  ;;  %v1246_v23 = vunpack.c.l.b16 %v3623_v17 }
  0x5f   : > { %v843_v6 = vshll.u32 %v802_v57, 16  ;;  %v834_v8 = vshrl.u32 %v801_v56, 16  ;;  %v841_v9 = vshrl.u32 %v802_v57, 16  ;;  %v794_v24 = vunpack.c.l.b16 %v3445_v18 }
  0x60   : > { %1594 = vmatpush.bf16.msra.mxu3 %v4313_v60  ;;  %1623 = vmatpush.bf16.msra.mxu0 %v4321_v3  ;;  %v874_v60 = vunpack.c.l.b16 %v825_v48  ;;  %v1273_v3 = vshll.u32 %v1256_v53, 16  ;;  %v1268_v11 = vrot.slane %v1266_v2, 1  ;;  %v1257_v30 = vpack.c.b16 %v1244_v22, %v1243_v62 }
  0x61   : > { %v803_v35 = vpack.c.b16 %v794_v24, %v793_v50  ;;  %v857_v48 = vshll.u32 %v804_v37, 16  ;;  %v855_v53 = vshrl.u32 %v804_v37, 16  ;;  %v3629_v24 = vld [vmem:[%s4557_s20 + $0x3c] sm:$0x1]  ;;  %v4301_v37 = vld [vmem:[%s4557_s20 + $0x74] sm:$0xf0] }
  0x62   : > { %v939_v4 = vpack.c.b16 %v876_v61, %v874_v60  ;;  %v1275_v13 = vrot.slane %v1273_v3, 1  ;;  %v1269_v20 = vor.u32 %v1268_v11, %v1264_v10  ;;  %v1280_v32 = vshll.u32 %v1257_v30, 16  ;;  %v3694_v10 = vld [vmem:[%s4557_s20 + $0x60] sm:$0xf]  ;;  %v4300_v11 = vld [vmem:[%s4557_s20 + $0x64] sm:$0xf0] }
  0x63   : > { %v850_v45 = vshll.u32 %v803_v35, 16  ;;  %v848_v52 = vshrl.u32 %v803_v35, 16  ;;  %v1278_v50 = vshrl.u32 %v1257_v30, 16  ;;  %v859_v57 = vrot.slane %v857_v48, 1  ;;  %v3698_v35 = vld [vmem:[%s4557_s20 + $0x70] sm:$0xf] }
  0x64   : > { %1595 = vmatpush.bf16.msra.mxu3 %v4312_v5  ;;  %1624 = vmatpush.bf16.msra.mxu0 %v4320_v7  ;;  %v836_v5 = vshll.u32 %v801_v56, 16  ;;  %v1395_v7 = vpack.c.b16 %v1245_v63, %v1243_v62  ;;  %v1276_v21 = vor.u32 %v1275_v13, %v1271_v12  ;;  %v1282_v51 = vrot.slane %v1280_v32, 1 }
  0x65   : > { %v852_v56 = vrot.slane %v850_v45, 1  ;;  %v1248_v62 = vunpack.c.l.b16 %v3625_v58 }
  0x66   : > { %v1283_v60 = vor.u32 %v1282_v51, %v1278_v50 }
  0x68   : > { %1596 = vmatpush.bf16.msra.mxu3 %v4311_v14  ;;  %1625 = vmatpush.bf16.msra.mxu0 %v4319_v15  ;;  %v838_v14 = vrot.slane %v836_v5, 1  ;;  %v845_v15 = vrot.slane %v843_v6, 1  ;;  %v1332_v2 = vunpack.c.l.b16 %v1283_v60  ;;  %v3628_v6 = vld [vmem:[%s4557_s20 + $0x38] sm:$0xf] }
  0x69   : > { %v1251_v12 = vunpack.c.l.b16 %v3628_v6  ;;  %v4346_v6 = vld [vmem:[%s5581_s5 + $0x38] sm:$0xff] }
  0x6a   : > { %v839_v26 = vor.u32 %v838_v14, %v834_v8  ;;  %v846_v27 = vor.u32 %v845_v15, %v841_v9  ;;  %v3695_v14 = vor.u32 %v4300_v11, %v3694_v10  ;;  %2209 = vmatpush.bf16.msra.mxu2 %v4346_v6  ;;  %v4331_v11 = vld [vmem:[%s5579_s3] sm:$0xff] }
  0x6b   : > { %1120 = vmatmul.bf16.gmra.mxu3 %v940_v28  ;;  %1149 = vmatmul.bf16.gmra.mxu0 %v3515_v29  ;;  %v1328_v28 = vunpack.c.l.b16 %v1269_v20  ;;  %v1330_v29 = vunpack.c.l.b16 %v1276_v21 }
  0x6c   : > { %v878_v39 = vunpack.c.l.b16 %v839_v26  ;;  %v880_v40 = vunpack.c.l.b16 %v846_v27 }
  0x6d   : > { %1168 = vmatmul.bf16.vlgmr.msrb.gmra.mxu1 %v936_v31  ;;  %1568 = vmatmul.bf16.vlgmr.msrb.gmra.mxu2 %v1392_v34  ;;  %v1258_v31 = vpack.c.b16 %v1246_v23, %v1245_v63  ;;  %v3626_v34 = vld [vmem:[%s4557_s20 + $0x30] sm:$0xf]  ;;  %v1394_v47 = vpack.c.b16 %v1330_v29, %v1328_v28  ;;  %v1250_v63 = vunpack.c.l.b16 %v3627_v59  ;;  %v1252_v28 = vunpack.c.l.b16 %v3629_v24 }
  0x6e   : > { %v1249_v44 = vunpack.c.l.b16 %v3626_v34  ;;  %v942_v38 = vpack.c.b16 %v880_v40, %v878_v39  ;;  %v1254_v29 = vunpack.c.l.b16 %v3631_v25  ;;  %v3699_v39 = vor.u32 %v4301_v37, %v3698_v35  ;;  %v3814_v25 = vld [vmem:[%s4557_s20 + $0xe8] sm:$0xf]  ;;  %v4354_v35 = vld [vmem:[%s5581_s5 + $0x78] sm:$0xff] }
  0x6f   : > { %v1287_v36 = vshll.u32 %v1258_v31, 16  ;;  %v1285_v54 = vshrl.u32 %v1258_v31, 16  ;;  %v1261_v33 = vpack.c.b16 %v1252_v28, %v1251_v12  ;;  %v4343_v28 = vld [vmem:[%s5581_s5 + $0x20] sm:$0xff]  ;;  %2238 = vmatpush.bf16.msrb.mxu3 %v4354_v35  ;;  %v4357_v35 = vld [vmem:[%s5581_s5 + $0x90] sm:$0xff] }
  0x70   : > { %v1398_v49 = vpack.c.b16 %v1249_v44, %v1247_v43  ;;  %v1260_v5 = vpack.c.b16 %v1250_v63, %v1249_v44  ;;  %v4335_v63 = vld [vmem:[%s5579_s3 + $0x20] sm:$0xff] }
  0x71   : > { %v1289_v55 = vrot.slane %v1287_v36, 1  ;;  %v1308_v41 = vshll.u32 %v1261_v33, 16  ;;  %v1306_v44 = vshrl.u32 %v1261_v33, 16 }
  0x72   : > { %v1301_v17 = vshll.u32 %v1260_v5, 16  ;;  %v1299_v22 = vshrl.u32 %v1260_v5, 16  ;;  %v4333_v5 = vld [vmem:[%s5579_s3 + $0x10] sm:$0xff] }
  0x73   : > { %v1290_v61 = vor.u32 %v1289_v55, %v1285_v54  ;;  %v3702_v55 = vld [vmem:[%s4557_s20 + $0x80] sm:$0xf] }
  0x74   : > { %v1303_v23 = vrot.slane %v1301_v17, 1 }
  0x75   : > { %v1334_v3 = vunpack.c.l.b16 %v1290_v61 }
  0x76   : > { %v1304_v27 = vor.u32 %v1303_v23, %v1299_v22 }
  0x77   : > { %v1397_v15 = vpack.c.b16 %v1334_v3, %v1332_v2 }
  0x78   : > { %v1338_v31 = vunpack.c.l.b16 %v1304_v27 }
  0x7b   : > { %1125 = vmatmul.bf16.gmra.mxu3 %v943_v0  ;;  %1154 = vmatmul.bf16.gmra.mxu0 %v3519_v1  ;;  %v853_v0 = vor.u32 %v852_v56, %v848_v52  ;;  %v860_v1 = vor.u32 %v859_v57, %v855_v53  ;;  %v4337_v53 = vld [vmem:[%s5579_s3 + $0x30] sm:$0xff]  ;;  %v4302_v56 = vld [vmem:[%s4557_s20 + $0x84] sm:$0xf0] }
  0x7c   : > { %v4336_v57 = vld [vmem:[%s5579_s3 + $0x28] sm:$0xff]  ;;  %v3703_v60 = vor.u32 %v4302_v56, %v3702_v55 }
  0x7d   : > { %1173 = vmatmul.bf16.gmra.mxu1 %v939_v4  ;;  %1573 = vmatmul.bf16.gmra.mxu2 %v1395_v7  ;;  %v1259_v4 = vpack.c.b16 %v1248_v62, %v1247_v43  ;;  %v3630_v7 = vld [vmem:[%s4557_s20 + $0x40] sm:$0xf]  ;;  %v882_v8 = vunpack.c.l.b16 %v853_v0  ;;  %v884_v9 = vunpack.c.l.b16 %v860_v1  ;;  %v4334_v1 = vld [vmem:[%s5579_s3 + $0x18] sm:$0xff]  ;;  %v4360_v56 = vld [vmem:[%s5581_s5 + $0xa8] sm:$0xff] }
  0x7e   : > { %v1253_v13 = vunpack.c.l.b16 %v3630_v7  ;;  %v4332_v7 = vld [vmem:[%s5579_s3 + $0x8] sm:$0xff] }
  0x7f   : > { %v1294_v16 = vshll.u32 %v1259_v4, 16  ;;  %v945_v18 = vpack.c.b16 %v884_v9, %v882_v8  ;;  %v1292_v20 = vshrl.u32 %v1259_v4, 16 }
  0x80   : > { %v1401_v19 = vpack.c.b16 %v1253_v13, %v1251_v12  ;;  %v1262_v34 = vpack.c.b16 %v1254_v29, %v1253_v13  ;;  %v3810_v13 = vld [vmem:[%s4557_s20 + $0xd8] sm:$0xf] }
  0x81   : > { %v1296_v21 = vrot.slane %v1294_v16, 1  ;;  %v4345_v16 = vld [vmem:[%s5581_s5 + $0x30] sm:$0xff] }
  0x82   : > { %v1315_v42 = vshll.u32 %v1262_v34, 16  ;;  %2210 = vmatpush.bf16.msra.mxu2 %v4345_v16 }
  0x83   : > { %v1297_v26 = vor.u32 %v1296_v21, %v1292_v20  ;;  %v4344_v21 = vld [vmem:[%s5581_s5 + $0x28] sm:$0xff] }
  0x84   : > { %v1317_v32 = vrot.slane %v1315_v42, 1  ;;  %v3818_v42 = vld [vmem:[%s4557_s20 + $0xf8] sm:$0xf] }
  0x85   : > { %v1336_v30 = vunpack.c.l.b16 %v1297_v26  ;;  %v4328_v26 = vld [vmem:[%s4557_s20 + $0xec] sm:$0xf0] }
  0x86   : > { %2211 = vmatpush.bf16.msra.mxu2 %v4344_v21  ;;  %v3815_v27 = vor.u32 %v4328_v26, %v3814_v25  ;;  %v4330_v21 = vld [vmem:[%s4557_s20 + $0x10c] sm:$0xf0]  ;;  %v4366_v26 = vld [vmem:[%s5581_s5 + $0xd8] sm:$0xff] }
  0x87   : > { %v1400_v40 = vpack.c.b16 %v1338_v31, %v1336_v30 }
  0x8a   : > { %2212 = vmatpush.bf16.msra.mxu2 %v4343_v28  ;;  %v4339_v28 = vld [vmem:[%s5581_s5] sm:$0xff] }
  0x8b   : > { %1597 = vmatmul.bf16.vlgmr.msra.gmra.mxu3 %v3691_v46  ;;  %1626 = vmatmul.bf16.vlgmr.msra.gmra.mxu0 %v1394_v47  ;;  %v1310_v46 = vrot.slane %v1308_v41, 1  ;;  %v1313_v47 = vshrl.u32 %v1262_v34, 16  ;;  %v4342_v34 = vld [vmem:[%s5581_s5 + $0x18] sm:$0xff] }
  0x8c   : > { %v4362_v41 = vld [vmem:[%s5581_s5 + $0xb8] sm:$0xff] }
  0x8d   : > { %1178 = vmatmul.bf16.gmra.mxu1 %v942_v38  ;;  %1578 = vmatmul.bf16.gmra.mxu2 %v1398_v49  ;;  %v4338_v38 = vld [vmem:[%s5579_s3 + $0x38] sm:$0xff]  ;;  %v1311_v48 = vor.u32 %v1310_v46, %v1306_v44  ;;  %v1318_v49 = vor.u32 %v1317_v32, %v1313_v47  ;;  %v4329_v44 = vld [vmem:[%s4557_s20 + $0xfc] sm:$0xf0]  ;;  %v4341_v47 = vld [vmem:[%s5581_s5 + $0x10] sm:$0xff] }
  0x8e   : > { %1792 = vmatpush.bf16.msra.mxu1 %v4338_v38  ;;  %2213 = vmatpush.bf16.msra.mxu2 %v4342_v34  ;;  %v3819_v46 = vor.u32 %v4329_v44, %v3818_v42  ;;  %v4353_v32 = vld [vmem:[%s5581_s5 + $0x70] sm:$0xff]  ;;  %v4370_v38 = vld [vmem:[%s5581_s5 + $0xf8] sm:$0xff] }
  0x8f   : > { %v1340_v51 = vunpack.c.l.b16 %v1311_v48  ;;  %v1342_v54 = vunpack.c.l.b16 %v1318_v49  ;;  %2267 = vmatpush.bf16.msrb.mxu0 %v4362_v41  ;;  %2239 = vmatpush.bf16.msrb.mxu3 %v4353_v32  ;;  %v4350_v34 = vld [vmem:[%s5581_s5 + $0x58] sm:$0xff]  ;;  %v4365_v44 = vld [vmem:[%s5581_s5 + $0xd0] sm:$0xff]  ;;  %v4364_v32 = vld [vmem:[%s5581_s5 + $0xc8] sm:$0xff] }
  0x91   : > { %v1403_v61 = vpack.c.b16 %v1342_v54, %v1340_v51  ;;  %v4369_v54 = vld [vmem:[%s5581_s5 + $0xf0] sm:$0xff] }
  0x92   : > { %1793 = vmatpush.bf16.msra.mxu1 %v4337_v53  ;;  %2214 = vmatpush.bf16.msra.mxu2 %v4341_v47  ;;  %v4361_v53 = vld [vmem:[%s5581_s5 + $0xb0] sm:$0xff]  ;;  %v4356_v47 = vld [vmem:[%s5581_s5 + $0x88] sm:$0xff] }
  0x93   : > { %2268 = vmatpush.bf16.msrb.mxu0 %v4361_v53 }
  0x96   : > { %1794 = vmatpush.bf16.msra.mxu1 %v4336_v57  ;;  %v4368_v57 = vld [vmem:[%s5581_s5 + $0xe8] sm:$0xff] }
  0x97   : > { %2269 = vmatpush.bf16.msrb.mxu0 %v4360_v56  ;;  %v4378_v56 = vld [vmem:[%s5581_s5 + $0x138] sm:$0xff] }
  0x9a   : > { %1795 = vmatpush.bf16.msra.mxu1 %v4335_v63  ;;  %v4340_v63 = vld [vmem:[%s5581_s5 + $0x8] sm:$0xff] }
  0x9b   : > { %1602 = vmatmul.bf16.gmra.mxu3 %v3695_v14  ;;  %1631 = vmatmul.bf16.gmra.mxu0 %v1397_v15  ;;  %v4327_v14 = vld [vmem:[%s4557_s20 + $0xdc] sm:$0xf0] }
  0x9c   : > { %v3811_v15 = vor.u32 %v4327_v14, %v3810_v13  ;;  %2215 = vmatpush.bf16.msra.mxu2 %v4340_v63  ;;  %v4351_v13 = vld [vmem:[%s5581_s5 + $0x60] sm:$0xff]  ;;  %v4358_v14 = vld [vmem:[%s5581_s5 + $0x98] sm:$0xff] }
  0x9d   : > { %1183 = vmatmul.bf16.gmra.mxu1 %v945_v18  ;;  %1583 = vmatmul.bf16.gmra.mxu2 %v1401_v19  ;;  %v4355_v63 = vld [vmem:[%s5581_s5 + $0x80] sm:$0xff] }
  0x9e   : > { %1796 = vmatpush.bf16.msra.mxu1 %v4334_v1  ;;  %v4352_v1 = vld [vmem:[%s5581_s5 + $0x68] sm:$0xff] }
  0x9f   : > { %2240 = vmatpush.bf16.msrb.mxu3 %v4352_v1 }
  0xa0   : > { %2216 = vmatpush.bf16.msra.mxu2 %v4339_v28  ;;  %v4377_v28 = vld [vmem:[%s5581_s5 + $0x130] sm:$0xff] }
  0xa2   : > { %1797 = vmatpush.bf16.msra.mxu1 %v4333_v5  ;;  %v4359_v5 = vld [vmem:[%s5581_s5 + $0xa0] sm:$0xff] }
  0xa3   : > { %2270 = vmatpush.bf16.msrb.mxu0 %v4359_v5  ;;  %2241 = vmatpush.bf16.msrb.mxu3 %v4351_v13  ;;  %v5123_v5 = vld [vmem:[%s5578_s2] ss:$0 sm:$0xff] }
  0xa4   : > { %2702 = vmatpush.bf16.msrb.mxu2 %v4378_v56 }
  0xa6   : > { %1798 = vmatpush.bf16.msra.mxu1 %v4332_v7 }
  0xa7   : > { %2271 = vmatpush.bf16.msrb.mxu0 %v4358_v14  ;;  %2242 = vmatpush.bf16.msrb.mxu3 %v4350_v34 }
  0xa8   : > { %v4889_v43 = vpop.f32.mrf.mxu0  ;;  %2703 = vmatpush.bf16.msrb.mxu2 %v4377_v28 }
  0xaa   : > { %v4891_v36 = vpop.f32.mrf.mxu1  ;;  %1799 = vmatpush.bf16.msra.mxu1 %v4331_v11  ;;  %v4367_v11 = vld [vmem:[%s5581_s5 + $0xe0] sm:$0xff] }
  0xab   : > { %1607 = vmatmul.bf16.gmra.mxu3 %v3699_v39  ;;  %1636 = vmatmul.bf16.gmra.mxu0 %v1400_v40 }
  0xac   : > { %2272 = vmatpush.bf16.msrb.mxu0 %v4357_v35 }
  0xad   : > { %1800 = vmatmul.bf16.vlgmr.msra.gmra.mxu1 %v3811_v15  ;;  %v3822_v15 = vld [vmem:[%s4557_s20 + $0x108] sm:$0xf] }
  0xae   : > { %v4896_v45 = vpop.f32.mrf.mxu3  ;;  %2673 = vmatpush.bf16.msrb.mxu1 %v4370_v38  ;;  %v3823_v25 = vor.u32 %v4330_v21, %v3822_v15 }
  0xb0   : > { %v4898_v52 = vpop.f32.mrf.mxu0  ;;  %v4903_v50 = vpop.f32.mrf.mxu2  ;;  %2273 = vmatpush.bf16.msrb.mxu0 %v4356_v47 }
  0xb2   : > { %v4910_v58 = vpop.f32.mrf.mxu1  ;;  %2674 = vmatpush.bf16.msrb.mxu1 %v4369_v54  ;;  %v683_v54 = vadd.f32 %v4891_v36, %v4889_v43  ;;  %v4363_v43 = vld [vmem:[%s5581_s5 + $0xc0] sm:$0xff] }
  0xb4   : > { %2274 = vmatpush.bf16.msrb.mxu0 %v4355_v63  ;;  %v4481_v63 = vmov 0.0|0.0  }
  0xb6   : > { %v4912_v59 = vpop.f32.mrf.mxu3  ;;  %2675 = vmatpush.bf16.msrb.mxu1 %v4368_v57  ;;  %v4348_v57 = vld [vmem:[%s5581_s5 + $0x48] sm:$0xff] }
  0xb8   : > { %v4914_v62 = vpop.f32.mrf.mxu0  ;;  %v4919_v0 = vpop.f32.mrf.mxu2 }
  0xba   : > { %v4926_v3 = vpop.f32.mrf.mxu1  ;;  %2676 = vmatpush.bf16.msrb.mxu1 %v4367_v11  ;;  %v712_v11 = vadd.f32 %v4903_v50, %v683_v54 }
  0xbb   : > { %1612 = vmatmul.bf16.gmra.mxu3 %v3703_v60  ;;  %1641 = vmatmul.bf16.gmra.mxu0 %v1403_v61  ;;  %v4480_v61 = vmov 0.0   ;;  %v688_v56 = vadd.f32 %v4926_v3, %v4914_v62 }
  0xbc   : > { %1665 = vst [vmem:[#allocation2 + $0x10] sm:$0xff] %v4480_v61  ;;  %v731_v21 = vadd.f32 %v5123_v5, %v712_v11 }
  0xbd   : > { %1805 = vmatmul.bf16.gmra.mxu1 %v3815_v27  ;;  %1666 = vst [vmem:[#allocation2 + $0x18] sm:$0x3] %v4480_v61 }
  0xbe   : > { %v4924_v2 = vpop.f32.mrf.mxu3  ;;  %1663 = vst [vmem:[#allocation2] sm:$0xff] %v4480_v61  ;;  %2677 = vmatpush.bf16.msrb.mxu1 %v4366_v26 }
  0xbf   : > { %1664 = vst [vmem:[#allocation2 + $0x8] sm:$0x3] %v4480_v61 }
  0xc0   : > { %v4928_v4 = vpop.f32.mrf.mxu0  ;;  %v4939_v8 = vpop.f32.mrf.mxu2  ;;  %1667 = vst [vmem:[#allocation2 + $0x20] sm:$0xff] %v4480_v61 }
  0xc1   : > { %1668 = vst [vmem:[#allocation2 + $0x28] sm:$0x3] %v4480_v61 }
  0xc2   : > { %v4948_v12 = vpop.f32.mrf.mxu1  ;;  %1669 = vst [vmem:[#allocation2 + $0x30] sm:$0xff] %v4480_v61  ;;  %2678 = vmatpush.bf16.msrb.mxu1 %v4365_v44 }
  0xc3   : > { %1670 = vst [vmem:[#allocation2 + $0x38] sm:$0x3] %v4480_v61 }
  0xc4   : > { %1671 = vst [vmem:[#allocation2 + $0x40] sm:$0xff] %v4480_v61 }
  0xc5   : > { %1672 = vst [vmem:[#allocation2 + $0x48] sm:$0x3] %v4480_v61 }
  0xc6   : > { %v4941_v9 = vpop.f32.mrf.mxu3  ;;  %1673 = vst [vmem:[#allocation2 + $0x50] sm:$0xff] %v4480_v61  ;;  %2679 = vmatpush.bf16.msrb.mxu1 %v4364_v32  ;;  %v1842_v26 = vld [vmem:[#allocation2 + $0x8] sm:$0x3] }
  0xc7   : > { %1674 = vst [vmem:[#allocation2 + $0x58] sm:$0x3] %v4480_v61  ;;  %v1858_v44 = vpack.c.bf16 %v1842_v26, %v1842_v26 }
  0xc8   : > { %v4943_v10 = vpop.f32.mrf.mxu0  ;;  %v4957_v18 = vpop.f32.mrf.mxu2  ;;  %1675 = vst [vmem:[#allocation2 + $0x60] sm:$0xff] %v4480_v61 }
  0xc9   : > { %1676 = vst [vmem:[#allocation2 + $0x68] sm:$0x3] %v4480_v61 }
  0xca   : > { %v4961_v20 = vpop.f32.mrf.mxu1  ;;  %1677 = vst [vmem:[#allocation2 + $0x70] sm:$0xff] %v4480_v61  ;;  %2680 = vmatpush.bf16.msrb.mxu1 %v4363_v43  ;;  %v1889_v43 = vunpack.c.l.b16 %v4481_v63 }
  0xcb   : > { %1678 = vst [vmem:[#allocation2 + $0x78] sm:$0x3] %v4480_v61 }
  0xcc   : > { %1679 = vst [vmem:[#allocation2 + $0x80] sm:$0xff] %v4480_v61 }
  0xcd   : > { %1810 = vmatmul.bf16.gmra.mxu1 %v3819_v46  ;;  %v4349_v46 = vld [vmem:[%s5581_s5 + $0x50] sm:$0xff]  ;;  %1680 = vst [vmem:[#allocation2 + $0x88] sm:$0x3] %v4480_v61 }
  0xce   : > { %v4955_v17 = vpop.f32.mrf.mxu3  ;;  %2243 = vmatpush.bf16.msrb.mxu3 %v4349_v46  ;;  %1682 = vst [vmem:[#allocation2 + $0x98] sm:$0x3] %v4480_v61  ;;  %v4347_v61 = vld [vmem:[%s5581_s5 + $0x40] sm:$0xff] }
  0xcf   : > { %v1141_v13 = vadd.f32 %v4943_v10, %v4955_v17  ;;  %v685_v10 = vadd.f32 %v4910_v58, %v4898_v52  ;;  %v1890_v52 = vunpack.c.l.b16 %v1858_v44 }
  0xd0   : > { %v4959_v19 = vpop.f32.mrf.mxu0  ;;  %v4970_v24 = vpop.f32.mrf.mxu2 }
  0xd2   : > { %v4977_v29 = vpop.f32.mrf.mxu1  ;;  %2244 = vmatpush.bf16.msrb.mxu3 %v4348_v57 }
  0xd6   : > { %v4966_v22 = vpop.f32.mrf.mxu3  ;;  %2245 = vmatpush.bf16.msrb.mxu3 %v4347_v61 }
  0xd7   : > { %v1143_v46 = vadd.f32 %v4959_v19, %v4966_v22 }
  0xd8   : > { %v4968_v23 = vpop.f32.mrf.mxu0  ;;  %v4983_v33 = vpop.f32.mrf.mxu2 }
  0xda   : > { %v4993_v39 = vpop.f32.mrf.mxu1 }
  0xdd   : > { %1815 = vmatmul.bf16.gmra.mxu1 %v3823_v25 }
  0xde   : > { %v4979_v30 = vpop.f32.mrf.mxu3 }
  0xdf   : > { %v1146_v62 = vadd.f32 %v4968_v23, %v4979_v30  ;;  %v690_v23 = vadd.f32 %v4948_v12, %v4928_v4 }
  0xe0   : > { %v4981_v31 = vpop.f32.mrf.mxu0  ;;  %v5011_v48 = vpop.f32.mrf.mxu2 }
  0xe2   : > { %v5023_v55 = vpop.f32.mrf.mxu1 }
  0xe6   : > { %v4991_v37 = vpop.f32.mrf.mxu3 }
  0xe8   : > { %v4995_v40 = vpop.f32.mrf.mxu0  ;;  %v5044_v6 = vpop.f32.mrf.mxu2 }
  0xea   : > { %v1169_v16 = vpop.f32.mrf.mxu1 }
  0xeb   : > { %v1170_v14 = vadd.f32 %v1169_v16, %v1141_v13  ;;  %v714_v16 = vadd.f32 %v4919_v0, %v685_v10  ;;  %v4376_v0 = vld [vmem:[%s5581_s5 + $0x128] sm:$0xff]  ;;  %v1905_v13 = vpack.c.b16 %v1890_v52, %v1889_v43 }
  0xec   : > { %2704 = vmatpush.bf16.msrb.mxu2 %v4376_v0 }
  0xed   : > { %v1189_v17 = vadd.f32 %v1170_v14, %v731_v21  ;;  %v732_v58 = vadd.f32 %v5123_v5, %v714_v16  ;;  %v1916_v10 = vshll.u32 %v1905_v13, 16 }
  0xee   : > { %v5013_v49 = vpop.f32.mrf.mxu3 }
  0xf0   : > { %v5018_v51 = vpop.f32.mrf.mxu0  ;;  %v1569_v42 = vpop.f32.mrf.mxu2 }
  0xf2   : > { %v1171_v38 = vpop.f32.mrf.mxu1 }
  0xf3   : > { %v1172_v32 = vadd.f32 %v1171_v38, %v1143_v46  ;;  %v717_v38 = vadd.f32 %v4939_v8, %v688_v56  ;;  %v4375_v8 = vld [vmem:[%s5581_s5 + $0x120] sm:$0xff]  ;;  %v719_v56 = vadd.f32 %v4957_v18, %v690_v23 }
  0xf4   : > { %2705 = vmatpush.bf16.msrb.mxu2 %v4375_v8 }
  0xf5   : > { %v1190_v22 = vadd.f32 %v1172_v32, %v732_v58  ;;  %v1914_v32 = vshrl.u32 %v1905_v13, 16 }
  0xf6   : > { %v5031_v60 = vpop.f32.mrf.mxu3 }
  0xf8   : > { %v5046_v7 = vpop.f32.mrf.mxu0  ;;  %v1571_v36 = vpop.f32.mrf.mxu2 }
  0xfa   : > { %v1174_v50 = vpop.f32.mrf.mxu1 }
  0xfb   : > { %v1175_v14 = vadd.f32 %v1174_v50, %v1146_v62 }
  0xfe   : > { %v5068_v27 = vpop.f32.mrf.mxu3 }
 0x100   : > { %v5081_v41 = vpop.f32.mrf.mxu0  ;;  %v1574_v47 = vpop.f32.mrf.mxu2 }
 0x102   : > { %v1176_v3 = vpop.f32.mrf.mxu1 }
 0x106   : > { %v5101_v53 = vpop.f32.mrf.mxu3 }
 0x108   : > { %v1627_v1 = vpop.f32.mrf.mxu0  ;;  %v1576_v21 = vpop.f32.mrf.mxu2 }
 0x10a   : > { %v1179_v52 = vpop.f32.mrf.mxu1 }
 0x10e   : > { %v1598_v15 = vpop.f32.mrf.mxu3 }
 0x10f   : > { %v1599_v25 = vadd.f32 %v1598_v15, %v1569_v42 }
 0x110   : > { %v1629_v34 = vpop.f32.mrf.mxu0 }
 0x111   : > { %v1628_v35 = vadd.f32 %v1627_v1, %v1599_v25 }
 0x113   : > { %v1647_v42 = vadd.f32 %v1628_v35, %v1189_v17 }
 0x115   : > { %v1655_v54 = vmax.f32 %v1647_v42, 0.0  ;;  %v1969_v42 = vrot.slane %v1905_v13, 1 }
 0x116   : > { %v1600_v57 = vpop.f32.mrf.mxu3 }
 0x117   : > { %1684 = vst [vmem:[#allocation2 + $0x11] sm:$0xff] %v1655_v54  ;;  %v1601_v1 = vadd.f32 %v1600_v57, %v1571_v36  ;;  %v733_v36 = vadd.f32 %v5123_v5, %v717_v38  ;;  %v1918_v54 = vrot.slane %v1916_v10, 1  ;;  %v1978_v0 = vunpack.c.l.b16 %v1969_v42 }
 0x118   : > { %v1632_v19 = vpop.f32.mrf.mxu0 }
 0x119   : > { %v1630_v11 = vadd.f32 %v1629_v34, %v1601_v1  ;;  %v1191_v30 = vadd.f32 %v1175_v14, %v733_v36  ;;  %v1919_v38 = vor.u32 %v1918_v54, %v1914_v32  ;;  %v1579_v14 = vpop.f32.mrf.mxu2 }
 0x11b   : > { %v1648_v61 = vadd.f32 %v1630_v11, %v1190_v22 }
 0x11d   : > { %v1656_v15 = vmax.f32 %v1648_v61, 0.0  ;;  %v693_v61 = vadd.f32 %v4961_v20, %v4896_v45  ;;  %v1151_v45 = vadd.f32 %v4995_v40, %v5013_v49 }
 0x11e   : > { %v1603_v25 = vpop.f32.mrf.mxu3  ;;  %v1843_v26 = vld [vmem:[#allocation2 + $0x10] sm:$0xff]  ;;  %v1844_v28 = vld [vmem:[#allocation2 + $0x18] sm:$0x3] }
 0x11f   : > { %1685 = vst [vmem:[#allocation2 + $0x21] sm:$0xff] %v1656_v15  ;;  %v1604_v34 = vadd.f32 %v1603_v25, %v1574_v47  ;;  %v1859_v17 = vpack.c.bf16 %v1843_v26, %v1843_v26  ;;  %v1860_v35 = vpack.c.bf16 %v1844_v28, %v1844_v28  ;;  %v1148_v47 = vadd.f32 %v4981_v31, %v4991_v37 }
 0x120   : > { %v1634_v50 = vpop.f32.mrf.mxu0  ;;  %v734_v37 = vadd.f32 %v5123_v5, %v719_v56  ;;  %v722_v23 = vadd.f32 %v4970_v24, %v693_v61  ;;  %v1181_v24 = vpop.f32.mrf.mxu1 }
 0x121   : > { %v1633_v44 = vadd.f32 %v1632_v19, %v1604_v34  ;;  %v5155_v16 = vunpack.c.l.b16 %v1859_v17  ;;  %v1892_v46 = vunpack.c.l.b16 %v1860_v35  ;;  %v1177_v12 = vadd.f32 %v1176_v3, %v1148_v47  ;;  %v4386_v3 = vld [vmem:[%s5581_s5 + $0x178] sm:$0xff] }
 0x122   : > { %2731 = vmatpush.bf16.msra.mxu3 %v4386_v3  ;;  %v1977_v35 = vunpack.c.l.b16 %v1919_v38  ;;  %v4394_v47 = vld [vmem:[%s5581_s5 + $0x1b8] sm:$0xff]  ;;  %v735_v56 = vadd.f32 %v5123_v5, %v722_v23 }
 0x123   : > { %v1649_v57 = vadd.f32 %v1633_v44, %v1191_v30  ;;  %v1906_v63 = vpack.c.b16 %v1892_v46, %v5155_v16  ;;  %v2041_v4 = vpack.c.b16 %v5155_v16, %v1889_v43  ;;  %v4374_v43 = vld [vmem:[%s5581_s5 + $0x118] sm:$0xff]  ;;  %v1192_v26 = vadd.f32 %v1177_v12, %v734_v37  ;;  %v4373_v12 = vld [vmem:[%s5581_s5 + $0x110] sm:$0xff]  ;;  %3138 = vmatpush.bf16.msra.mxu0 %v4394_v47 }
 0x124   : > { %2706 = vmatpush.bf16.msrb.mxu2 %v4374_v43  ;;  %v1180_v46 = vadd.f32 %v1179_v52, %v1151_v45  ;;  %v4385_v52 = vld [vmem:[%s5581_s5 + $0x170] sm:$0xff] }
 0x125   : > { %v1657_v58 = vmax.f32 %v1649_v57, 0.0  ;;  %2217 = vmatmul.bf16.vlgmr.msra.gmra.mxu2 %v2041_v4  ;;  %v1970_v1 = vrot.slane %v1906_v63, 1  ;;  %v1923_v19 = vshll.u32 %v1906_v63, 16  ;;  %v1921_v15 = vshrl.u32 %v1906_v63, 16 }
 0x126   : > { %v1605_v22 = vpop.f32.mrf.mxu3  ;;  %v2306_v11 = vld [vmem:[#allocation2 + $0x20] sm:$0xff]  ;;  %v1846_v31 = vld [vmem:[#allocation2 + $0x28] sm:$0x3]  ;;  %2732 = vmatpush.bf16.msra.mxu3 %v4385_v52 }
 0x127   : > { %1686 = vst [vmem:[#allocation2 + $0x31] sm:$0xff] %v1657_v58  ;;  %v1606_v18 = vadd.f32 %v1605_v22, %v1576_v21  ;;  %v1980_v62 = vunpack.c.l.b16 %v1970_v1  ;;  %v2322_v13 = vpack.c.bf16 %v2306_v11, %v2306_v11  ;;  %v1925_v36 = vrot.slane %v1923_v19, 1  ;;  %v5194_v58 = vld [vmem:[%s5581_s5 + $0x1f8] sm:$0xff]  ;;  %v4393_v19 = vld [vmem:[%s5581_s5 + $0x1b0] sm:$0xff] }
 0x128   : > { %v1862_v25 = vpack.c.bf16 %v1846_v31, %v1846_v31  ;;  %v1637_v34 = vpop.f32.mrf.mxu0  ;;  %v695_v1 = vadd.f32 %v4977_v29, %v4912_v59  ;;  %v1193_v22 = vadd.f32 %v1180_v46, %v735_v56  ;;  %2707 = vmatpush.bf16.msrb.mxu2 %v4373_v12  ;;  %v1153_v59 = vadd.f32 %v5018_v51, %v5031_v60  ;;  %v1581_v29 = vpop.f32.mrf.mxu2  ;;  %v4392_v51 = vld [vmem:[%s5581_s5 + $0x1a8] sm:$0xff] }
 0x129   : > { %v1635_v28 = vadd.f32 %v1634_v50, %v1606_v18  ;;  %v2043_v21 = vpack.c.b16 %v1980_v62, %v1978_v0  ;;  %v5171_v10 = vunpack.c.l.b16 %v2322_v13  ;;  %v1926_v17 = vor.u32 %v1925_v36, %v1921_v15  ;;  %4442 = vmatpush.bf16.msra.mxu1 %v5194_v58  ;;  %v5211_v18 = vld [vmem:[%s5581_s5 + $0x1f0] sm:$0xff]  ;;  %3139 = vmatpush.bf16.msra.mxu0 %v4393_v19  ;;  %v1184_v46 = vpop.f32.mrf.mxu1 }
 0x12a   : > { %v1894_v8 = vunpack.c.l.b16 %v1862_v25  ;;  %v724_v37 = vadd.f32 %v4983_v33, %v695_v1  ;;  %v1182_v60 = vadd.f32 %v1181_v24, %v1153_v59  ;;  %v4372_v25 = vld [vmem:[%s5581_s5 + $0x108] sm:$0xff]  ;;  %v4383_v1 = vld [vmem:[%s5581_s5 + $0x160] sm:$0xff] }
 0x12b   : > { %v1650_v20 = vadd.f32 %v1635_v28, %v1192_v26  ;;  %2275 = vmatmul.bf16.vlgmr.msrb.gmra.mxu0 %v2043_v21  ;;  %v2505_v30 = vpack.c.b16 %v5171_v10, %v5155_v16  ;;  %v1979_v50 = vunpack.c.l.b16 %v1926_v17  ;;  %v4384_v26 = vld [vmem:[%s5581_s5 + $0x168] sm:$0xff]  ;;  %v698_v21 = vadd.f32 %v4993_v39, %v4924_v2 }
 0x12c   : > { %v5179_v44 = vpack.c.b16 %v1894_v8, %v5171_v10  ;;  %v736_v28 = vadd.f32 %v5123_v5, %v724_v37  ;;  %2708 = vmatpush.bf16.msrb.mxu2 %v4372_v25  ;;  %2733 = vmatpush.bf16.msra.mxu3 %v4384_v26  ;;  %v4389_v25 = vld [vmem:[%s5581_s5 + $0x190] sm:$0xff] }
 0x12d   : > { %v1658_v42 = vmax.f32 %v1650_v20, 0.0  ;;  %2681 = vmatmul.bf16.vlgmr.msrb.gmra.mxu1 %v2505_v30  ;;  %v2042_v54 = vpack.c.b16 %v1979_v50, %v1977_v35  ;;  %v5237_v50 = vld [vmem:[%s5581_s5 + $0x1e8] sm:$0xff]  ;;  %3140 = vmatpush.bf16.msra.mxu0 %v4392_v51 }
 0x12e   : > { %v1608_v32 = vpop.f32.mrf.mxu3  ;;  %v1847_v40 = vld [vmem:[#allocation2 + $0x30] sm:$0xff]  ;;  %v1848_v49 = vld [vmem:[#allocation2 + $0x38] sm:$0x3]  ;;  %v1930_v0 = vshll.u32 %v5179_v44, 16  ;;  %v1971_v33 = vrot.slane %v5179_v44, 1  ;;  %v1928_v35 = vshrl.u32 %v5179_v44, 16  ;;  %4443 = vmatpush.bf16.msra.mxu1 %v5211_v18  ;;  %v1194_v24 = vadd.f32 %v1182_v60, %v736_v28 }
 0x12f   : > { %1687 = vst [vmem:[#allocation2 + $0x41] sm:$0xff] %v1658_v42  ;;  %v1609_v57 = vadd.f32 %v1608_v32, %v1579_v14  ;;  %v1863_v63 = vpack.c.bf16 %v1847_v40, %v1847_v40  ;;  %v1864_v4 = vpack.c.bf16 %v1848_v49, %v1848_v49  ;;  %2246 = vmatmul.bf16.vlgmr.msrb.gmra.mxu3 %v2042_v54  ;;  %v4391_v44 = vld [vmem:[%s5581_s5 + $0x1a0] sm:$0xff] }
 0x130   : > { %v1639_v3 = vpop.f32.mrf.mxu0  ;;  %v1932_v61 = vrot.slane %v1930_v0, 1  ;;  %v1982_v45 = vunpack.c.l.b16 %v1971_v33  ;;  %v1584_v0 = vpop.f32.mrf.mxu2  ;;  %2734 = vmatpush.bf16.msra.mxu3 %v4383_v1  ;;  %v5271_v33 = vld [vmem:[%s5581_s5 + $0x1d8] sm:$0xff] }
 0x131   : > { %v1638_v11 = vadd.f32 %v1637_v34, %v1609_v57  ;;  %v5202_v38 = vunpack.c.l.b16 %v1863_v63  ;;  %v1896_v31 = vunpack.c.l.b16 %v1864_v4  ;;  %v5248_v57 = vld [vmem:[%s5581_s5 + $0x1e0] sm:$0xff]  ;;  %v727_v63 = vadd.f32 %v5011_v48, %v698_v21  ;;  %3141 = vmatpush.bf16.msra.mxu0 %v4391_v44  ;;  %v4390_v48 = vld [vmem:[%s5581_s5 + $0x198] sm:$0xff] }
 0x132   : > { %v1933_v2 = vor.u32 %v1932_v61, %v1928_v35  ;;  %4444 = vmatpush.bf16.msra.mxu1 %v5237_v50  ;;  %v1156_v4 = vadd.f32 %v5046_v7, %v5068_v27  ;;  %v5292_v35 = vld [vmem:[%s5581_s5 + $0x1d0] sm:$0xff]  ;;  %v5310_v44 = vld [vmem:[%s5581_s5 + $0x238] sm:$0xff] }
 0x133   : > { %v1651_v62 = vadd.f32 %v1638_v11, %v1193_v22  ;;  %v1908_v13 = vpack.c.b16 %v1896_v31, %v5202_v38  ;;  %v5216_v43 = vpack.c.b16 %v5202_v38, %v5171_v10  ;;  %v4371_v31 = vld [vmem:[%s5581_s5 + $0x100] sm:$0xff] }
 0x134   : > { %v1981_v19 = vunpack.c.l.b16 %v1933_v2  ;;  %v1185_v7 = vadd.f32 %v1184_v46, %v1156_v4  ;;  %2709 = vmatpush.bf16.msrb.mxu2 %v4371_v31  ;;  %v4388_v46 = vld [vmem:[%s5581_s5 + $0x188] sm:$0xff] }
 0x135   : > { %v1659_v14 = vmax.f32 %v1651_v62, 0.0  ;;  %2222 = vmatmul.bf16.gmra.mxu2 %v5216_v43  ;;  %v1972_v15 = vrot.slane %v1908_v13, 1  ;;  %v1937_v36 = vshll.u32 %v1908_v13, 16  ;;  %v1935_v39 = vshrl.u32 %v1908_v13, 16  ;;  %3142 = vmatpush.bf16.msra.mxu0 %v4390_v48 }
 0x136   : > { %v1610_v34 = vpop.f32.mrf.mxu3  ;;  %v2310_v17 = vld [vmem:[#allocation2 + $0x40] sm:$0xff]  ;;  %v1850_v8 = vld [vmem:[#allocation2 + $0x48] sm:$0x3]  ;;  %4445 = vmatpush.bf16.msra.mxu1 %v5248_v57 }
 0x137   : > { %1688 = vst [vmem:[#allocation2 + $0x51] sm:$0xff] %v1659_v14  ;;  %v1611_v23 = vadd.f32 %v1610_v34, %v1581_v29  ;;  %v1984_v20 = vunpack.c.l.b16 %v1972_v15  ;;  %v2326_v30 = vpack.c.bf16 %v2310_v17, %v2310_v17  ;;  %v1939_v42 = vrot.slane %v1937_v36, 1  ;;  %v4382_v36 = vld [vmem:[%s5581_s5 + $0x158] sm:$0xff]  ;;  %v1186_v17 = vpop.f32.mrf.mxu1 }
 0x138   : > { %v1866_v47 = vpack.c.bf16 %v1850_v8, %v1850_v8  ;;  %v1642_v37 = vpop.f32.mrf.mxu0  ;;  %v700_v14 = vadd.f32 %v5023_v55, %v4941_v9  ;;  %v1158_v55 = vadd.f32 %v5081_v41, %v5101_v53  ;;  %2735 = vmatpush.bf16.msra.mxu3 %v4382_v36  ;;  %v4381_v8 = vld [vmem:[%s5581_s5 + $0x150] sm:$0xff]  ;;  %3196 = vmatpush.bf16.msra.mxu2 %v5310_v44 }
 0x139   : > { %v1640_v32 = vadd.f32 %v1639_v3, %v1611_v23  ;;  %v2046_v54 = vpack.c.b16 %v1984_v20, %v1982_v45  ;;  %v5242_v40 = vunpack.c.l.b16 %v2326_v30  ;;  %v1940_v49 = vor.u32 %v1939_v42, %v1935_v39  ;;  %v2305_v23 = vld [vmem:[#allocation2 + $0x18] sm:$0x3]  ;;  %v2307_v45 = vld [vmem:[#allocation2 + $0x28] sm:$0x3]  ;;  %3143 = vmatpush.bf16.msra.mxu0 %v4389_v25  ;;  %v4379_v25 = vld [vmem:[%s5581_s5 + $0x140] sm:$0xff] }
 0x13a   : > { %v1898_v56 = vunpack.c.l.b16 %v1866_v47  ;;  %v737_v3 = vadd.f32 %v5123_v5, %v727_v63  ;;  %v729_v9 = vadd.f32 %v5044_v6, %v700_v14  ;;  %4446 = vmatpush.bf16.msra.mxu1 %v5271_v33  ;;  %v1187_v2 = vadd.f32 %v1186_v17, %v1158_v55  ;;  %v2309_v17 = vld [vmem:[#allocation2 + $0x38] sm:$0x3] }
 0x13b   : > { %v1652_v12 = vadd.f32 %v1640_v32, %v1194_v24  ;;  %2280 = vmatmul.bf16.gmra.mxu0 %v2046_v54  ;;  %v2508_v52 = vpack.c.b16 %v5242_v40, %v5202_v38  ;;  %v1983_v22 = vunpack.c.l.b16 %v1940_v49  ;;  %v2321_v32 = vpack.c.bf16 %v2305_v23, %v2305_v23  ;;  %v1586_v49 = vpop.f32.mrf.mxu2 }
 0x13c   : > { %v5259_v11 = vpack.c.b16 %v1898_v56, %v5242_v40  ;;  %v1195_v26 = vadd.f32 %v1185_v7, %v737_v3  ;;  %v738_v24 = vadd.f32 %v5123_v5, %v729_v9  ;;  %v2323_v54 = vpack.c.bf16 %v2307_v45, %v2307_v45  ;;  %2736 = vmatpush.bf16.msra.mxu3 %v4381_v8  ;;  %v4409_v45 = vld [vmem:[%s5581_s5 + $0x230] sm:$0xff] }
 0x13d   : > { %v1660_v27 = vmax.f32 %v1652_v12, 0.0  ;;  %2686 = vmatmul.bf16.gmra.mxu1 %v2508_v52  ;;  %v2045_v29 = vpack.c.b16 %v1983_v22, %v1981_v19  ;;  %v5318_v52 = vld [vmem:[%s5581_s5 + $0x1c8] sm:$0xff]  ;;  %3144 = vmatpush.bf16.msra.mxu0 %v4388_v46 }
 0x13e   : > { %v1613_v59 = vpop.f32.mrf.mxu3  ;;  %v1851_v62 = vld [vmem:[#allocation2 + $0x50] sm:$0xff]  ;;  %v1852_v13 = vld [vmem:[#allocation2 + $0x58] sm:$0x3]  ;;  %v1944_v15 = vshll.u32 %v5259_v11, 16  ;;  %v1973_v53 = vrot.slane %v5259_v11, 1  ;;  %v1942_v4 = vshrl.u32 %v5259_v11, 16  ;;  %4447 = vmatpush.bf16.msra.mxu1 %v5292_v35  ;;  %v2355_v3 = vunpack.c.l.b16 %v2323_v54  ;;  %3197 = vmatpush.bf16.msra.mxu2 %v4409_v45 }
 0x13f   : > { %1689 = vst [vmem:[#allocation2 + $0x61] sm:$0xff] %v1660_v27  ;;  %v1614_v61 = vadd.f32 %v1613_v59, %v1584_v0  ;;  %v1867_v51 = vpack.c.bf16 %v1851_v62, %v1851_v62  ;;  %v1868_v60 = vpack.c.bf16 %v1852_v13, %v1852_v13  ;;  %2251 = vmatmul.bf16.gmra.mxu3 %v2045_v29  ;;  %v4380_v22 = vld [vmem:[%s5581_s5 + $0x148] sm:$0xff]  ;;  %v2776_v14 = vld [vmem:[#allocation2 + $0x58] sm:$0x3] }
 0x140   : > { %v1946_v30 = vrot.slane %v1944_v15, 1  ;;  %v1986_v0 = vunpack.c.l.b16 %v1973_v53  ;;  %v1644_v11 = vpop.f32.mrf.mxu0  ;;  %v1196_v59 = vadd.f32 %v1187_v2, %v738_v24  ;;  %2737 = vmatpush.bf16.msra.mxu3 %v4380_v22  ;;  %v2792_v23 = vpack.c.bf16 %v2776_v14, %v2776_v14  ;;  %v2311_v24 = vld [vmem:[#allocation2 + $0x48] sm:$0x3] }
 0x141   : > { %v1643_v28 = vadd.f32 %v1642_v37, %v1614_v61  ;;  %v5283_v21 = vunpack.c.l.b16 %v1867_v51  ;;  %v1900_v34 = vunpack.c.l.b16 %v1868_v60  ;;  %v4387_v37 = vld [vmem:[%s5581_s5 + $0x180] sm:$0xff] }
 0x142   : > { %v1947_v48 = vor.u32 %v1946_v30, %v1942_v4  ;;  %4448 = vmatpush.bf16.msra.mxu1 %v5318_v52  ;;  %v5333_v60 = vld [vmem:[%s5581_s5 + $0x1c0] sm:$0xff]  ;;  %3145 = vmatpush.bf16.msra.mxu0 %v4387_v37 }
 0x143   : > { %v1653_v20 = vadd.f32 %v1643_v28, %v1195_v26  ;;  %v1910_v6 = vpack.c.b16 %v1900_v34, %v5283_v21  ;;  %v5300_v41 = vpack.c.b16 %v5283_v21, %v5242_v40  ;;  %v2774_v26 = vld [vmem:[#allocation2 + $0x48] sm:$0x3]  ;;  %v2353_v28 = vunpack.c.l.b16 %v2321_v32 }
 0x144   : > { %v1985_v34 = vunpack.c.l.b16 %v1947_v48  ;;  %2738 = vmatpush.bf16.msra.mxu3 %v4379_v25  ;;  %v2790_v46 = vpack.c.bf16 %v2774_v26, %v2774_v26  ;;  %v4408_v48 = vld [vmem:[%s5581_s5 + $0x228] sm:$0xff] }
 0x145   : > { %v1661_v39 = vmax.f32 %v1653_v20, 0.0  ;;  %2227 = vmatmul.bf16.gmra.mxu2 %v5300_v41  ;;  %v1974_v42 = vrot.slane %v1910_v6, 1  ;;  %v1951_v47 = vshll.u32 %v1910_v6, 16  ;;  %v1949_v7 = vshrl.u32 %v1910_v6, 16 }
 0x146   : > { %v1615_v56 = vpop.f32.mrf.mxu3  ;;  %v2314_v63 = vld [vmem:[#allocation2 + $0x60] sm:$0xff]  ;;  %v1854_v12 = vld [vmem:[#allocation2 + $0x68] sm:$0x3]  ;;  %3167 = vmatpush.bf16.msrb.mxu0 %v5194_v58  ;;  %v5346_v20 = vpack.c.b16 %v2355_v3, %v5171_v10  ;;  %4449 = vmatpush.bf16.msra.mxu1 %v5333_v60 }
 0x147   : > { %1690 = vst [vmem:[#allocation2 + $0x71] sm:$0xff] %v1661_v39  ;;  %v1616_v1 = vadd.f32 %v1615_v56, %v1586_v49  ;;  %v1988_v5 = vunpack.c.l.b16 %v1974_v42  ;;  %v2330_v19 = vpack.c.bf16 %v2314_v63, %v2314_v63  ;;  %v1953_v27 = vrot.slane %v1951_v47, 1  ;;  %3198 = vmatpush.bf16.msra.mxu2 %v4408_v48 }
 0x148   : > { %v1870_v31 = vpack.c.bf16 %v1854_v12, %v1854_v12  ;;  %v5350_v42 = vpack.c.b16 %v2353_v28, %v5155_v16  ;;  %v2325_v47 = vpack.c.bf16 %v2309_v17, %v2309_v17  ;;  %v2824_v49 = vunpack.c.l.b16 %v2792_v23  ;;  %4450 = vmatpush.bf16.msrb.mxu3 %v5310_v44 }
 0x149   : > { %v1645_v29 = vadd.f32 %v1644_v11, %v1616_v1  ;;  %v2049_v62 = vpack.c.b16 %v1988_v5, %v1986_v0  ;;  %v5327_v13 = vunpack.c.l.b16 %v2330_v19  ;;  %v1954_v61 = vor.u32 %v1953_v27, %v1949_v7 }
 0x14a   : > { %v1902_v51 = vunpack.c.l.b16 %v1870_v31  ;;  %3168 = vmatpush.bf16.msrb.mxu0 %v5211_v18  ;;  %v2386_v4 = vshll.u32 %v5346_v20, 16  ;;  %v2822_v12 = vunpack.c.l.b16 %v2790_v46  ;;  %v2327_v0 = vpack.c.bf16 %v2311_v24, %v2311_v24 }
 0x14b   : > { %v1654_v15 = vadd.f32 %v1645_v29, %v1196_v59  ;;  %2285 = vmatmul.bf16.gmra.mxu0 %v2049_v62  ;;  %v2511_v36 = vpack.c.b16 %v5327_v13, %v5283_v21  ;;  %v1987_v9 = vunpack.c.l.b16 %v1954_v61  ;;  %v2357_v5 = vunpack.c.l.b16 %v2325_v47 }
 0x14c   : > { %v1911_v55 = vpack.c.b16 %v1902_v51, %v5327_v13  ;;  %v2379_v22 = vshll.u32 %v5350_v42, 16  ;;  %v5365_v11 = vpack.c.b16 %v2824_v49, %v5283_v21  ;;  %4451 = vmatpush.bf16.msrb.mxu3 %v4409_v45  ;;  %v2388_v37 = vrot.slane %v2386_v4, 1  ;;  %v2770_v51 = vld [vmem:[#allocation2 + $0x28] sm:$0x3] }
 0x14d   : > { %v1662_v8 = vmax.f32 %v1654_v15, 0.0  ;;  %2691 = vmatmul.bf16.gmra.mxu1 %v2511_v36  ;;  %v2048_v6 = vpack.c.b16 %v1987_v9, %v1985_v34  ;;  %v5371_v59 = vpack.c.b16 %v2822_v12, %v5242_v40  ;;  %v2359_v14 = vunpack.c.l.b16 %v2327_v0  ;;  %v2772_v9 = vld [vmem:[#allocation2 + $0x38] sm:$0x3]  ;;  %v2778_v49 = vld [vmem:[#allocation2 + $0x68] sm:$0x3] }
 0x14e   : > { %v1855_v53 = vld [vmem:[#allocation2 + $0x70] sm:$0xff]  ;;  %v1856_v30 = vld [vmem:[#allocation2 + $0x78] sm:$0x3]  ;;  %v1958_v58 = vshll.u32 %v1911_v55, 16  ;;  %v1975_v56 = vrot.slane %v1911_v55, 1  ;;  %v1956_v19 = vshrl.u32 %v1911_v55, 16  ;;  %3169 = vmatpush.bf16.msrb.mxu0 %v5237_v50  ;;  %v5375_v15 = vpack.c.b16 %v2357_v5, %v5202_v38 }
 0x14f   : > { %1691 = vst [vmem:[#allocation2 + $0x81] sm:$0xff] %v1662_v8  ;;  %v1871_v2 = vpack.c.bf16 %v1855_v53, %v1855_v53  ;;  %v1872_v39 = vpack.c.bf16 %v1856_v30, %v1856_v30  ;;  %2256 = vmatmul.bf16.gmra.mxu3 %v2048_v6  ;;  %v2381_v36 = vrot.slane %v2379_v22, 1  ;;  %v2384_v25 = vshrl.u32 %v5346_v20, 16  ;;  %v2780_v30 = vld [vmem:[#allocation2 + $0x78] sm:$0x3] }
 0x150   : > { %v1960_v63 = vrot.slane %v1958_v58, 1  ;;  %v1990_v7 = vunpack.c.l.b16 %v1975_v56  ;;  %v2865_v50 = vshll.u32 %v5365_v11, 16  ;;  %4452 = vmatpush.bf16.msrb.mxu3 %v4408_v48  ;;  %v2377_v55 = vshrl.u32 %v5350_v42, 16  ;;  %v2313_v22 = vld [vmem:[#allocation2 + $0x58] sm:$0x3] }
 0x151   : > { %v5352_v32 = vunpack.c.l.b16 %v1871_v2  ;;  %v1904_v54 = vunpack.c.l.b16 %v1872_v39  ;;  %v2389_v17 = vor.u32 %v2388_v37, %v2384_v25  ;;  %v2786_v8 = vpack.c.bf16 %v2770_v51, %v2770_v51 }
 0x152   : > { %v1961_v31 = vor.u32 %v1960_v63, %v1956_v19  ;;  %3170 = vmatpush.bf16.msrb.mxu0 %v5248_v57  ;;  %v2858_v53 = vshll.u32 %v5371_v59, 16  ;;  %v5387_v46 = vpack.c.b16 %v2359_v14, %v5242_v40  ;;  %v2788_v2 = vpack.c.bf16 %v2772_v9, %v2772_v9  ;;  %v4407_v57 = vld [vmem:[%s5581_s5 + $0x220] sm:$0xff]  ;;  %v5413_v9 = vpop.f32.mrf.mxu1 }
 0x153   : > { %v1912_v16 = vpack.c.b16 %v1904_v54, %v5352_v32  ;;  %v5360_v1 = vpack.c.b16 %v5352_v32, %v5327_v13  ;;  %v2393_v39 = vshll.u32 %v5375_v15, 16  ;;  %v2382_v58 = vor.u32 %v2381_v36, %v2377_v55  ;;  %3199 = vmatpush.bf16.msra.mxu2 %v4407_v57 }
 0x154   : > { %v1989_v45 = vunpack.c.l.b16 %v1961_v31  ;;  %v2867_v24 = vrot.slane %v2865_v50, 1  ;;  %v2818_v54 = vunpack.c.l.b16 %v2786_v8  ;;  %v2796_v56 = vpack.c.bf16 %v2780_v30, %v2780_v30  ;;  %4453 = vmatpush.bf16.msrb.mxu3 %v4407_v57 }
 0x155   : > { %2232 = vmatmul.bf16.gmra.mxu2 %v5360_v1  ;;  %v1976_v44 = vrot.slane %v1912_v16, 1  ;;  %v1965_v18 = vshll.u32 %v1912_v16, 16  ;;  %v1963_v3 = vshrl.u32 %v1912_v16, 16  ;;  %v2442_v63 = vunpack.c.l.b16 %v2389_v17 }
 0x156   : > { %v2318_v27 = vld [vmem:[#allocation2 + $0x80] sm:$0xff]  ;;  %3171 = vmatpush.bf16.msrb.mxu0 %v5271_v33  ;;  %v2860_v4 = vrot.slane %v2858_v53, 1  ;;  %v2863_v40 = vshrl.u32 %v5365_v11, 16  ;;  %v2433_v12 = vrot.slane %v5346_v20, 1  ;;  %v2820_v16 = vunpack.c.l.b16 %v2788_v2 }
 0x157   : > { %v1992_v29 = vunpack.c.l.b16 %v1976_v44  ;;  %v2334_v62 = vpack.c.bf16 %v2318_v27, %v2318_v27  ;;  %v1967_v61 = vrot.slane %v1965_v18, 1  ;;  %v2432_v0 = vrot.slane %v5350_v42, 1 }
 0x158   : > { %v2395_v5 = vrot.slane %v2393_v39, 1  ;;  %v2400_v19 = vshll.u32 %v5387_v46, 16  ;;  %v2440_v44 = vunpack.c.l.b16 %v2382_v58  ;;  %v2856_v18 = vshrl.u32 %v5371_v59, 16 }
 0x159   : > { %v2052_v26 = vpack.c.b16 %v1992_v29, %v1990_v7  ;;  %v5378_v28 = vunpack.c.l.b16 %v2334_v62  ;;  %v1968_v34 = vor.u32 %v1967_v61, %v1963_v3  ;;  %v2868_v33 = vor.u32 %v2867_v24, %v2863_v40  ;;  %v2315_v7 = vld [vmem:[#allocation2 + $0x68] sm:$0x3] }
 0x15a   : > { %v2794_v48 = vpack.c.bf16 %v2778_v49, %v2778_v49  ;;  %v2833_v27 = vpack.c.b16 %v2818_v54, %v5171_v10  ;;  %v2391_v20 = vshrl.u32 %v5375_v15, 16  ;;  %v2828_v31 = vunpack.c.l.b16 %v2796_v56  ;;  %3172 = vmatpush.bf16.msrb.mxu0 %v5292_v35  ;;  %v4406_v10 = vld [vmem:[%s5581_s5 + $0x218] sm:$0xff] }
 0x15b   : > { %2290 = vmatmul.bf16.gmra.mxu0 %v2052_v26  ;;  %v2514_v23 = vpack.c.b16 %v5378_v28, %v5352_v32  ;;  %v1991_v6 = vunpack.c.l.b16 %v1968_v34  ;;  %v2506_v37 = vpack.c.b16 %v2442_v63, %v2440_v44  ;;  %v2861_v29 = vor.u32 %v2860_v4, %v2856_v18  ;;  %3200 = vmatpush.bf16.msra.mxu2 %v4406_v10  ;;  %v2782_v63 = vld [vmem:[#allocation2 + $0x88] sm:$0x3]  ;;  %v2784_v4 = vld [vmem:[#allocation2 + $0x98] sm:$0x3] }
 0x15c   : > { %v2443_v42 = vunpack.c.l.b16 %v2433_v12  ;;  %v2329_v62 = vpack.c.bf16 %v2313_v22, %v2313_v22  ;;  %v2834_v3 = vpack.c.b16 %v2820_v16, %v5202_v38  ;;  %v5403_v61 = vor.u32 %v2395_v5, %v2391_v20  ;;  %4454 = vmatpush.bf16.msrb.mxu3 %v4406_v10  ;;  %v4471_v22 = vld [vmem:[#allocation2] sm:$0xff] }
 0x15d   : > { %2696 = vmatmul.bf16.gmra.mxu1 %v2514_v23  ;;  %v2051_v47 = vpack.c.b16 %v1991_v6, %v1989_v45  ;;  %v2402_v51 = vrot.slane %v2400_v19, 1  ;;  %v2331_v14 = vpack.c.bf16 %v2315_v7, %v2315_v7  ;;  %v2911_v36 = vunpack.c.l.b16 %v2868_v33 }
 0x15e   : > { %v2441_v25 = vunpack.c.l.b16 %v2432_v0  ;;  %v2826_v26 = vunpack.c.l.b16 %v2794_v48  ;;  %v2398_v35 = vshrl.u32 %v5387_v46, 16  ;;  %v5410_v34 = vpack.c.b16 %v2828_v31, %v5352_v32  ;;  %3173 = vmatpush.bf16.msrb.mxu0 %v5318_v52 }
 0x15f   : > { %2261 = vmatmul.bf16.gmra.mxu3 %v2051_v47  ;;  %v2897_v38 = vrot.slane %v2833_v27, 1  ;;  %v2909_v50 = vunpack.c.l.b16 %v2861_v29  ;;  %v2361_v17 = vunpack.c.l.b16 %v2329_v62  ;;  %v2444_v23 = vunpack.c.l.b16 %v5403_v61  ;;  %v5444_v29 = vpop.f32.mrf.mxu1 }
 0x160   : > { %v2507_v55 = vpack.c.b16 %v2443_v42, %v2441_v25  ;;  %v2403_v8 = vor.u32 %v2402_v51, %v2398_v35  ;;  %v2898_v45 = vrot.slane %v2834_v3, 1  ;;  %v2363_v6 = vunpack.c.l.b16 %v2331_v14 }
 0x161   : > { %v2974_v53 = vpack.c.b16 %v2911_v36, %v2909_v50  ;;  %v2837_v30 = vpack.c.b16 %v2826_v26, %v5327_v13  ;;  %v2844_v2 = vshll.u32 %v2833_v27, 16  ;;  %v2879_v39 = vshll.u32 %v5410_v34, 16 }
 0x162   : > { %v5418_v52 = vunpack.c.l.b16 %v2897_v38  ;;  %v5420_v47 = vunpack.c.l.b16 %v2898_v45  ;;  %3174 = vmatpush.bf16.msrb.mxu0 %v5333_v60  ;;  %v2851_v58 = vshll.u32 %v2834_v3, 16  ;;  %v2842_v24 = vshrl.u32 %v2833_v27, 16 }
 0x163   : > { %v2846_v57 = vrot.slane %v2844_v2, 1  ;;  %v2899_v54 = vrot.slane %v5371_v59, 1  ;;  %v2900_v49 = vrot.slane %v5365_v11, 1  ;;  %v2446_v56 = vunpack.c.l.b16 %v2403_v8  ;;  %v2317_v8 = vld [vmem:[#allocation2 + $0x78] sm:$0x3] }
 0x164   : > { %v2972_v40 = vpack.c.b16 %v5420_v47, %v5418_v52  ;;  %v2849_v12 = vshrl.u32 %v2834_v3, 16  ;;  %v2853_v16 = vrot.slane %v2851_v58, 1  ;;  %v2872_v0 = vshll.u32 %v2837_v30, 16 }
 0x165   : > { %2710 = vmatmul.bf16.vlgmr.msrb.gmra.mxu2 %v2506_v37  ;;  %v2847_v60 = vor.u32 %v2846_v57, %v2842_v24  ;;  %v5431_v5 = vunpack.c.l.b16 %v2899_v54  ;;  %v5433_v59 = vunpack.c.l.b16 %v2900_v49  ;;  %v5436_v11 = vpack.c.b16 %v2363_v6, %v5327_v13 }
 0x166   : > { %v2881_v19 = vrot.slane %v2879_v39, 1  ;;  %v2799_v44 = vpack.c.bf16 %v4471_v22, %v4471_v22  ;;  %v2854_v18 = vor.u32 %v2853_v16, %v2849_v12  ;;  %v2798_v33 = vpack.c.bf16 %v2782_v63, %v2782_v63 }
 0x167   : > { %v2800_v48 = vpack.c.bf16 %v2784_v4, %v2784_v4  ;;  %v2975_v7 = vpack.c.b16 %v5433_v59, %v5431_v5  ;;  %v2901_v27 = vrot.slane %v2837_v30, 1  ;;  %v5441_v20 = vpack.c.b16 %v2361_v17, %v5283_v21  ;;  %v2319_v21 = vld [vmem:[#allocation2 + $0x88] sm:$0x3]  ;;  %v5472_v63 = vpop.f32.mrf.mxu1  ;;  %v5516_v5 = vld [vmem:[%s5580_s4] ss:$0 sm:$0xff] }
 0x168   : > { %v2877_v31 = vshrl.u32 %v5410_v34, 16  ;;  %v2905_v13 = vunpack.c.l.b16 %v2847_v60  ;;  %v2907_v37 = vunpack.c.l.b16 %v2854_v18  ;;  %v2509_v42 = vpack.c.b16 %v2446_v56, %v2444_v23 }
 0x169   : > { %v2870_v62 = vshrl.u32 %v2837_v30, 16  ;;  %v2874_v3 = vrot.slane %v2872_v0, 1  ;;  %v2902_v61 = vrot.slane %v5410_v34, 1  ;;  %v2414_v14 = vshll.u32 %v5436_v11, 16  ;;  %v4404_v34 = vld [vmem:[%s5581_s5 + $0x208] sm:$0xff] }
 0x16a   : > { %v2882_v51 = vor.u32 %v2881_v19, %v2877_v31  ;;  %v5448_v36 = vunpack.c.l.b16 %v2799_v44  ;;  %v5450_v25 = vpack.c.b16 %v2907_v37, %v2905_v13  ;;  %v2830_v26 = vunpack.c.l.b16 %v2798_v33 }
 0x16b   : > { %3146 = vmatmul.bf16.vlgmr.msra.gmra.mxu0 %v5216_v43  ;;  %v4405_v43 = vld [vmem:[%s5581_s5 + $0x210] sm:$0xff]  ;;  %v2832_v10 = vunpack.c.l.b16 %v2800_v48  ;;  %v5452_v35 = vunpack.c.l.b16 %v2901_v27  ;;  %v5454_v38 = vunpack.c.l.b16 %v2902_v61  ;;  %v2875_v50 = vor.u32 %v2874_v3, %v2870_v62 }
 0x16c   : > { %3201 = vmatpush.bf16.msra.mxu2 %v4405_v43  ;;  %4455 = vmatpush.bf16.msrb.mxu3 %v4405_v43  ;;  %v2335_v23 = vpack.c.bf16 %v2319_v21, %v2319_v21  ;;  %v2435_v45 = vrot.slane %v5387_v46, 1  ;;  %v2915_v6 = vunpack.c.l.b16 %v2882_v51  ;;  %v5464_v30 = vpack.c.b16 %v2830_v26, %v5378_v28 }
 0x16d   : > { %3180 = vmatmul.bf16.vlgmr.msra.gmra.mxu1 %v2974_v53  ;;  %v2978_v17 = vpack.c.b16 %v5454_v38, %v5452_v35  ;;  %v2416_v53 = vrot.slane %v2414_v14, 1  ;;  %v5467_v2 = vpack.c.b16 %v2832_v10, %v5448_v36  ;;  %v2434_v39 = vrot.slane %v5375_v15, 1  ;;  %v4403_v15 = vld [vmem:[%s5581_s5 + $0x200] sm:$0xff] }
 0x16e   : > { %v2333_v58 = vpack.c.bf16 %v2317_v8, %v2317_v8  ;;  %v2913_v24 = vunpack.c.l.b16 %v2875_v50  ;;  %v2412_v54 = vshrl.u32 %v5436_v11, 16  ;;  %v2367_v49 = vunpack.c.l.b16 %v2335_v23 }
 0x16f   : > { %2739 = vmatmul.bf16.vlgmr.msra.gmra.mxu3 %v2507_v55  ;;  %v2407_v55 = vshll.u32 %v5441_v20, 16  ;;  %v2447_v56 = vunpack.c.l.b16 %v2435_v45  ;;  %v2405_v46 = vshrl.u32 %v5441_v20, 16  ;;  %v2886_v16 = vshll.u32 %v5464_v30, 16  ;;  %v5484_v61 = vpop.f32.mrf.mxu1 }
 0x170   : > { %3202 = vmatpush.bf16.msra.mxu2 %v4404_v34  ;;  %4456 = vmatpush.bf16.msrb.mxu3 %v4404_v34  ;;  %v2977_v4 = vpack.c.b16 %v2915_v6, %v2913_v24  ;;  %v2417_v12 = vor.u32 %v2416_v53, %v2412_v54  ;;  %v2893_v0 = vshll.u32 %v5467_v2, 16  ;;  %v2445_v43 = vunpack.c.l.b16 %v2434_v39 }
 0x171   : > { %v2409_v57 = vrot.slane %v2407_v55, 1  ;;  %v2365_v60 = vunpack.c.l.b16 %v2333_v58  ;;  %v2375_v22 = vpack.c.b16 %v2367_v49, %v5378_v28  ;;  %v2888_v18 = vrot.slane %v2886_v16, 1 }
 0x172   : > { %v2510_v44 = vpack.c.b16 %v2447_v56, %v2445_v43  ;;  %v2891_v33 = vshrl.u32 %v5467_v2, 16  ;;  %v2895_v48 = vrot.slane %v2893_v0, 1  ;;  %v2884_v13 = vshrl.u32 %v5464_v30, 16 }
 0x173   : > { %v2410_v19 = vor.u32 %v2409_v57, %v2405_v46  ;;  %v2374_v27 = vpack.c.b16 %v2365_v60, %v5352_v32  ;;  %v2428_v3 = vshll.u32 %v2375_v22, 16  ;;  %v2437_v14 = vrot.slane %v5436_v11, 1 }
 0x174   : > { %3203 = vmatpush.bf16.msra.mxu2 %v4403_v15  ;;  %4457 = vmatpush.bf16.msrb.mxu3 %v4403_v15  ;;  %v2896_v62 = vor.u32 %v2895_v48, %v2891_v33  ;;  %v2436_v50 = vrot.slane %v5441_v20, 1  ;;  %v2426_v32 = vshrl.u32 %v2375_v22, 16  ;;  %v2439_v20 = vrot.slane %v2375_v22, 1 }
 0x175   : > { %2715 = vmatmul.bf16.gmra.mxu2 %v2509_v42  ;;  %v2448_v31 = vunpack.c.l.b16 %v2410_v19  ;;  %v2889_v42 = vor.u32 %v2888_v18, %v2884_v13  ;;  %v2421_v51 = vshll.u32 %v2374_v27, 16  ;;  %v2430_v10 = vrot.slane %v2428_v3, 1  ;;  %v5523_v3 = vld [vmem:[%s5582_s6] ss:$0 sm:$0xff] }
 0x176   : > { %v2919_v26 = vunpack.c.l.b16 %v2896_v62  ;;  %v2451_v34 = vunpack.c.l.b16 %v2437_v14  ;;  %v2419_v23 = vshrl.u32 %v2374_v27, 16  ;;  %v2449_v6 = vunpack.c.l.b16 %v2436_v50 }
 0x177   : > { %v2917_v21 = vunpack.c.l.b16 %v2889_v42  ;;  %v2423_v55 = vrot.slane %v2421_v51, 1  ;;  %v2431_v45 = vor.u32 %v2430_v10, %v2426_v32  ;;  %v5489_v58 = vpop.f32.mrf.mxu1  ;;  %v2438_v54 = vrot.slane %v2374_v27, 1 }
 0x178   : > { %v2513_v39 = vpack.c.b16 %v2451_v34, %v2449_v6  ;;  %v2455_v56 = vunpack.c.l.b16 %v2439_v20  ;;  %v2903_v16 = vrot.slane %v5464_v30, 1  ;;  %v2904_v0 = vrot.slane %v5467_v2, 1 }
 0x179   : > { %v2980_v8 = vpack.c.b16 %v2919_v26, %v2917_v21  ;;  %v2424_v53 = vor.u32 %v2423_v55, %v2419_v23  ;;  %v2454_v11 = vunpack.c.l.b16 %v2431_v45  ;;  %v2453_v46 = vunpack.c.l.b16 %v2438_v54 }
 0x17a   : > { %v2918_v60 = vunpack.c.l.b16 %v2903_v16  ;;  %v2920_v19 = vunpack.c.l.b16 %v2904_v0  ;;  %v1821_v62 = vadd.f32 %v5516_v5, %v5413_v9  ;;  %v1822_v50 = vadd.f32 %v5516_v5, %v5444_v29 }
 0x17b   : > { %3151 = vmatmul.bf16.gmra.mxu0 %v5300_v41  ;;  %v2450_v41 = vunpack.c.l.b16 %v2417_v12  ;;  %v2452_v24 = vunpack.c.l.b16 %v2424_v53  ;;  %v1823_v53 = vadd.f32 %v5516_v5, %v5472_v63 }
 0x17d   : > { %3185 = vmatmul.bf16.gmra.mxu1 %v2977_v4  ;;  %v2512_v37 = vpack.c.b16 %v2450_v41, %v2448_v31  ;;  %v2515_v57 = vpack.c.b16 %v2454_v11, %v2452_v24  ;;  %v2516_v4 = vpack.c.b16 %v2455_v56, %v2453_v46  ;;  %v1824_v56 = vadd.f32 %v5516_v5, %v5484_v61 }
 0x17f   : > { %2744 = vmatmul.bf16.gmra.mxu3 %v2510_v44  ;;  %v5491_v49 = vpop.f32.mrf.mxu1  ;;  %v1836_v0 = vadd.f32 %v5523_v3, %v1824_v56 }
 0x185   : > { %2720 = vmatmul.bf16.gmra.mxu2 %v2512_v37 }
 0x187   : > { %v5495_v12 = vpop.f32.mrf.mxu1 }
 0x18b   : > { %3156 = vmatmul.bf16.gmra.mxu0 %v5360_v1  ;;  %v2979_v1 = vpack.c.b16 %v5448_v36, %v5378_v28  ;;  %v2981_v36 = vpack.c.b16 %v2920_v19, %v2918_v60 }
 0x18d   : > { %3190 = vmatmul.bf16.gmra.mxu1 %v2980_v8  ;;  %v1834_v8 = vadd.f32 %v5523_v3, %v1822_v50 }
 0x18f   : > { %2749 = vmatmul.bf16.gmra.mxu3 %v2513_v39  ;;  %v5503_v28 = vpop.f32.mrf.mxu1 }
 0x195   : > { %2725 = vmatmul.bf16.gmra.mxu2 %v2515_v57  ;;  %v1835_v57 = vadd.f32 %v5523_v3, %v1823_v53 }
 0x19b   : > { %3161 = vmatmul.bf16.gmra.mxu0 %v2979_v1 }
 0x19f   : > { %2754 = vmatmul.bf16.gmra.mxu3 %v2516_v4 }
 0x1a5   : > { %3204 = vmatmul.bf16.vlgmr.msra.gmra.mxu2 %v2972_v40 }
 0x1a8   : > { %v2218_v15 = vpop.f32.mrf.mxu2  ;;  %v2276_v43 = vpop.f32.mrf.mxu0 }
 0x1aa   : > { %v2682_v47 = vpop.f32.mrf.mxu1 }
 0x1ab   : > { %3175 = vmatmul.bf16.vlgmr.msrb.gmra.mxu0 %v5450_v25 }
 0x1af   : > { %3219 = vmatmul.bf16.vlgmr.msrb.gmra.mxu3 %v2981_v36  ;;  %v1825_v36 = vadd.f32 %v5516_v5, %v5489_v58 }
 0x1b0   : > { %v2220_v22 = vpop.f32.mrf.mxu2  ;;  %v2278_v44 = vpop.f32.mrf.mxu0 }
 0x1b2   : > { %v2247_v41 = vpop.f32.mrf.mxu3  ;;  %v5508_v31 = vpop.f32.mrf.mxu1 }
 0x1b3   : > { %v2248_v18 = vadd.f32 %v2247_v41, %v2218_v15 }
 0x1b5   : > { %3209 = vmatmul.bf16.gmra.mxu2 %v2975_v7  ;;  %v2277_v52 = vadd.f32 %v2276_v43, %v2248_v18  ;;  %v1837_v18 = vadd.f32 %v5523_v3, %v1825_v36 }
 0x1b8   : > { %v2223_v40 = vpop.f32.mrf.mxu2  ;;  %v2281_v30 = vpop.f32.mrf.mxu0 }
 0x1ba   : > { %v2249_v2 = vpop.f32.mrf.mxu3  ;;  %v2687_v51 = vpop.f32.mrf.mxu1 }
 0x1bb   : > { %v2250_v33 = vadd.f32 %v2249_v2, %v2220_v22 }
 0x1bd   : > { %v2279_v48 = vadd.f32 %v2278_v44, %v2250_v33 }
 0x1bf   : > { %v2297_v6 = vadd.f32 %v2279_v48, %v1834_v8 }
 0x1c0   : > { %v2225_v25 = vpop.f32.mrf.mxu2  ;;  %v2283_v27 = vpop.f32.mrf.mxu0 }
 0x1c2   : > { %v2252_v13 = vpop.f32.mrf.mxu3  ;;  %v2689_v9 = vpop.f32.mrf.mxu1 }
 0x1c3   : > { %v2253_v37 = vadd.f32 %v2252_v13, %v2223_v40 }
 0x1c5   : > { %3214 = vmatmul.bf16.gmra.mxu2 %v2978_v17  ;;  %v2282_v42 = vadd.f32 %v2281_v30, %v2253_v37  ;;  %v1833_v17 = vadd.f32 %v5523_v3, %v1821_v62  ;;  %v1826_v30 = vadd.f32 %v5516_v5, %v5491_v49 }
 0x1c7   : > { %v2296_v10 = vadd.f32 %v2277_v52, %v1833_v17  ;;  %v2298_v1 = vadd.f32 %v2282_v42, %v1835_v57 }
 0x1c8   : > { %v2228_v59 = vpop.f32.mrf.mxu2  ;;  %v2286_v7 = vpop.f32.mrf.mxu0 }
 0x1ca   : > { %v2254_v14 = vpop.f32.mrf.mxu3  ;;  %v2692_v20 = vpop.f32.mrf.mxu1 }
 0x1cb   : > { %v2255_v35 = vadd.f32 %v2254_v14, %v2225_v25  ;;  %v1838_v25 = vadd.f32 %v5523_v3, %v1826_v30 }
 0x1cd   : > { %v2284_v38 = vadd.f32 %v2283_v27, %v2255_v35 }
 0x1cf   : > { %v2299_v19 = vadd.f32 %v2284_v38, %v1836_v0 }
 0x1d0   : > { %v2230_v21 = vpop.f32.mrf.mxu2  ;;  %v2288_v26 = vpop.f32.mrf.mxu0 }
 0x1d2   : > { %v2257_v55 = vpop.f32.mrf.mxu3  ;;  %v2694_v63 = vpop.f32.mrf.mxu1 }
 0x1d3   : > { %v2258_v32 = vadd.f32 %v2257_v55, %v2228_v59  ;;  %v1827_v59 = vadd.f32 %v5516_v5, %v5495_v12 }
 0x1d5   : > { %v2287_v34 = vadd.f32 %v2286_v7, %v2258_v32  ;;  %v1839_v35 = vadd.f32 %v5523_v3, %v1827_v59 }
 0x1d7   : > { %v2300_v40 = vadd.f32 %v2287_v34, %v1837_v18 }
 0x1d8   : > { %v2233_v23 = vpop.f32.mrf.mxu2  ;;  %v2291_v45 = vpop.f32.mrf.mxu0 }
 0x1da   : > { %v2259_v39 = vpop.f32.mrf.mxu3  ;;  %v5542_v2 = vpop.f32.mrf.mxu1 }
 0x1db   : > { %v2260_v11 = vadd.f32 %v2259_v39, %v2230_v21 }
 0x1dd   : > { %v2289_v24 = vadd.f32 %v2288_v26, %v2260_v11 }
 0x1df   : > { %v2301_v37 = vadd.f32 %v2289_v24, %v1838_v25 }
 0x1e0   : > { %v2235_v54 = vpop.f32.mrf.mxu2  ;;  %v2293_v29 = vpop.f32.mrf.mxu0 }
 0x1e2   : > { %v2262_v46 = vpop.f32.mrf.mxu3  ;;  %v2699_v14 = vpop.f32.mrf.mxu1 }
 0x1e3   : > { %v2263_v4 = vadd.f32 %v2262_v46, %v2233_v23 }
 0x1e5   : > { %v2292_v16 = vadd.f32 %v2291_v45, %v2263_v4 }
 0x1e7   : > { %v2302_v21 = vadd.f32 %v2292_v16, %v1839_v35 }
 0x1e8   : > { %v2711_v15 = vpop.f32.mrf.mxu2  ;;  %v5535_v43 = vpop.f32.mrf.mxu0 }
 0x1e9   : > { %v2712_v60 = vadd.f32 %v2711_v15, %v2682_v47 }
 0x1ea   : > { %v2264_v22 = vpop.f32.mrf.mxu3 }
 0x1eb   : > { %v2265_v44 = vadd.f32 %v2264_v22, %v2235_v54 }
 0x1ed   : > { %v2294_v41 = vadd.f32 %v2293_v29, %v2265_v44 }
 0x1f0   : > { %v2713_v61 = vpop.f32.mrf.mxu2  ;;  %v3149_v52 = vpop.f32.mrf.mxu0 }
 0x1f1   : > { %v2714_v42 = vadd.f32 %v2713_v61, %v5508_v31  ;;  %v3181_v31 = vpop.f32.mrf.mxu1 }
 0x1f2   : > { %v2740_v33 = vpop.f32.mrf.mxu3 }
 0x1f3   : > { %v2741_v48 = vadd.f32 %v2740_v33, %v2712_v60 }
 0x1f5   : > { %v2760_v47 = vadd.f32 %v2741_v48, %v2296_v10 }
 0x1f8   : > { %v2716_v27 = vpop.f32.mrf.mxu2  ;;  %v3152_v58 = vpop.f32.mrf.mxu0 }
 0x1f9   : > { %v2717_v13 = vadd.f32 %v2716_v27, %v2687_v51  ;;  %v1828_v51 = vadd.f32 %v5516_v5, %v5503_v28  ;;  %v3183_v24 = vpop.f32.mrf.mxu1 }
 0x1fa   : > { %v2742_v7 = vpop.f32.mrf.mxu3 }
 0x1fb   : > { %v2743_v62 = vadd.f32 %v2742_v7, %v2714_v42  ;;  %v1840_v12 = vadd.f32 %v5523_v3, %v1828_v51 }
 0x1fd   : > { %v2761_v49 = vadd.f32 %v2743_v62, %v2297_v6  ;;  %v2303_v45 = vadd.f32 %v2294_v41, %v1840_v12 }
 0x200   : > { %v2718_v38 = vpop.f32.mrf.mxu2  ;;  %v5549_v17 = vpop.f32.mrf.mxu0 }
 0x201   : > { %v2719_v8 = vadd.f32 %v2718_v38, %v2689_v9  ;;  %v3186_v56 = vpop.f32.mrf.mxu1 }
 0x202   : > { %v2745_v26 = vpop.f32.mrf.mxu3 }
 0x203   : > { %v2746_v10 = vadd.f32 %v2745_v26, %v2717_v13 }
 0x205   : > { %v2762_v50 = vadd.f32 %v2746_v10, %v2298_v1 }
 0x208   : > { %v2721_v55 = vpop.f32.mrf.mxu2  ;;  %v5553_v32 = vpop.f32.mrf.mxu0 }
 0x209   : > { %v2722_v34 = vadd.f32 %v2721_v55, %v2692_v20  ;;  %v3188_v0 = vpop.f32.mrf.mxu1 }
 0x20a   : > { %v2747_v23 = vpop.f32.mrf.mxu3 }
 0x20b   : > { %v2748_v6 = vadd.f32 %v2747_v23, %v2719_v8  ;;  %v3187_v8 = vadd.f32 %v3186_v56, %v5553_v32 }
 0x20d   : > { %v2763_v53 = vadd.f32 %v2748_v6, %v2299_v19 }
 0x210   : > { %v2723_v39 = vpop.f32.mrf.mxu2  ;;  %v5556_v11 = vpop.f32.mrf.mxu0 }
 0x211   : > { %v2724_v1 = vadd.f32 %v2723_v39, %v2694_v63  ;;  %v3191_v41 = vpop.f32.mrf.mxu1 }
 0x212   : > { %v2750_v57 = vpop.f32.mrf.mxu3 }
 0x213   : > { %v2751_v54 = vadd.f32 %v2750_v57, %v2722_v34 }
 0x215   : > { %v2764_v28 = vadd.f32 %v2751_v54, %v2300_v40 }
 0x218   : > { %v2726_v5 = vpop.f32.mrf.mxu2  ;;  %v3162_v29 = vpop.f32.mrf.mxu0 }
 0x219   : > { %v2727_v48 = vadd.f32 %v2726_v5, %v5542_v2 }
 0x21a   : > { %v2752_v46 = vpop.f32.mrf.mxu3 }
 0x21b   : > { %v2753_v4 = vadd.f32 %v2752_v46, %v2724_v1 }
 0x21d   : > { %v2765_v3 = vadd.f32 %v2753_v4, %v2301_v37 }
 0x220   : > { %v2728_v9 = vpop.f32.mrf.mxu2  ;;  %v3164_v20 = vpop.f32.mrf.mxu0 }
 0x221   : > { %v2729_v25 = vadd.f32 %v2728_v9, %v2699_v14 }
 0x222   : > { %v2755_v16 = vpop.f32.mrf.mxu3 }
 0x223   : > { %v2756_v13 = vadd.f32 %v2755_v16, %v2727_v48 }
 0x228   : > { %v3176_v15 = vpop.f32.mrf.mxu0  ;;  %v3205_v60 = vpop.f32.mrf.mxu2 }
 0x229   : > { %v3177_v19 = vadd.f32 %v3176_v15, %v5535_v43  ;;  %v3182_v43 = vadd.f32 %v3181_v31, %v3152_v58  ;;  %v3184_v58 = vadd.f32 %v3183_v24, %v5549_v17 }
 0x22a   : > { %v2757_v22 = vpop.f32.mrf.mxu3 }
 0x22b   : > { %v3206_v36 = vadd.f32 %v3205_v60, %v3177_v19  ;;  %v2758_v37 = vadd.f32 %v2757_v22, %v2729_v25 }
 0x22d   : > { %v3225_v44 = vadd.f32 %v3206_v36, %v2760_v47  ;;  %v3192_v47 = vadd.f32 %v3191_v41, %v3162_v29  ;;  %v2767_v35 = vadd.f32 %v2758_v37, %v2303_v45 }
 0x230   : > { %v3178_v18 = vpop.f32.mrf.mxu0  ;;  %v3207_v61 = vpop.f32.mrf.mxu2 }
 0x231   : > { %v3179_v63 = vadd.f32 %v3178_v18, %v3149_v52  ;;  %v3193_v52 = vpop.f32.mrf.mxu1 }
 0x232   : > { %v3220_v30 = vpop.f32.mrf.mxu3  ;;  %v3194_v7 = vadd.f32 %v3193_v52, %v3164_v20 }
 0x233   : > { %v3208_v40 = vadd.f32 %v3207_v61, %v3179_v63  ;;  %v3221_v62 = vadd.f32 %v3220_v30, %v3192_v47 }
 0x235   : > { %v3226_v33 = vadd.f32 %v3208_v40, %v2761_v49  ;;  %v2766_v49 = vadd.f32 %v2756_v13, %v2302_v21  ;;  %v3189_v21 = vadd.f32 %v3188_v0, %v5556_v11 }
 0x237   : > { %v4414_v27 = vpack.c.bf16 %v3226_v33, %v3225_v44  ;;  %v3231_v26 = vadd.f32 %v3221_v62, %v2766_v49 }
 0x238   : > { %v3210_v42 = vpop.f32.mrf.mxu2 }
 0x239   : > { %4415 = vst [vmem:[%s5564_s13] sm:$0xff] %v4414_v27   ;;  %v3211_v59 = vadd.f32 %v3210_v42, %v3182_v43 }
 0x23a   : > { %v3222_v14 = vpop.f32.mrf.mxu3 }
 0x23b   : > { %v3227_v2 = vadd.f32 %v3211_v59, %v2762_v50  ;;  %v3223_v38 = vadd.f32 %v3222_v14, %v3194_v7 }
 0x23d   : > { %v3232_v10 = vadd.f32 %v3223_v38, %v2767_v35 }
 0x23f   : > { %v4429_v51 = vpack.c.bf16 %v3232_v10, %v3231_v26 }
 0x240   : > { %v3212_v31 = vpop.f32.mrf.mxu2 }
 0x241   : > { %v3213_v55 = vadd.f32 %v3212_v31, %v3184_v58  ;;  %4433 = vst [vmem:[%s5564_s13 + $0x18] sm:$0xff] %v4429_v51  }
 0x243   : > { %v3228_v12 = vadd.f32 %v3213_v55, %v2763_v53 }
 0x245   : > { %v4419_v34 = vpack.c.bf16 %v3228_v12, %v3227_v2 }
 0x247   : > { %4431 = vst [vmem:[%s5564_s13 + $0x8] sm:$0xff] %v4419_v34  }
 0x248   : > { %v3215_v23 = vpop.f32.mrf.mxu2 }
 0x249   : > { %v3216_v50 = vadd.f32 %v3215_v23, %v3187_v8 }
 0x24b   : > { %v3229_v6 = vadd.f32 %v3216_v50, %v2764_v28 }
 0x250   : > { %v3217_v45 = vpop.f32.mrf.mxu2 }
 0x251   : > { %v3218_v39 = vadd.f32 %v3217_v45, %v3189_v21 }
 0x253   : > { %v3230_v57 = vadd.f32 %v3218_v39, %v2765_v3 }
 0x255   : > { %v4424_v54 = vpack.c.bf16 %v3230_v57, %v3229_v6 }
 0x257   : > { %4432 = vst [vmem:[%s5564_s13 + $0x10] sm:$0xff] %v4424_v54  }
 0x258 PF: > { %s17_s24 = sadd.s32 1, %s4478_s24  }
 0x259   : > { %p14_p4 = scmp.ge.s32.totalorder %s17_s24, 4  }
 0x25b   :  { %16 = sbr.rel (!%p14_p4) target bundleno = 1 (0x1), region = 89 }

// kernel: resnet_layer_forward.3
= control target key start
LH: loop header
LB: loop body
LE: loop exit
PB: predicated region body
PF: predicated region fallthrough
CT: control target
= control target key end

     0   :  { %s4296_s18 = smov 0   ;;  %s5421_s0 = inlined_call_operand.vmem [shape: bf16[2,1,10,10,128], index: 0, kind: input, shape index: {}]   ;;  %s5422_s1 = inlined_call_operand.vmem [shape: bf16[3,384,128], index: 1, kind: input, shape index: {}]   ;;  %s5423_s2 = inlined_call_operand.vmem [shape: f32[1,128], index: 2, kind: input, shape index: {}]   ;;  %s5424_s3 = inlined_call_operand.vmem [shape: bf16[3,384,128], index: 3, kind: input, shape index: {}]   ;;  %s5425_s4 = inlined_call_operand.vmem [shape: f32[1,128], index: 4, kind: input, shape index: {}]   ;;  %s5426_s5 = inlined_call_operand.vmem [shape: bf16[2,64,128], index: 5, kind: output, shape index: {}]  }
   0x1 LB: > { %s3233_s19 = sadd.s32 4294967295, %s4262_s18   ;;  %p3237_p0 = scmp.ge.s32.totalorder %s4262_s18, 1  ;;  %s4262_s18 = sphi %s4296_s18, %s15_s18  }
   0x2   : > { %p187_p1 = scmp.lt.s32.totalorder %s4262_s18, 3 }
   0x4   : > { %p188_p2 = pnand %p3237_p0, %p187_p1 }
   0x5   : > { %p215_p3 = scmp.lt.s32.totalorder (!%p188_p2), %s3233_s19, 1 }
   0x6   : > { %191 = sbr.rel (%p188_p2) target bundleno = 613 (0x265), region = 40 }
   0xb   : > { %v4067_v0 = vld [vmem:[%s5422_s1 + $0x38] sm:$0xff]  ;;  %v4066_v2 = vld [vmem:[%s5422_s1 + $0x30] sm:$0xff]  ;;  %s5430_s19 = smov (!%p215_p3, %s3233_s19), 1  ;;  %v4065_v4 = vld [vmem:[%s5422_s1 + $0x28] sm:$0xff]  ;;  %vm1627_vm0 = vsmask.f32 3328 }
   0xc   : > { %v4075_v1 = vld [vmem:[%s5422_s1 + $0x78] sm:$0xff]  ;;  %581 = vmatpush.bf16.msra.mxu0 %v4067_v0  ;;  %4227 = vmatpush.bf16.msra.mxu2 %v4067_v0  ;;  %v4074_v3 = vld [vmem:[%s5422_s1 + $0x70] sm:$0xff]  ;;  %s4243_s28 = smul.u32 80, %s5430_s19  ;;  %v4073_v5 = vld [vmem:[%s5422_s1 + $0x68] sm:$0xff]  ;;  %vm1628_vm1 = vsmask.f32 7440 }
   0xd   : > { %610 = vmatpush.bf16.msra.mxu1 %v4075_v1  ;;  %4235 = vmatpush.bf16.msra.mxu3 %v4075_v1  ;;  %v4064_v20 = vld [vmem:[%s5422_s1 + $0x20] sm:$0xff]  ;;  %v4063_v31 = vld [vmem:[%s5422_s1 + $0x18] sm:$0xff]  ;;  %v4062_v35 = vld [vmem:[%s5422_s1 + $0x10] sm:$0xff]  ;;  %s4059_s29 = sshll.u32 %s5430_s19, 5 }
   0xe   : > { %s4328_s10 = scalar_lea.vmem %s5421_s0, %s4243_s28  ;;  %v4072_v24 = vld [vmem:[%s5422_s1 + $0x60] sm:$0xff]  ;;  %v4071_v33 = vld [vmem:[%s5422_s1 + $0x58] sm:$0xff]  ;;  %v4070_v41 = vld [vmem:[%s5422_s1 + $0x50] sm:$0xff]  ;;  %s5382_s7 = scalar_lea.vmem %s5426_s5, %s4059_s29 }
   0xf   : > { %v4331_v6 = vld [vmem:[%s4328_s10] sm:$0xf]  ;;  %v230_v7 = vld [vmem:[%s4328_s10 + $0x4] sm:$0x1]  ;;  %v4335_v8 = vld [vmem:[%s4328_s10 + $0x8] sm:$0xf] }
  0x10   : > { %582 = vmatpush.bf16.msra.mxu0 %v4066_v2  ;;  %4228 = vmatpush.bf16.msra.mxu2 %v4066_v2  ;;  %v232_v9 = vld [vmem:[%s4328_s10 + $0xc] sm:$0x1]  ;;  %v261_v10 = vunpack.c.l.b16 %v4331_v6  ;;  %v262_v11 = vunpack.c.l.b16 %v230_v7  ;;  %v263_v12 = vunpack.c.l.b16 %v4335_v8  ;;  %v4341_v13 = vld [vmem:[%s4328_s10 + $0x20] sm:$0xf]  ;;  %v238_v14 = vld [vmem:[%s4328_s10 + $0x24] sm:$0x1] }
  0x11   : > { %611 = vmatpush.bf16.msra.mxu1 %v4074_v3  ;;  %4236 = vmatpush.bf16.msra.mxu3 %v4074_v3  ;;  %v264_v15 = vunpack.c.l.b16 %v232_v9  ;;  %v4345_v16 = vld [vmem:[%s4328_s10 + $0x28] sm:$0xf]  ;;  %v240_v17 = vld [vmem:[%s4328_s10 + $0x2c] sm:$0x1]  ;;  %v269_v18 = vunpack.c.l.b16 %v4341_v13  ;;  %v270_v19 = vunpack.c.l.b16 %v238_v14  ;;  %v4383_v34 = vld [vmem:[%s4328_s10 + $0x10] sm:$0xf] }
  0x12   : > { %v4354_v21 = vpack.c.b16 %v262_v11, %v261_v10  ;;  %v271_v22 = vunpack.c.l.b16 %v4345_v16  ;;  %v272_v23 = vunpack.c.l.b16 %v240_v17  ;;  %v234_v40 = vld [vmem:[%s4328_s10 + $0x14] sm:$0x1]  ;;  %v4396_v44 = vld [vmem:[%s4328_s10 + $0x18] sm:$0xf]  ;;  %v236_v45 = vld [vmem:[%s4328_s10 + $0x1c] sm:$0x1]  ;;  %v265_v53 = vunpack.c.l.b16 %v4383_v34 }
  0x13   : > { %v4362_v25 = vpack.c.b16 %v264_v15, %v263_v12  ;;  %v4366_v26 = vpack.c.b16 %v270_v19, %v269_v18  ;;  %v4401_v48 = vld [vmem:[%s4328_s10 + $0x30] sm:$0xf]  ;;  %v242_v49 = vld [vmem:[%s4328_s10 + $0x34] sm:$0x1]  ;;  %v4405_v50 = vld [vmem:[%s4328_s10 + $0x38] sm:$0xf]  ;;  %v266_v54 = vunpack.c.l.b16 %v234_v40  ;;  %v267_v55 = vunpack.c.l.b16 %v4396_v44 }
  0x14   : > { %583 = vmatpush.bf16.msra.mxu0 %v4065_v4  ;;  %4229 = vmatpush.bf16.msra.mxu2 %v4065_v4  ;;  %v4370_v27 = vpack.c.b16 %v272_v23, %v271_v22  ;;  %v288_v28 = vshll.u32 %v4354_v21, 16  ;;  %v286_v36 = vshrl.u32 %v4354_v21, 16  ;;  %v244_v51 = vld [vmem:[%s4328_s10 + $0x3c] sm:$0x1]  ;;  %v268_v58 = vunpack.c.l.b16 %v236_v45  ;;  %v4061_v60 = vld [vmem:[%s5422_s1 + $0x8] sm:$0xff]  ;;  %v4060_v7 = vld [vmem:[%s5422_s1] sm:$0xff] }
  0x15   : > { %612 = vmatpush.bf16.msra.mxu1 %v4073_v5  ;;  %4237 = vmatpush.bf16.msra.mxu3 %v4073_v5  ;;  %v295_v29 = vshll.u32 %v4362_v25, 16  ;;  %v316_v30 = vshll.u32 %v4366_v26, 16  ;;  %v293_v38 = vshrl.u32 %v4362_v25, 16  ;;  %v314_v39 = vshrl.u32 %v4366_v26, 16  ;;  %v4069_v1 = vld [vmem:[%s5422_s1 + $0x48] sm:$0xff]  ;;  %v4068_v17 = vld [vmem:[%s5422_s1 + $0x40] sm:$0xff]  ;;  %vm5300_vm2 = vmor %vm1627_vm0, %vm1628_vm1 }
  0x16   : > { %v323_v32 = vshll.u32 %v4370_v27, 16  ;;  %v290_v37 = vrot.slane %v288_v28, 1  ;;  %v321_v46 = vshrl.u32 %v4370_v27, 16  ;;  %v273_v59 = vunpack.c.l.b16 %v4401_v48  ;;  %v4083_v19 = vld [vmem:[%s5422_s1 + $0xb8] sm:$0xff]  ;;  %v4090_v13 = vld [vmem:[%s5422_s1 + $0xf0] sm:$0xff] }
  0x17   : > { %v297_v42 = vrot.slane %v295_v29, 1  ;;  %v318_v43 = vrot.slane %v316_v30, 1  ;;  %v274_v62 = vunpack.c.l.b16 %v242_v49  ;;  %v275_v63 = vunpack.c.l.b16 %v4405_v50  ;;  %v4099_v8 = vld [vmem:[%s5422_s1 + $0x138] sm:$0xff]  ;;  %v4471_v16 = vld [vmem:[%s4328_s10 + $0x8] sm:$0xf]  ;;  %v4078_v48 = vld [vmem:[%s5422_s1 + $0x90] sm:$0xff] }
  0x18   : > { %584 = vmatpush.bf16.msra.mxu0 %v4064_v20  ;;  %4230 = vmatpush.bf16.msra.mxu2 %v4064_v20  ;;  %v325_v47 = vrot.slane %v323_v32, 1  ;;  %v291_v52 = vor.u32 %v290_v37, %v286_v36  ;;  %v276_v0 = vunpack.c.l.b16 %v244_v51  ;;  %v4420_v4 = vpack.c.b16 %v266_v54, %v265_v53  ;;  %v4091_v20 = vld [vmem:[%s5422_s1 + $0xf8] sm:$0xff]  ;;  %v3338_v36 = vld [vmem:[%s4328_s10 + $0xc] sm:$0x1]  ;;  %v3340_v45 = vld [vmem:[%s4328_s10 + $0x14] sm:$0x1] }
  0x19   : > { %613 = vmatpush.bf16.msra.mxu1 %v4072_v24  ;;  %4238 = vmatpush.bf16.msra.mxu3 %v4072_v24  ;;  %v298_v56 = vor.u32 %v297_v42, %v293_v38  ;;  %v319_v57 = vor.u32 %v318_v43, %v314_v39  ;;  %v4424_v5 = vpack.c.b16 %v268_v58, %v267_v55  ;;  %v4098_v42 = vld [vmem:[%s5422_s1 + $0x130] sm:$0xff]  ;;  %v709_v51 = vunpack.c.l.b16 %v4471_v16  ;;  %v4095_v34 = vld [vmem:[%s5422_s1 + $0x118] sm:$0xff] }
  0x1a   : > { %v326_v61 = vor.u32 %v325_v47, %v321_v46  ;;  %v349_v2 = vunpack.c.l.b16 %v291_v52  ;;  %v4431_v14 = vpack.c.b16 %v274_v62, %v273_v59  ;;  %v4435_v15 = vpack.c.b16 %v276_v0, %v275_v63  ;;  %v4106_v43 = vld [vmem:[%s5422_s1 + $0x170] sm:$0xff]  ;;  %v4081_v46 = vld [vmem:[%s5422_s1 + $0xa8] sm:$0xff]  ;;  %v4080_v0 = vld [vmem:[%s5422_s1 + $0xa0] sm:$0xff] }
  0x1b   : > { %v351_v3 = vunpack.c.l.b16 %v298_v56  ;;  %v357_v9 = vunpack.c.l.b16 %v319_v57  ;;  %v413_v23 = vpack.c.b16 %v263_v12, %v261_v10  ;;  %v419_v24 = vpack.c.b16 %v271_v22, %v269_v18  ;;  %v4107_v10 = vld [vmem:[%s5422_s1 + $0x178] sm:$0xff]  ;;  %v4082_v12 = vld [vmem:[%s5422_s1 + $0xb0] sm:$0xff]  ;;  %v4089_v47 = vld [vmem:[%s5422_s1 + $0xe8] sm:$0xff] }
  0x1c   : > { %585 = vmatpush.bf16.msra.mxu0 %v4063_v31  ;;  %4231 = vmatpush.bf16.msra.mxu2 %v4063_v31  ;;  %v359_v11 = vunpack.c.l.b16 %v326_v61  ;;  %v302_v29 = vshll.u32 %v4420_v4, 16  ;;  %v309_v31 = vshll.u32 %v4424_v5, 16  ;;  %v330_v32 = vshll.u32 %v4431_v14, 16  ;;  %v4097_v61 = vld [vmem:[%s5422_s1 + $0x128] sm:$0xff]  ;;  %v4103_v44 = vld [vmem:[%s5422_s1 + $0x158] sm:$0xff]  ;;  %v4086_v50 = vld [vmem:[%s5422_s1 + $0xd0] sm:$0xff] }
  0x1d   : > { %614 = vmatpush.bf16.msra.mxu1 %v4071_v33  ;;  %4239 = vmatpush.bf16.msra.mxu3 %v4071_v33  ;;  %v414_v28 = vpack.c.b16 %v351_v3, %v349_v2  ;;  %v337_v6 = vshll.u32 %v4435_v15, 16  ;;  %v300_v18 = vshrl.u32 %v4420_v4, 16  ;;  %v307_v33 = vshrl.u32 %v4424_v5, 16  ;;  %v4105_v62 = vld [vmem:[%s5422_s1 + $0x168] sm:$0xff] }
  0x1e   : > { %v420_v30 = vpack.c.b16 %v359_v11, %v357_v9  ;;  %v304_v22 = vrot.slane %v302_v29, 1  ;;  %v311_v37 = vrot.slane %v309_v31, 1  ;;  %v332_v38 = vrot.slane %v330_v32, 1 }
  0x1f   : > { %v335_v39 = vshrl.u32 %v4435_v15, 16  ;;  %v339_v40 = vrot.slane %v337_v6, 1  ;;  %v710_v52 = vunpack.c.l.b16 %v3338_v36  ;;  %v422_v29 = vpack.c.b16 %v275_v63, %v273_v59  ;;  %v4553_v59 = vld [vmem:[%s4328_s10 + $0x18] sm:$0xf]  ;;  %v3342_v63 = vld [vmem:[%s4328_s10 + $0x1c] sm:$0x1] }
  0x20   : > { %586 = vmatpush.bf16.msra.mxu0 %v4062_v35  ;;  %4232 = vmatpush.bf16.msra.mxu2 %v4062_v35  ;;  %v328_v35 = vshrl.u32 %v4431_v14, 16  ;;  %v305_v49 = vor.u32 %v304_v22, %v300_v18  ;;  %v312_v56 = vor.u32 %v311_v37, %v307_v33  ;;  %v4094_v18 = vld [vmem:[%s5422_s1 + $0x110] sm:$0xff]  ;;  %v345_v33 = vrot.slane %v4366_v26, 1  ;;  %v4077_v36 = vld [vmem:[%s5422_s1 + $0x88] sm:$0xff] }
  0x21   : > { %615 = vmatpush.bf16.msra.mxu1 %v4070_v41  ;;  %4240 = vmatpush.bf16.msra.mxu3 %v4070_v41  ;;  %v4479_v41 = vld [vmem:[%s4328_s10 + $0x10] sm:$0xf]  ;;  %v340_v58 = vor.u32 %v339_v40, %v335_v39  ;;  %v4510_v3 = vpack.c.b16 %v710_v52, %v709_v51  ;;  %v4085_v37 = vld [vmem:[%s5422_s1 + $0xc8] sm:$0xff]  ;;  %v342_v39 = vrot.slane %v4362_v25, 1  ;;  %v713_v40 = vunpack.c.l.b16 %v4553_v59  ;;  %v3350_v59 = vld [vmem:[%s4328_s10 + $0x3c] sm:$0x1] }
  0x22   : > { %v711_v54 = vunpack.c.l.b16 %v4479_v41  ;;  %v333_v57 = vor.u32 %v332_v38, %v328_v35  ;;  %v353_v2 = vunpack.c.l.b16 %v305_v49  ;;  %v4102_v22 = vld [vmem:[%s5422_s1 + $0x150] sm:$0xff]  ;;  %v346_v35 = vrot.slane %v4370_v27, 1  ;;  %v4093_v49 = vld [vmem:[%s5422_s1 + $0x108] sm:$0xff] }
  0x23   : > { %v363_v11 = vunpack.c.l.b16 %v340_v58  ;;  %v736_v32 = vshll.u32 %v4510_v3, 16  ;;  %v341_v38 = vrot.slane %v4354_v21, 1  ;;  %v4101_v21 = vld [vmem:[%s5422_s1 + $0x148] sm:$0xff]  ;;  %v789_v25 = vrot.slane %v4510_v3, 1  ;;  %v4084_v58 = vld [vmem:[%s5422_s1 + $0xc0] sm:$0xff] }
  0x24   : > { %587 = vmatpush.bf16.msra.mxu0 %v4061_v60  ;;  %4233 = vmatpush.bf16.msra.mxu2 %v4061_v60  ;;  %v712_v60 = vunpack.c.l.b16 %v3340_v45  ;;  %v361_v9 = vunpack.c.l.b16 %v333_v57  ;;  %v4580_v45 = vunpack.c.l.b16 %v346_v35  ;;  %v4076_v57 = vld [vmem:[%s5422_s1 + $0x80] sm:$0xff] }
  0x25   : > { %616 = vmatpush.bf16.msra.mxu1 %v4069_v1  ;;  %4241 = vmatpush.bf16.msra.mxu3 %v4069_v1  ;;  %v4088_v1 = vld [vmem:[%s5422_s1 + $0xe0] sm:$0xff] }
  0x26   : > { %v423_v31 = vpack.c.b16 %v363_v11, %v361_v9  ;;  %v4092_v9 = vld [vmem:[%s5422_s1 + $0x100] sm:$0xff] }
  0x27   : > { %v4100_v11 = vld [vmem:[%s5422_s1 + $0x140] sm:$0xff] }
  0x28   : > { %588 = vmatpush.bf16.msra.mxu0 %v4060_v7  ;;  %4234 = vmatpush.bf16.msra.mxu2 %v4060_v7  ;;  %v355_v7 = vunpack.c.l.b16 %v312_v56 }
  0x29   : > { %617 = vmatpush.bf16.msra.mxu1 %v4068_v17  ;;  %4242 = vmatpush.bf16.msra.mxu3 %v4068_v17  ;;  %v4514_v17 = vpack.c.b16 %v712_v60, %v711_v54  ;;  %v350_v60 = vunpack.c.l.b16 %v341_v38 }
  0x2b   : > { %589 = vmatmul.bf16.vlgmr.msra.gmra.mxu0 %v413_v23  ;;  %599 = vmatmul.bf16.vlgmr.msra.gmra.mxu2 %v419_v24  ;;  %v4079_v23 = vld [vmem:[%s5422_s1 + $0x98] sm:$0xff]  ;;  %v743_v6 = vshll.u32 %v4514_v17, 16  ;;  %v790_v52 = vrot.slane %v4514_v17, 1 }
  0x2c   : > { %639 = vmatpush.bf16.msrb.mxu2 %v4083_v19  ;;  %618 = vmatmul.bf16.vlgmr.msra.gmra.mxu1 %v414_v28  ;;  %v4096_v19 = vld [vmem:[%s5422_s1 + $0x120] sm:$0xff]  ;;  %v4087_v24 = vld [vmem:[%s5422_s1 + $0xd8] sm:$0xff]  ;;  %v416_v28 = vpack.c.b16 %v267_v55, %v265_v53  ;;  %v734_v53 = vshrl.u32 %v4510_v3, 16  ;;  %v741_v55 = vshrl.u32 %v4514_v17, 16  ;;  %v798_v17 = vunpack.c.l.b16 %v789_v25 }
  0x2d   : > { %1030 = vmatpush.bf16.msrb.mxu3 %v4091_v20  ;;  %1059 = vmatpush.bf16.msrb.mxu0 %v4099_v8  ;;  %v4104_v20 = vld [vmem:[%s5422_s1 + $0x160] sm:$0xff]  ;;  %v738_v8 = vrot.slane %v736_v32, 1  ;;  %v4119_v25 = vld [vmem:[%s5422_s1 + $0x1d8] sm:$0xff] }
  0x2e   : > { %628 = vmatmul.bf16.vlgmr.msra.gmra.mxu3 %v420_v30  ;;  %1088 = vmatpush.bf16.msrb.mxu1 %v4107_v10  ;;  %v417_v30 = vpack.c.b16 %v355_v7, %v353_v2  ;;  %v745_v10 = vrot.slane %v743_v6, 1  ;;  %v4114_v6 = vld [vmem:[%s5422_s1 + $0x1b0] sm:$0xff] }
  0x30   : > { %640 = vmatpush.bf16.msrb.mxu2 %v4082_v12  ;;  %v4557_v12 = vld [vmem:[%s4328_s10 + $0x20] sm:$0xf] }
  0x31   : > { %1031 = vmatpush.bf16.msrb.mxu3 %v4090_v13  ;;  %1060 = vmatpush.bf16.msrb.mxu0 %v4098_v42  ;;  %v3344_v13 = vld [vmem:[%s4328_s10 + $0x24] sm:$0x1]  ;;  %v714_v42 = vunpack.c.l.b16 %v3342_v63  ;;  %v715_v26 = vunpack.c.l.b16 %v4557_v12  ;;  %v3348_v63 = vld [vmem:[%s4328_s10 + $0x34] sm:$0x1]  ;;  %v4706_v12 = vld [vmem:[%s4328_s10 + $0x40] sm:$0xf] }
  0x32   : > { %1089 = vmatpush.bf16.msrb.mxu1 %v4106_v43  ;;  %v716_v27 = vunpack.c.l.b16 %v3344_v13  ;;  %v4578_v43 = vunpack.c.l.b16 %v345_v33  ;;  %v343_v13 = vrot.slane %v4420_v4, 1  ;;  %v720_v38 = vunpack.c.l.b16 %v3348_v63 }
  0x34   : > { %641 = vmatpush.bf16.msrb.mxu2 %v4081_v46  ;;  %v739_v46 = vor.u32 %v738_v8, %v734_v53  ;;  %v421_v56 = vpack.c.b16 %v4580_v45, %v4578_v43  ;;  %v4610_v2 = vpack.c.b16 %v716_v27, %v715_v26  ;;  %v3346_v53 = vld [vmem:[%s4328_s10 + $0x2c] sm:$0x1]  ;;  %v347_v8 = vrot.slane %v4431_v14, 1  ;;  %v4112_v27 = vld [vmem:[%s5422_s1 + $0x1a0] sm:$0xff] }
  0x35   : > { %1032 = vmatpush.bf16.msrb.mxu3 %v4089_v47  ;;  %1061 = vmatpush.bf16.msrb.mxu0 %v4097_v61  ;;  %v746_v47 = vor.u32 %v745_v10, %v741_v55  ;;  %v352_v61 = vunpack.c.l.b16 %v342_v39  ;;  %v4649_v55 = vld [vmem:[%s4328_s10 + $0x30] sm:$0xf]  ;;  %v348_v10 = vrot.slane %v4435_v15, 1  ;;  %v718_v15 = vunpack.c.l.b16 %v3346_v53 }
  0x36   : > { %1090 = vmatpush.bf16.msrb.mxu1 %v4105_v62  ;;  %v4115_v62 = vld [vmem:[%s5422_s1 + $0x1b8] sm:$0xff]  ;;  %v797_v3 = vunpack.c.l.b16 %v739_v46 }
  0x37   : > { %v799_v7 = vunpack.c.l.b16 %v746_v47  ;;  %v4664_v14 = vunpack.c.l.b16 %v348_v10  ;;  %v4128_v47 = vld [vmem:[%s5422_s1 + $0x220] sm:$0xff] }
  0x38   : > { %642 = vmatpush.bf16.msrb.mxu2 %v4080_v0  ;;  %v4123_v0 = vld [vmem:[%s5422_s1 + $0x1f8] sm:$0xff]  ;;  %v4124_v10 = vld [vmem:[%s5422_s1 + $0x200] sm:$0xff] }
  0x39   : > { %1033 = vmatpush.bf16.msrb.mxu3 %v4088_v1  ;;  %1062 = vmatpush.bf16.msrb.mxu0 %v4096_v19  ;;  %v4606_v1 = vpack.c.b16 %v714_v42, %v713_v40  ;;  %v800_v19 = vunpack.c.l.b16 %v790_v52  ;;  %v792_v42 = vrot.slane %v4610_v2, 1 }
  0x3a   : > { %1091 = vmatpush.bf16.msrb.mxu1 %v4104_v20  ;;  %v4131_v20 = vld [vmem:[%s5422_s1 + $0x238] sm:$0xff] }
  0x3b   : > { %594 = vmatmul.bf16.gmra.mxu0 %v416_v28  ;;  %604 = vmatmul.bf16.gmra.mxu2 %v422_v29  ;;  %v750_v28 = vshll.u32 %v4606_v1, 16  ;;  %v757_v29 = vshll.u32 %v4610_v2, 16  ;;  %v864_v32 = vpack.c.b16 %v800_v19, %v798_v17  ;;  %v748_v16 = vshrl.u32 %v4606_v1, 16 }
  0x3c   : > { %643 = vmatpush.bf16.msrb.mxu2 %v4079_v23  ;;  %623 = vmatmul.bf16.gmra.mxu1 %v417_v30  ;;  %v415_v23 = vpack.c.b16 %v352_v61, %v350_v60  ;;  %v862_v30 = vpack.c.b16 %v711_v54, %v709_v51  ;;  %v755_v51 = vshrl.u32 %v4610_v2, 16  ;;  %v791_v39 = vrot.slane %v4606_v1, 1  ;;  %v4127_v1 = vld [vmem:[%s5422_s1 + $0x218] sm:$0xff] }
  0x3d   : > { %1034 = vmatpush.bf16.msrb.mxu3 %v4087_v24  ;;  %1063 = vmatpush.bf16.msrb.mxu0 %v4095_v34  ;;  %v4122_v24 = vld [vmem:[%s5422_s1 + $0x1f0] sm:$0xff]  ;;  %v752_v41 = vrot.slane %v750_v28, 1  ;;  %v759_v54 = vrot.slane %v757_v29, 1  ;;  %v4702_v28 = vld [vmem:[%s4328_s10 + $0x38] sm:$0xf] }
  0x3e   : > { %633 = vmatmul.bf16.gmra.mxu3 %v423_v31  ;;  %1092 = vmatpush.bf16.msrb.mxu1 %v4103_v44  ;;  %v863_v31 = vpack.c.b16 %v799_v7, %v797_v3  ;;  %v4130_v34 = vld [vmem:[%s5422_s1 + $0x230] sm:$0xff]  ;;  %v4121_v44 = vld [vmem:[%s5422_s1 + $0x1e8] sm:$0xff]  ;;  %v802_v61 = vunpack.c.l.b16 %v791_v39  ;;  %v865_v7 = vpack.c.b16 %v715_v26, %v713_v40  ;;  %v3352_v29 = vld [vmem:[%s4328_s10 + $0x44] sm:$0x1] }
  0x3f   : > { %v753_v33 = vor.u32 %v752_v41, %v748_v16  ;;  %v760_v35 = vor.u32 %v759_v54, %v755_v51  ;;  %v4118_v3 = vld [vmem:[%s5422_s1 + $0x1d0] sm:$0xff]  ;;  %v722_v16 = vunpack.c.l.b16 %v3350_v59  ;;  %v723_v41 = vunpack.c.l.b16 %v4706_v12  ;;  %v4116_v54 = vld [vmem:[%s5422_s1 + $0x1c0] sm:$0xff] }
  0x40   : > { %644 = vmatpush.bf16.msrb.mxu2 %v4078_v48  ;;  %v4113_v48 = vld [vmem:[%s5422_s1 + $0x1a8] sm:$0xff]  ;;  %v724_v51 = vunpack.c.l.b16 %v3352_v29  ;;  %v3501_v12 = vld [vmem:[%s4328_s10 + $0x20] sm:$0xf] }
  0x41   : > { %1035 = vmatpush.bf16.msrb.mxu3 %v4086_v50  ;;  %1064 = vmatpush.bf16.msrb.mxu0 %v4094_v18  ;;  %v4645_v50 = vld [vmem:[%s4328_s10 + $0x28] sm:$0xf]  ;;  %v344_v18 = vrot.slane %v4424_v5, 1  ;;  %v719_v5 = vunpack.c.l.b16 %v4649_v55  ;;  %v801_v52 = vunpack.c.l.b16 %v753_v33  ;;  %v3504_v29 = vld [vmem:[%s4328_s10 + $0x2c] sm:$0x1] }
  0x42   : > { %1093 = vmatpush.bf16.msrb.mxu1 %v4102_v22  ;;  %v4129_v22 = vld [vmem:[%s5422_s1 + $0x228] sm:$0xff]  ;;  %v717_v4 = vunpack.c.l.b16 %v4645_v50 }
  0x43   : > { %v730_v60 = vpack.c.b16 %v720_v38, %v719_v5 }
  0x44   : > { %645 = vmatpush.bf16.msrb.mxu2 %v4077_v36  ;;  %v4120_v36 = vld [vmem:[%s5422_s1 + $0x1e0] sm:$0xff]  ;;  %v868_v39 = vpack.c.b16 %v719_v5, %v717_v4 }
  0x45   : > { %1036 = vmatpush.bf16.msrb.mxu3 %v4085_v37  ;;  %1065 = vmatpush.bf16.msrb.mxu0 %v4093_v49  ;;  %v4662_v37 = vunpack.c.l.b16 %v347_v8  ;;  %v354_v49 = vunpack.c.l.b16 %v343_v13  ;;  %v771_v17 = vshll.u32 %v730_v60, 16  ;;  %v794_v63 = vrot.slane %v730_v60, 1  ;;  %v4108_v8 = vld [vmem:[%s5422_s1 + $0x180] sm:$0xff] }
  0x46   : > { %1094 = vmatpush.bf16.msrb.mxu1 %v4101_v21  ;;  %v356_v21 = vunpack.c.l.b16 %v344_v18  ;;  %v732_v18 = vpack.c.b16 %v724_v51, %v723_v41 }
  0x47   : > { %v424_v46 = vpack.c.b16 %v4664_v14, %v4662_v37  ;;  %v773_v26 = vrot.slane %v771_v17, 1 }
  0x48   : > { %646 = vmatpush.bf16.msrb.mxu2 %v4076_v57  ;;  %v803_v57 = vunpack.c.l.b16 %v760_v35  ;;  %v418_v2 = vpack.c.b16 %v356_v21, %v354_v49  ;;  %v785_v38 = vshll.u32 %v732_v18, 16  ;;  %v783_v21 = vshrl.u32 %v732_v18, 16 }
  0x49   : > { %1037 = vmatpush.bf16.msrb.mxu3 %v4084_v58  ;;  %1066 = vmatpush.bf16.msrb.mxu0 %v4092_v9  ;;  %v729_v58 = vpack.c.b16 %v718_v15, %v717_v4  ;;  %v796_v43 = vrot.slane %v732_v18, 1 }
  0x4a   : > { %1095 = vmatpush.bf16.msrb.mxu1 %v4100_v11  ;;  %v866_v9 = vpack.c.b16 %v803_v57, %v801_v52  ;;  %v3497_v52 = vld [vmem:[%s4328_s10 + $0x10] sm:$0xf]  ;;  %v3498_v57 = vld [vmem:[%s4328_s10 + $0x14] sm:$0x1] }
  0x4b   : > { %647 = vmatmul.bf16.vlgmr.msrb.gmra.mxu2 %v415_v23  ;;  %v764_v11 = vshll.u32 %v729_v58, 16  ;;  %v762_v23 = vshrl.u32 %v729_v58, 16  ;;  %v793_v53 = vrot.slane %v729_v58, 1  ;;  %v3499_v58 = vld [vmem:[%s4328_s10 + $0x18] sm:$0xf]  ;;  %v1158_v50 = vunpack.c.l.b16 %v3497_v52 }
  0x4c   : > { %1479 = vmatpush.bf16.msra.mxu2 %v4115_v62  ;;  %1067 = vmatmul.bf16.vlgmr.msrb.gmra.mxu0 %v863_v31  ;;  %v804_v62 = vunpack.c.l.b16 %v792_v42  ;;  %v4126_v31 = vld [vmem:[%s5422_s1 + $0x210] sm:$0xff]  ;;  %v1159_v55 = vunpack.c.l.b16 %v3498_v57  ;;  %v1160_v4 = vunpack.c.l.b16 %v3499_v58 }
  0x4d   : > { %1508 = vmatpush.bf16.msra.mxu3 %v4123_v0  ;;  %1537 = vmatpush.bf16.msra.mxu0 %v4131_v20  ;;  %v4111_v0 = vld [vmem:[%s5422_s1 + $0x198] sm:$0xff]  ;;  %v4110_v20 = vld [vmem:[%s5422_s1 + $0x190] sm:$0xff]  ;;  %v766_v40 = vrot.slane %v764_v11, 1  ;;  %v806_v35 = vunpack.c.l.b16 %v793_v53 }
  0x4e   : > { %1038 = vmatmul.bf16.vlgmr.msrb.gmra.mxu3 %v862_v30  ;;  %1096 = vmatmul.bf16.vlgmr.msrb.gmra.mxu1 %v864_v32  ;;  %v867_v19 = vpack.c.b16 %v804_v62, %v802_v61  ;;  %v4117_v30 = vld [vmem:[%s5422_s1 + $0x1c8] sm:$0xff]  ;;  %v1174_v45 = vpack.c.b16 %v1159_v55, %v1158_v50  ;;  %v1311_v53 = vpack.c.b16 %v1160_v4, %v1158_v50 }
  0x4f   : > { %v4109_v32 = vld [vmem:[%s5422_s1 + $0x188] sm:$0xff] }
  0x50   : > { %1480 = vmatpush.bf16.msra.mxu2 %v4114_v6  ;;  %v4125_v6 = vld [vmem:[%s5422_s1 + $0x208] sm:$0xff] }
  0x51   : > { %1509 = vmatpush.bf16.msra.mxu3 %v4122_v24  ;;  %1538 = vmatpush.bf16.msra.mxu0 %v4130_v34  ;;  %v769_v24 = vshrl.u32 %v730_v60, 16  ;;  %v721_v34 = vunpack.c.l.b16 %v4702_v28  ;;  %v3500_v60 = vld [vmem:[%s4328_s10 + $0x1c] sm:$0x1] }
  0x52   : > { %v1161_v5 = vunpack.c.l.b16 %v3500_v60 }
  0x53   : > { %v731_v13 = vpack.c.b16 %v722_v16, %v721_v34  ;;  %v871_v17 = vpack.c.b16 %v723_v41, %v721_v34  ;;  %v1238_v41 = vrot.slane %v1174_v45, 1 }
  0x54   : > { %1481 = vmatpush.bf16.msra.mxu2 %v4113_v48  ;;  %v774_v48 = vor.u32 %v773_v26, %v769_v24  ;;  %v3503_v26 = vld [vmem:[%s4328_s10 + $0x28] sm:$0xf] }
  0x55   : > { %1510 = vmatpush.bf16.msra.mxu3 %v4121_v44  ;;  %1539 = vmatpush.bf16.msra.mxu0 %v4129_v22  ;;  %v767_v44 = vor.u32 %v766_v40, %v762_v23  ;;  %v778_v15 = vshll.u32 %v731_v13, 16  ;;  %v1183_v23 = vshrl.u32 %v1174_v45, 16  ;;  %v3502_v40 = vld [vmem:[%s4328_s10 + $0x24] sm:$0x1] }
  0x56   : > { %v807_v33 = vunpack.c.l.b16 %v774_v48 }
  0x57   : > { %v805_v22 = vunpack.c.l.b16 %v767_v44  ;;  %v780_v49 = vrot.slane %v778_v15, 1  ;;  %v1247_v44 = vunpack.c.l.b16 %v1238_v41  ;;  %v3506_v15 = vld [vmem:[%s4328_s10 + $0x34] sm:$0x1] }
  0x58   : > { %1482 = vmatpush.bf16.msra.mxu2 %v4112_v27 }
  0x59   : > { %1511 = vmatpush.bf16.msra.mxu3 %v4120_v36  ;;  %1540 = vmatpush.bf16.msra.mxu0 %v4128_v47  ;;  %v808_v36 = vunpack.c.l.b16 %v794_v63  ;;  %v869_v42 = vpack.c.b16 %v807_v33, %v805_v22  ;;  %v776_v47 = vshrl.u32 %v731_v13, 16 }
  0x5b   : > { %652 = vmatmul.bf16.gmra.mxu2 %v418_v2  ;;  %v870_v27 = vpack.c.b16 %v808_v36, %v806_v35  ;;  %v781_v61 = vor.u32 %v780_v49, %v776_v47  ;;  %v3505_v36 = vld [vmem:[%s4328_s10 + $0x30] sm:$0xf]  ;;  %v1167_v49 = vunpack.c.l.b16 %v3506_v15 }
  0x5c   : > { %1483 = vmatpush.bf16.msra.mxu2 %v4111_v0  ;;  %1072 = vmatmul.bf16.gmra.mxu0 %v866_v9  ;;  %v795_v0 = vrot.slane %v731_v13, 1  ;;  %v1185_v9 = vshll.u32 %v1174_v45, 16  ;;  %v1166_v47 = vunpack.c.l.b16 %v3505_v36 }
  0x5d   : > { %1512 = vmatpush.bf16.msra.mxu3 %v4119_v25  ;;  %1541 = vmatpush.bf16.msra.mxu0 %v4127_v1  ;;  %v787_v25 = vrot.slane %v785_v38, 1  ;;  %v809_v1 = vunpack.c.l.b16 %v781_v61  ;;  %v3507_v38 = vld [vmem:[%s4328_s10 + $0x38] sm:$0xf] }
  0x5e   : > { %1043 = vmatmul.bf16.gmra.mxu3 %v865_v7  ;;  %1101 = vmatmul.bf16.gmra.mxu1 %v867_v19  ;;  %v812_v7 = vunpack.c.l.b16 %v796_v43  ;;  %v1187_v24 = vrot.slane %v1185_v9, 1  ;;  %v1168_v52 = vunpack.c.l.b16 %v3507_v38  ;;  %v1178_v60 = vpack.c.b16 %v1167_v49, %v1166_v47  ;;  %v3510_v9 = vld [vmem:[%s4328_s10 + $0x44] sm:$0x1] }
  0x5f   : > { %v788_v62 = vor.u32 %v787_v25, %v783_v21 }
  0x60   : > { %1484 = vmatpush.bf16.msra.mxu2 %v4110_v20  ;;  %v1188_v34 = vor.u32 %v1187_v24, %v1183_v23  ;;  %v1171_v24 = vunpack.c.l.b16 %v3510_v9 }
  0x61   : > { %1513 = vmatpush.bf16.msra.mxu3 %v4118_v3  ;;  %1542 = vmatpush.bf16.msra.mxu0 %v4126_v31  ;;  %v811_v2 = vunpack.c.l.b16 %v788_v62  ;;  %v810_v3 = vunpack.c.l.b16 %v795_v0  ;;  %v1163_v31 = vunpack.c.l.b16 %v3502_v40  ;;  %v1213_v62 = vshll.u32 %v1178_v60, 16 }
  0x62   : > { %v1246_v51 = vunpack.c.l.b16 %v1188_v34  ;;  %v1317_v34 = vpack.c.b16 %v1168_v52, %v1166_v47 }
  0x63   : > { %v872_v19 = vpack.c.b16 %v811_v2, %v809_v1  ;;  %v873_v20 = vpack.c.b16 %v812_v7, %v810_v3  ;;  %v1215_v1 = vrot.slane %v1213_v62, 1  ;;  %v3509_v7 = vld [vmem:[%s4328_s10 + $0x40] sm:$0xf] }
  0x64   : > { %1485 = vmatpush.bf16.msra.mxu2 %v4109_v32  ;;  %v1164_v32 = vunpack.c.l.b16 %v3503_v26  ;;  %v1170_v23 = vunpack.c.l.b16 %v3509_v7 }
  0x65   : > { %1514 = vmatpush.bf16.msra.mxu3 %v4117_v30  ;;  %1543 = vmatpush.bf16.msra.mxu0 %v4125_v6  ;;  %v1162_v30 = vunpack.c.l.b16 %v3501_v12  ;;  %v1165_v6 = vunpack.c.l.b16 %v3504_v29 }
  0x66   : > { %v1180_v29 = vpack.c.b16 %v1171_v24, %v1170_v23 }
  0x67   : > { %v1176_v14 = vpack.c.b16 %v1163_v31, %v1162_v30  ;;  %v1314_v61 = vpack.c.b16 %v1164_v32, %v1162_v30 }
  0x68   : > { %1486 = vmatpush.bf16.msra.mxu2 %v4108_v8 }
  0x69   : > { %1515 = vmatpush.bf16.msra.mxu3 %v4116_v54  ;;  %1544 = vmatpush.bf16.msra.mxu0 %v4124_v10  ;;  %v1199_v63 = vshll.u32 %v1176_v14, 16  ;;  %v1197_v18 = vshrl.u32 %v1176_v14, 16  ;;  %v1240_v21 = vrot.slane %v1176_v14, 1 }
  0x6b   : > { %657 = vmatmul.bf16.gmra.mxu2 %v421_v56  ;;  %v1175_v56 = vpack.c.b16 %v1161_v5, %v1160_v4  ;;  %v1201_v22 = vrot.slane %v1199_v63, 1  ;;  %v1251_v55 = vunpack.c.l.b16 %v1240_v21 }
  0x6c   : > { %1077 = vmatmul.bf16.gmra.mxu0 %v869_v42 }
  0x6d   : > { %v1192_v11 = vshll.u32 %v1175_v56, 16  ;;  %v1190_v28 = vshrl.u32 %v1175_v56, 16  ;;  %v1239_v37 = vrot.slane %v1175_v56, 1  ;;  %v1202_v42 = vor.u32 %v1201_v22, %v1197_v18 }
  0x6e   : > { %1048 = vmatmul.bf16.gmra.mxu3 %v868_v39  ;;  %1106 = vmatmul.bf16.gmra.mxu1 %v870_v27  ;;  %v3508_v39 = vld [vmem:[%s4328_s10 + $0x3c] sm:$0x1]  ;;  %v1211_v56 = vshrl.u32 %v1178_v60, 16  ;;  %v1244_v22 = vrot.slane %v1180_v29, 1 }
  0x6f   : > { %v1194_v59 = vrot.slane %v1192_v11, 1  ;;  %v1249_v48 = vunpack.c.l.b16 %v1239_v37  ;;  %v1169_v57 = vunpack.c.l.b16 %v3508_v39  ;;  %v1250_v58 = vunpack.c.l.b16 %v1202_v42  ;;  %v3511_v11 = vld [vmem:[%s4328_s10 + $0x48] sm:$0xf] }
  0x70   : > { %v1172_v12 = vunpack.c.l.b16 %v3511_v11  ;;  %v1259_v15 = vunpack.c.l.b16 %v1244_v22  ;;  %v4144_v22 = vld [vmem:[%s5424_s3 + $0x60] sm:$0xff] }
  0x71   : > { %v1195_v16 = vor.u32 %v1194_v59, %v1190_v28  ;;  %v1313_v13 = vpack.c.b16 %v1249_v48, %v1247_v44  ;;  %v1179_v5 = vpack.c.b16 %v1169_v57, %v1168_v52 }
  0x73   : > { %v1248_v54 = vunpack.c.l.b16 %v1195_v16  ;;  %v1220_v45 = vshll.u32 %v1179_v5, 16  ;;  %v1218_v2 = vshrl.u32 %v1179_v5, 16  ;;  %v1243_v59 = vrot.slane %v1179_v5, 1  ;;  %v4138_v5 = vld [vmem:[%s5424_s3 + $0x30] sm:$0xff] }
  0x74   : > { %v1227_v16 = vshll.u32 %v1180_v29, 16 }
  0x75   : > { %v1312_v10 = vpack.c.b16 %v1248_v54, %v1246_v51  ;;  %v1222_v3 = vrot.slane %v1220_v45, 1  ;;  %v1225_v51 = vshrl.u32 %v1180_v29, 16  ;;  %v4137_v45 = vld [vmem:[%s5424_s3 + $0x28] sm:$0xff] }
  0x76   : > { %v1229_v54 = vrot.slane %v1227_v16, 1  ;;  %v4146_v16 = vld [vmem:[%s5424_s3 + $0x70] sm:$0xff] }
  0x77   : > { %v1223_v28 = vor.u32 %v1222_v3, %v1218_v2  ;;  %v4136_v3 = vld [vmem:[%s5424_s3 + $0x20] sm:$0xff] }
  0x79   : > { %v1256_v30 = vunpack.c.l.b16 %v1223_v28 }
  0x7b   : > { %662 = vmatmul.bf16.gmra.mxu2 %v424_v46  ;;  %v1177_v46 = vpack.c.b16 %v1165_v6, %v1164_v32  ;;  %v1257_v32 = vunpack.c.l.b16 %v1243_v59  ;;  %v4155_v59 = vld [vmem:[%s5424_s3 + $0xb8] sm:$0xff] }
  0x7c   : > { %1082 = vmatmul.bf16.gmra.mxu0 %v872_v19  ;;  %v1216_v19 = vor.u32 %v1215_v1, %v1211_v56  ;;  %2196 = vmatpush.bf16.msrb.mxu3 %v4155_v59  ;;  %v4141_v59 = vld [vmem:[%s5424_s3 + $0x48] sm:$0xff] }
  0x7d   : > { %v1206_v8 = vshll.u32 %v1177_v46, 16  ;;  %v1204_v33 = vshrl.u32 %v1177_v46, 16  ;;  %v1241_v25 = vrot.slane %v1177_v46, 1 }
  0x7e   : > { %1053 = vmatmul.bf16.gmra.mxu3 %v871_v17  ;;  %1111 = vmatmul.bf16.gmra.mxu1 %v873_v20  ;;  %v3512_v17 = vld [vmem:[%s4328_s10 + $0x4c] sm:$0x1]  ;;  %v1242_v20 = vrot.slane %v1178_v60, 1  ;;  %v1254_v26 = vunpack.c.l.b16 %v1216_v19  ;;  %v4139_v60 = vld [vmem:[%s5424_s3 + $0x38] sm:$0xff] }
  0x7f   : > { %v1208_v35 = vrot.slane %v1206_v8, 1  ;;  %v1253_v4 = vunpack.c.l.b16 %v1241_v25  ;;  %v1173_v40 = vunpack.c.l.b16 %v3512_v17  ;;  %v1230_v8 = vor.u32 %v1229_v54, %v1225_v51  ;;  %2138 = vmatpush.bf16.msra.mxu1 %v4139_v60  ;;  %v4135_v19 = vld [vmem:[%s5424_s3 + $0x18] sm:$0xff]  ;;  %v4149_v60 = vld [vmem:[%s5424_s3 + $0x88] sm:$0xff] }
  0x80   : > { %v1255_v31 = vunpack.c.l.b16 %v1242_v20  ;;  %v1318_v37 = vpack.c.b16 %v1256_v30, %v1254_v26  ;;  %v4147_v30 = vld [vmem:[%s5424_s3 + $0x78] sm:$0xff]  ;;  %v4264_v54 = vmov 0.0  }
  0x81   : > { %v1209_v27 = vor.u32 %v1208_v35, %v1204_v33  ;;  %v1316_v43 = vpack.c.b16 %v1253_v4, %v1251_v55  ;;  %v1181_v6 = vpack.c.b16 %v1173_v40, %v1172_v12  ;;  %v1258_v35 = vunpack.c.l.b16 %v1230_v8  ;;  %v4163_v40 = vld [vmem:[%s5424_s3 + $0xf8] sm:$0xff]  ;;  %2167 = vmatpush.bf16.msrb.mxu2 %v4147_v30  ;;  %1584 = vst [vmem:[#allocation2 + $0x10] sm:$0xff] %v4264_v54  ;;  %v4160_v8 = vld [vmem:[%s5424_s3 + $0xe0] sm:$0xff] }
  0x82   : > { %v1319_v14 = vpack.c.b16 %v1257_v32, %v1255_v31  ;;  %2602 = vmatpush.bf16.msrb.mxu0 %v4163_v40  ;;  %v4154_v31 = vld [vmem:[%s5424_s3 + $0xb0] sm:$0xff]  ;;  %1585 = vst [vmem:[#allocation2 + $0x18] sm:$0x3] %v4264_v54  ;;  %v4171_v30 = vld [vmem:[%s5424_s3 + $0x138] sm:$0xff] }
  0x83   : > { %v1252_v50 = vunpack.c.l.b16 %v1209_v27  ;;  %v1234_v46 = vshll.u32 %v1181_v6, 16  ;;  %v1232_v44 = vshrl.u32 %v1181_v6, 16  ;;  %v1245_v33 = vrot.slane %v1181_v6, 1  ;;  %2139 = vmatpush.bf16.msra.mxu1 %v4138_v5  ;;  %2197 = vmatpush.bf16.msrb.mxu3 %v4154_v31  ;;  %v4162_v6 = vld [vmem:[%s5424_s3 + $0xf0] sm:$0xff]  ;;  %1582 = vst [vmem:[#allocation2] sm:$0xff] %v4264_v54 }
  0x84   : > { %v1320_v27 = vpack.c.b16 %v1172_v12, %v1170_v23  ;;  %v4134_v12 = vld [vmem:[%s5424_s3 + $0x10] sm:$0xff]  ;;  %1583 = vst [vmem:[#allocation2 + $0x8] sm:$0x3] %v4264_v54 }
  0x85   : > { %v1315_v0 = vpack.c.b16 %v1252_v50, %v1250_v58  ;;  %v1236_v48 = vrot.slane %v1234_v46, 1  ;;  %v1261_v38 = vunpack.c.l.b16 %v1245_v33  ;;  %2168 = vmatpush.bf16.msrb.mxu2 %v4146_v16  ;;  %1586 = vst [vmem:[#allocation2 + $0x20] sm:$0xff] %v4264_v54  ;;  %v4151_v33 = vld [vmem:[%s5424_s3 + $0x98] sm:$0xff]  ;;  %v4953_v16 = vld [vmem:[%s5423_s2] ss:$0 sm:$0xff] }
  0x86   : > { %2603 = vmatpush.bf16.msrb.mxu0 %v4162_v6  ;;  %1587 = vst [vmem:[#allocation2 + $0x28] sm:$0x3] %v4264_v54  ;;  %v4156_v6 = vld [vmem:[%s5424_s3 + $0xc0] sm:$0xff] }
  0x87   : > { %v1237_v18 = vor.u32 %v1236_v48, %v1232_v44  ;;  %v1322_v21 = vpack.c.b16 %v1261_v38, %v1259_v15  ;;  %2140 = vmatpush.bf16.msra.mxu1 %v4137_v45  ;;  %v4145_v44 = vld [vmem:[%s5424_s3 + $0x68] sm:$0xff]  ;;  %v4152_v48 = vld [vmem:[%s5424_s3 + $0xa0] sm:$0xff]  ;;  %1588 = vst [vmem:[#allocation2 + $0x30] sm:$0xff] %v4264_v54  ;;  %v4143_v38 = vld [vmem:[%s5424_s3 + $0x58] sm:$0xff] }
  0x88   : > { %1589 = vst [vmem:[#allocation2 + $0x38] sm:$0x3] %v4264_v54  ;;  %v4157_v45 = vld [vmem:[%s5424_s3 + $0xc8] sm:$0xff] }
  0x89   : > { %v1260_v36 = vunpack.c.l.b16 %v1237_v18  ;;  %2169 = vmatpush.bf16.msrb.mxu2 %v4145_v44  ;;  %1590 = vst [vmem:[#allocation2 + $0x40] sm:$0xff] %v4264_v54 }
  0x8a   : > { %1591 = vst [vmem:[#allocation2 + $0x48] sm:$0x3] %v4264_v54 }
  0x8b   : > { %1487 = vmatmul.bf16.vlgmr.msra.gmra.mxu2 %v1311_v53  ;;  %v1321_v49 = vpack.c.b16 %v1260_v36, %v1258_v35  ;;  %2141 = vmatpush.bf16.msra.mxu1 %v4136_v3  ;;  %v4159_v35 = vld [vmem:[%s5424_s3 + $0xd8] sm:$0xff]  ;;  %1592 = vst [vmem:[#allocation2 + $0x50] sm:$0xff] %v4264_v54 }
  0x8c   : > { %1545 = vmatmul.bf16.vlgmr.msra.gmra.mxu0 %v1313_v13  ;;  %1593 = vst [vmem:[#allocation2 + $0x58] sm:$0x3] %v4264_v54 }
  0x8d   : > { %2170 = vmatpush.bf16.msrb.mxu2 %v4144_v22  ;;  %1594 = vst [vmem:[#allocation2 + $0x60] sm:$0xff] %v4264_v54 }
  0x8e   : > { %1516 = vmatmul.bf16.vlgmr.msra.gmra.mxu3 %v1312_v10  ;;  %1595 = vst [vmem:[#allocation2 + $0x68] sm:$0x3] %v4264_v54 }
  0x8f   : > { %2142 = vmatpush.bf16.msra.mxu1 %v4135_v19  ;;  %1596 = vst [vmem:[#allocation2 + $0x70] sm:$0xff] %v4264_v54 }
  0x90   : > { %1597 = vst [vmem:[#allocation2 + $0x78] sm:$0x3] %v4264_v54 }
  0x91   : > { %2171 = vmatpush.bf16.msrb.mxu2 %v4143_v38  ;;  %1598 = vst [vmem:[#allocation2 + $0x80] sm:$0xff] %v4264_v54 }
  0x92   : > { %1599 = vst [vmem:[#allocation2 + $0x88] sm:$0x3] %v4264_v54 }
  0x93   : > { %2143 = vmatpush.bf16.msra.mxu1 %v4134_v12  ;;  %v4148_v12 = vld [vmem:[%s5424_s3 + $0x80] sm:$0xff]  ;;  %1601 = vst [vmem:[#allocation2 + $0x98] sm:$0x3] %v4264_v54 }
  0x9b   : > { %1492 = vmatmul.bf16.gmra.mxu2 %v1314_v61 }
  0x9c   : > { %1550 = vmatmul.bf16.gmra.mxu0 %v1316_v43 }
  0x9e   : > { %1521 = vmatmul.bf16.gmra.mxu3 %v1315_v0 }
  0xa8   : > { %v4758_v41 = vpop.f32.mrf.mxu0 }
  0xa9   : > { %v4792_v43 = vpop.f32.mrf.mxu1 }
  0xaa   : > { %v620_v40 = vadd.f32 %v4792_v43, %v4758_v41 }
  0xab   : > { %1497 = vmatmul.bf16.gmra.mxu2 %v1317_v34 }
  0xac   : > { %1555 = vmatmul.bf16.gmra.mxu0 %v1319_v14  ;;  %v4161_v14 = vld [vmem:[%s5424_s3 + $0xe8] sm:$0xff] }
  0xad   : > { %2604 = vmatpush.bf16.msrb.mxu0 %v4161_v14 }
  0xae   : > { %1526 = vmatmul.bf16.gmra.mxu3 %v1318_v37  ;;  %v600_v53 = vpop.f32.mrf.mxu2  ;;  %v4153_v37 = vld [vmem:[%s5424_s3 + $0xa8] sm:$0xff] }
  0xaf   : > { %2198 = vmatpush.bf16.msrb.mxu3 %v4153_v37  ;;  %v4140_v37 = vld [vmem:[%s5424_s3 + $0x40] sm:$0xff] }
  0xb0   : > { %v4762_v13 = vpop.f32.mrf.mxu0 }
  0xb1   : > { %v629_v63 = vpop.f32.mrf.mxu3  ;;  %v4806_v7 = vpop.f32.mrf.mxu1  ;;  %2605 = vmatpush.bf16.msrb.mxu0 %v4160_v8 }
  0xb2   : > { %v4760_v10 = vadd.f32 %v629_v63, %v600_v53  ;;  %v4133_v53 = vld [vmem:[%s5424_s3 + $0x8] sm:$0xff] }
  0xb3   : > { %2199 = vmatpush.bf16.msrb.mxu3 %v4152_v48  ;;  %2144 = vmatpush.bf16.msra.mxu1 %v4133_v53 }
  0xb5   : > { %2606 = vmatpush.bf16.msrb.mxu0 %v4159_v35 }
  0xb6   : > { %v4764_v39 = vpop.f32.mrf.mxu2 }
  0xb7   : > { %2200 = vmatpush.bf16.msrb.mxu3 %v4151_v33 }
  0xb8   : > { %v4768_v47 = vpop.f32.mrf.mxu0 }
  0xb9   : > { %v4766_v42 = vpop.f32.mrf.mxu3  ;;  %v4821_v24 = vpop.f32.mrf.mxu1 }
  0xbb   : > { %1502 = vmatmul.bf16.gmra.mxu2 %v1320_v27  ;;  %v4150_v27 = vld [vmem:[%s5424_s3 + $0x90] sm:$0xff] }
  0xbc   : > { %1560 = vmatmul.bf16.gmra.mxu0 %v1322_v21  ;;  %2201 = vmatpush.bf16.msrb.mxu3 %v4150_v27 }
  0xbe   : > { %1531 = vmatmul.bf16.gmra.mxu3 %v1321_v49  ;;  %v605_v25 = vpop.f32.mrf.mxu2  ;;  %v4132_v49 = vld [vmem:[%s5424_s3] sm:$0xff] }
  0xbf   : > { %2145 = vmatpush.bf16.msra.mxu1 %v4132_v49 }
  0xc0   : > { %v4772_v58 = vpop.f32.mrf.mxu0  ;;  %2202 = vmatpush.bf16.msrb.mxu3 %v4149_v60  ;;  %v625_v60 = vadd.f32 %v4821_v24, %v4768_v47 }
  0xc1   : > { %v634_v52 = vpop.f32.mrf.mxu3  ;;  %v4849_v34 = vpop.f32.mrf.mxu1 }
  0xc2   : > { %v4770_v57 = vadd.f32 %v634_v52, %v605_v25  ;;  %v4158_v25 = vld [vmem:[%s5424_s3 + $0xd0] sm:$0xff] }
  0xc3   : > { %2607 = vmatpush.bf16.msrb.mxu0 %v4158_v25  ;;  %v4142_v52 = vld [vmem:[%s5424_s3 + $0x50] sm:$0xff]  ;;  %2631 = vmatpush.bf16.msrb.mxu1 %v4171_v30 }
  0xc4   : > { %2172 = vmatpush.bf16.msrb.mxu2 %v4142_v52  ;;  %2203 = vmatpush.bf16.msrb.mxu3 %v4148_v12 }
  0xc6   : > { %v4777_v50 = vpop.f32.mrf.mxu2 }
  0xc7   : > { %2608 = vmatpush.bf16.msrb.mxu0 %v4157_v45 }
  0xc8   : > { %2173 = vmatpush.bf16.msrb.mxu2 %v4141_v59  ;;  %v4265_v59 = vmov 0.0|0.0  }
  0xc9   : > { %v4779_v55 = vpop.f32.mrf.mxu3  ;;  %v4781_v4 = vpop.f32.mrf.mxu0  ;;  %v1818_v12 = vunpack.c.l.b16 %v4265_v59 }
  0xcb   : > { %v1097_v18 = vpop.f32.mrf.mxu1  ;;  %2609 = vmatpush.bf16.msrb.mxu0 %v4156_v6 }
  0xcc   : > { %2174 = vmatpush.bf16.msrb.mxu2 %v4140_v37 }
  0xce   : > { %v4786_v61 = vpop.f32.mrf.mxu2 }
  0xcf   : > { %v649_v41 = vadd.f32 %v4786_v61, %v620_v40  ;;  %v622_v61 = vadd.f32 %v4806_v7, %v4762_v13 }
  0xd1   : > { %v4788_v62 = vpop.f32.mrf.mxu3  ;;  %v4790_v0 = vpop.f32.mrf.mxu0  ;;  %v668_v14 = vadd.f32 %v4953_v16, %v649_v41 }
  0xd2   : > { %v1069_v43 = vadd.f32 %v4781_v4, %v4788_v62  ;;  %v1771_v4 = vld [vmem:[#allocation2 + $0x8] sm:$0x3]  ;;  %v4170_v62 = vld [vmem:[%s5424_s3 + $0x130] sm:$0xff] }
  0xd3   : > { %v1099_v5 = vpop.f32.mrf.mxu1  ;;  %2632 = vmatpush.bf16.msrb.mxu1 %v4170_v62  ;;  %v1787_v27 = vpack.c.bf16 %v1771_v4, %v1771_v4 }
  0xd4   : > { %v1098_v44 = vadd.f32 %v1097_v18, %v1069_v43  ;;  %v627_v43 = vadd.f32 %v4849_v34, %v4772_v58  ;;  %v4168_v58 = vld [vmem:[%s5424_s3 + $0x120] sm:$0xff] }
  0xd5   : > { %v1819_v40 = vunpack.c.l.b16 %v1787_v27 }
  0xd6   : > { %v4797_v56 = vpop.f32.mrf.mxu2  ;;  %v1117_v33 = vadd.f32 %v1098_v44, %v668_v14 }
  0xd7   : > { %v651_v35 = vadd.f32 %v4797_v56, %v622_v61  ;;  %v1834_v47 = vpack.c.b16 %v1819_v40, %v1818_v12 }
  0xd9   : > { %v4799_v1 = vpop.f32.mrf.mxu3  ;;  %v4801_v2 = vpop.f32.mrf.mxu0  ;;  %v669_v25 = vadd.f32 %v4953_v16, %v651_v35 }
  0xda   : > { %v1071_v38 = vadd.f32 %v4790_v0, %v4799_v1  ;;  %v4169_v0 = vld [vmem:[%s5424_s3 + $0x128] sm:$0xff] }
  0xdb   : > { %v1102_v48 = vpop.f32.mrf.mxu1  ;;  %2633 = vmatpush.bf16.msrb.mxu1 %v4169_v0 }
  0xdc   : > { %v1100_v13 = vadd.f32 %v1099_v5, %v1071_v38 }
  0xde   : > { %v4808_v9 = vpop.f32.mrf.mxu2  ;;  %v1118_v6 = vadd.f32 %v1100_v13, %v669_v25 }
  0xdf   : > { %v654_v1 = vadd.f32 %v4808_v9, %v625_v60  ;;  %2634 = vmatpush.bf16.msrb.mxu1 %v4168_v58 }
  0xe1   : > { %v4810_v11 = vpop.f32.mrf.mxu3  ;;  %v4812_v17 = vpop.f32.mrf.mxu0  ;;  %v670_v37 = vadd.f32 %v4953_v16, %v654_v1 }
  0xe2   : > { %v1074_v5 = vadd.f32 %v4801_v2, %v4810_v11  ;;  %v1845_v2 = vshll.u32 %v1834_v47, 16 }
  0xe3   : > { %v1104_v56 = vpop.f32.mrf.mxu1 }
  0xe4   : > { %v1103_v14 = vadd.f32 %v1102_v48, %v1074_v5 }
  0xe6   : > { %v4817_v20 = vpop.f32.mrf.mxu2  ;;  %v1119_v34 = vadd.f32 %v1103_v14, %v670_v37 }
  0xe9   : > { %v4819_v23 = vpop.f32.mrf.mxu3  ;;  %v4823_v28 = vpop.f32.mrf.mxu0 }
  0xea   : > { %v1076_v11 = vadd.f32 %v4812_v17, %v4819_v23  ;;  %v1843_v17 = vshrl.u32 %v1834_v47, 16  ;;  %v1847_v23 = vrot.slane %v1845_v2, 1 }
  0xec   : > { %v1848_v1 = vor.u32 %v1847_v23, %v1843_v17 }
  0xee   : > { %v4834_v26 = vpop.f32.mrf.mxu2 }
  0xf1   : > { %v4836_v29 = vpop.f32.mrf.mxu3  ;;  %v4844_v32 = vpop.f32.mrf.mxu0 }
  0xf2   : > { %v1079_v14 = vadd.f32 %v4823_v28, %v4836_v29 }
  0xf6   : > { %v4860_v46 = vpop.f32.mrf.mxu2 }
  0xf9   : > { %v4862_v51 = vpop.f32.mrf.mxu3  ;;  %v4875_v63 = vpop.f32.mrf.mxu0 }
  0xfe   : > { %v4894_v36 = vpop.f32.mrf.mxu2 }
 0x101   : > { %v4897_v15 = vpop.f32.mrf.mxu3  ;;  %v4910_v21 = vpop.f32.mrf.mxu0 }
 0x106   : > { %v4929_v3 = vpop.f32.mrf.mxu2 }
 0x109   : > { %v4932_v19 = vpop.f32.mrf.mxu3  ;;  %v1546_v31 = vpop.f32.mrf.mxu0 }
 0x10e   : > { %v1488_v53 = vpop.f32.mrf.mxu2 }
 0x111   : > { %v1517_v8 = vpop.f32.mrf.mxu3  ;;  %v1548_v54 = vpop.f32.mrf.mxu0 }
 0x112   : > { %v1518_v22 = vadd.f32 %v1517_v8, %v1488_v53  ;;  %v656_v8 = vadd.f32 %v4817_v20, %v627_v43 }
 0x114   : > { %v1547_v18 = vadd.f32 %v1546_v31, %v1518_v22  ;;  %v671_v27 = vadd.f32 %v4953_v16, %v656_v8 }
 0x116   : > { %v1566_v49 = vadd.f32 %v1547_v18, %v1117_v33  ;;  %v1490_v52 = vpop.f32.mrf.mxu2  ;;  %v1107_v33 = vpop.f32.mrf.mxu1  ;;  %v1898_v18 = vrot.slane %v1834_v47, 1  ;;  %v4167_v47 = vld [vmem:[%s5424_s3 + $0x118] sm:$0xff] }
 0x117   : > { %2635 = vmatpush.bf16.msrb.mxu1 %v4167_v47 }
 0x118   : > { %v1574_v7 = vmax.f32 %v1566_v49, 0.0  ;;  %v1105_v49 = vadd.f32 %v1104_v56, %v1076_v11  ;;  %v1907_v59 = vunpack.c.l.b16 %v1898_v18 }
 0x119   : > { %v1519_v45 = vpop.f32.mrf.mxu3  ;;  %v1551_v31 = vpop.f32.mrf.mxu0 }
 0x11a   : > { %1603 = vst [vmem:[#allocation2 + $0x11] sm:$0xff] %v1574_v7  ;;  %v1520_v30 = vadd.f32 %v1519_v45, %v1490_v52 }
 0x11c   : > { %v1549_v41 = vadd.f32 %v1548_v54, %v1520_v30 }
 0x11e   : > { %v1567_v24 = vadd.f32 %v1549_v41, %v1118_v6  ;;  %v1493_v53 = vpop.f32.mrf.mxu2  ;;  %v1109_v11 = vpop.f32.mrf.mxu1 }
 0x120   : > { %v1575_v44 = vmax.f32 %v1567_v24, 0.0 }
 0x121   : > { %v1522_v9 = vpop.f32.mrf.mxu3  ;;  %v1772_v61 = vld [vmem:[#allocation2 + $0x10] sm:$0xff]  ;;  %v1773_v22 = vld [vmem:[#allocation2 + $0x18] sm:$0x3]  ;;  %v1553_v48 = vpop.f32.mrf.mxu0 }
 0x122   : > { %1604 = vst [vmem:[#allocation2 + $0x21] sm:$0xff] %v1575_v44  ;;  %v1523_v4 = vadd.f32 %v1522_v9, %v1493_v53  ;;  %v1788_v62 = vpack.c.bf16 %v1772_v61, %v1772_v61  ;;  %v1789_v54 = vpack.c.bf16 %v1773_v22, %v1773_v22  ;;  %v1906_v22 = vunpack.c.l.b16 %v1848_v1 }
 0x124   : > { %v1552_v35 = vadd.f32 %v1551_v31, %v1523_v4  ;;  %v4989_v20 = vunpack.c.l.b16 %v1788_v62  ;;  %v1821_v38 = vunpack.c.l.b16 %v1789_v54  ;;  %v1120_v31 = vadd.f32 %v1105_v49, %v671_v27  ;;  %v4166_v49 = vld [vmem:[%s5424_s3 + $0x110] sm:$0xff] }
 0x125   : > { %v1108_v54 = vadd.f32 %v1107_v33, %v1079_v14  ;;  %2636 = vmatpush.bf16.msrb.mxu1 %v4166_v49  ;;  %v4165_v14 = vld [vmem:[%s5424_s3 + $0x108] sm:$0xff] }
 0x126   : > { %v1568_v25 = vadd.f32 %v1552_v35, %v1119_v34  ;;  %v1835_v13 = vpack.c.b16 %v1821_v38, %v4989_v20  ;;  %v1970_v7 = vpack.c.b16 %v4989_v20, %v1818_v12  ;;  %v1495_v60 = vpop.f32.mrf.mxu2  ;;  %v659_v12 = vadd.f32 %v4834_v26, %v4760_v10  ;;  %v1112_v47 = vpop.f32.mrf.mxu1 }
 0x127   : > { %v632_v26 = vadd.f32 %v4766_v42, %v4764_v39  ;;  %v1081_v38 = vadd.f32 %v4844_v32, %v4862_v51  ;;  %v4179_v32 = vld [vmem:[%s5424_s3 + $0x178] sm:$0xff]  ;;  %v4186_v51 = vld [vmem:[%s5424_s3 + $0x1b0] sm:$0xff] }
 0x128   : > { %v1576_v52 = vmax.f32 %v1568_v25, 0.0  ;;  %2146 = vmatmul.bf16.vlgmr.msra.gmra.mxu1 %v1970_v7  ;;  %v1899_v45 = vrot.slane %v1835_v13, 1  ;;  %v1852_v40 = vshll.u32 %v1835_v13, 16  ;;  %v1850_v24 = vshrl.u32 %v1835_v13, 16  ;;  %v4195_v25 = vld [vmem:[%s5424_s3 + $0x1f8] sm:$0xff]  ;;  %2660 = vmatpush.bf16.msra.mxu2 %v4179_v32 }
 0x129   : > { %v1524_v30 = vpop.f32.mrf.mxu3  ;;  %v2235_v0 = vld [vmem:[#allocation2 + $0x20] sm:$0xff]  ;;  %v1775_v5 = vld [vmem:[#allocation2 + $0x28] sm:$0x3]  ;;  %v1556_v9 = vpop.f32.mrf.mxu0  ;;  %v672_v29 = vadd.f32 %v4953_v16, %v659_v12  ;;  %v661_v35 = vadd.f32 %v4860_v46, %v632_v26  ;;  %3096 = vmatpush.bf16.msra.mxu0 %v4195_v25  ;;  %2637 = vmatpush.bf16.msrb.mxu1 %v4165_v14  ;;  %v4183_v25 = vld [vmem:[%s5424_s3 + $0x198] sm:$0xff] }
 0x12a   : > { %1605 = vst [vmem:[#allocation2 + $0x31] sm:$0xff] %v1576_v52  ;;  %v1525_v6 = vadd.f32 %v1524_v30, %v1495_v60  ;;  %v1909_v41 = vunpack.c.l.b16 %v1899_v45  ;;  %v2251_v56 = vpack.c.bf16 %v2235_v0, %v2235_v0  ;;  %v1854_v43 = vrot.slane %v1852_v40, 1  ;;  %v4194_v45 = vld [vmem:[%s5424_s3 + $0x1f0] sm:$0xff]  ;;  %v2236_v14 = vld [vmem:[#allocation2 + $0x28] sm:$0x3] }
 0x12b   : > { %v1791_v37 = vpack.c.bf16 %v1775_v5, %v1775_v5  ;;  %v1121_v13 = vadd.f32 %v1108_v54, %v672_v29  ;;  %v1110_v40 = vadd.f32 %v1109_v11, %v1081_v38  ;;  %v4178_v30 = vld [vmem:[%s5424_s3 + $0x170] sm:$0xff]  ;;  %v4177_v29 = vld [vmem:[%s5424_s3 + $0x168] sm:$0xff] }
 0x12c   : > { %v1554_v44 = vadd.f32 %v1553_v48, %v1525_v6  ;;  %v1972_v53 = vpack.c.b16 %v1909_v41, %v1907_v59  ;;  %v5001_v8 = vunpack.c.l.b16 %v2251_v56  ;;  %v1855_v61 = vor.u32 %v1854_v43, %v1850_v24  ;;  %v4187_v48 = vld [vmem:[%s5424_s3 + $0x1b8] sm:$0xff]  ;;  %v4185_v56 = vld [vmem:[%s5424_s3 + $0x1a8] sm:$0xff]  ;;  %2661 = vmatpush.bf16.msra.mxu2 %v4178_v30 }
 0x12d   : > { %v1823_v2 = vunpack.c.l.b16 %v1791_v37  ;;  %3067 = vmatpush.bf16.msra.mxu3 %v4187_v48  ;;  %v673_v59 = vadd.f32 %v4953_v16, %v661_v35  ;;  %3097 = vmatpush.bf16.msra.mxu0 %v4194_v45 }
 0x12e   : > { %v1569_v4 = vadd.f32 %v1554_v44, %v1120_v31  ;;  %2204 = vmatmul.bf16.vlgmr.msrb.gmra.mxu3 %v1972_v53  ;;  %v2434_v10 = vpack.c.b16 %v5001_v8, %v4989_v20  ;;  %v1908_v62 = vunpack.c.l.b16 %v1855_v61  ;;  %v1498_v34 = vpop.f32.mrf.mxu2  ;;  %v4193_v44 = vld [vmem:[%s5424_s3 + $0x1e8] sm:$0xff] }
 0x12f   : > { %v5008_v28 = vpack.c.b16 %v1823_v2, %v5001_v8  ;;  %v1122_v53 = vadd.f32 %v1110_v40, %v673_v59 }
 0x130   : > { %v1577_v58 = vmax.f32 %v1569_v4, 0.0  ;;  %2610 = vmatmul.bf16.vlgmr.msrb.gmra.mxu0 %v2434_v10  ;;  %v1971_v42 = vpack.c.b16 %v1908_v62, %v1906_v22  ;;  %2662 = vmatpush.bf16.msra.mxu2 %v4177_v29 }
 0x131   : > { %v1527_v39 = vpop.f32.mrf.mxu3  ;;  %v1776_v18 = vld [vmem:[#allocation2 + $0x30] sm:$0xff]  ;;  %v1777_v27 = vld [vmem:[#allocation2 + $0x38] sm:$0x3]  ;;  %v1859_v46 = vshll.u32 %v5008_v28, 16  ;;  %v1900_v31 = vrot.slane %v5008_v28, 1  ;;  %v1558_v6 = vpop.f32.mrf.mxu0  ;;  %3068 = vmatpush.bf16.msra.mxu3 %v4186_v51  ;;  %v1857_v2 = vshrl.u32 %v5008_v28, 16  ;;  %v1084_v28 = vadd.f32 %v4875_v63, %v4897_v15  ;;  %3098 = vmatpush.bf16.msra.mxu0 %v4193_v44 }
 0x132   : > { %1606 = vst [vmem:[#allocation2 + $0x41] sm:$0xff] %v1577_v58  ;;  %v1528_v17 = vadd.f32 %v1527_v39, %v1498_v34  ;;  %v1792_v23 = vpack.c.bf16 %v1776_v18, %v1776_v18  ;;  %v1793_v33 = vpack.c.bf16 %v1777_v27, %v1777_v27  ;;  %2175 = vmatmul.bf16.vlgmr.msrb.gmra.mxu2 %v1971_v42  ;;  %v4192_v18 = vld [vmem:[%s5424_s3 + $0x1e0] sm:$0xff]  ;;  %v4190_v44 = vld [vmem:[%s5424_s3 + $0x1d0] sm:$0xff] }
 0x133   : > { %v1861_v41 = vrot.slane %v1859_v46, 1  ;;  %v1911_v10 = vunpack.c.l.b16 %v1900_v31  ;;  %v4176_v63 = vld [vmem:[%s5424_s3 + $0x160] sm:$0xff]  ;;  %v637_v15 = vadd.f32 %v4779_v55, %v4777_v50  ;;  %v1113_v32 = vadd.f32 %v1112_v47, %v1084_v28 }
 0x134   : > { %v1557_v7 = vadd.f32 %v1556_v9, %v1528_v17  ;;  %v5030_v52 = vunpack.c.l.b16 %v1792_v23  ;;  %v1825_v60 = vunpack.c.l.b16 %v1793_v33  ;;  %v664_v9 = vadd.f32 %v4894_v36, %v4770_v57  ;;  %v4184_v36 = vld [vmem:[%s5424_s3 + $0x1a0] sm:$0xff]  ;;  %2663 = vmatpush.bf16.msra.mxu2 %v4176_v63  ;;  %v4173_v63 = vld [vmem:[%s5424_s3 + $0x148] sm:$0xff] }
 0x135   : > { %v1862_v54 = vor.u32 %v1861_v41, %v1857_v2  ;;  %3069 = vmatpush.bf16.msra.mxu3 %v4185_v56  ;;  %v4164_v50 = vld [vmem:[%s5424_s3 + $0x100] sm:$0xff]  ;;  %v666_v55 = vadd.f32 %v4929_v3, %v637_v15  ;;  %3099 = vmatpush.bf16.msra.mxu0 %v4192_v18 }
 0x136   : > { %v1570_v0 = vadd.f32 %v1557_v7, %v1121_v13  ;;  %v1837_v1 = vpack.c.b16 %v1825_v60, %v5030_v52  ;;  %v5042_v5 = vpack.c.b16 %v5030_v52, %v5001_v8  ;;  %v1500_v24 = vpop.f32.mrf.mxu2  ;;  %v674_v46 = vadd.f32 %v4953_v16, %v664_v9  ;;  %2638 = vmatpush.bf16.msrb.mxu1 %v4164_v50  ;;  %v2234_v9 = vld [vmem:[#allocation2 + $0x18] sm:$0x3] }
 0x137   : > { %v1910_v23 = vunpack.c.l.b16 %v1862_v54  ;;  %v1086_v7 = vadd.f32 %v4910_v21, %v4932_v19  ;;  %v4175_v21 = vld [vmem:[%s5424_s3 + $0x158] sm:$0xff]  ;;  %v4182_v19 = vld [vmem:[%s5424_s3 + $0x190] sm:$0xff] }
 0x138   : > { %v1578_v12 = vmax.f32 %v1570_v0, 0.0  ;;  %2151 = vmatmul.bf16.gmra.mxu1 %v5042_v5  ;;  %v1901_v43 = vrot.slane %v1837_v1, 1  ;;  %v1866_v37 = vshll.u32 %v1837_v1, 16  ;;  %v1864_v58 = vshrl.u32 %v1837_v1, 16  ;;  %v4191_v0 = vld [vmem:[%s5424_s3 + $0x1d8] sm:$0xff]  ;;  %v1114_v1 = vpop.f32.mrf.mxu1  ;;  %2664 = vmatpush.bf16.msra.mxu2 %v4175_v21 }
 0x139   : > { %v1529_v61 = vpop.f32.mrf.mxu3  ;;  %v2239_v22 = vld [vmem:[#allocation2 + $0x40] sm:$0xff]  ;;  %v1779_v11 = vld [vmem:[#allocation2 + $0x48] sm:$0x3]  ;;  %3070 = vmatpush.bf16.msra.mxu3 %v4184_v36  ;;  %v1561_v60 = vpop.f32.mrf.mxu0  ;;  %v1123_v56 = vadd.f32 %v1113_v32, %v674_v46  ;;  %3100 = vmatpush.bf16.msra.mxu0 %v4191_v0 }
 0x13a   : > { %1607 = vst [vmem:[#allocation2 + $0x51] sm:$0xff] %v1578_v12  ;;  %v1530_v4 = vadd.f32 %v1529_v61, %v1500_v24  ;;  %v1913_v26 = vunpack.c.l.b16 %v1901_v43  ;;  %v2255_v62 = vpack.c.bf16 %v2239_v22, %v2239_v22  ;;  %v1868_v34 = vrot.slane %v1866_v37, 1  ;;  %v4180_v46 = vld [vmem:[%s5424_s3 + $0x180] sm:$0xff]  ;;  %v2699_v21 = vld [vmem:[#allocation2 + $0x28] sm:$0x3] }
 0x13b   : > { %v1795_v57 = vpack.c.bf16 %v1779_v11, %v1779_v11  ;;  %v675_v43 = vadd.f32 %v4953_v16, %v666_v55  ;;  %v1115_v37 = vadd.f32 %v1114_v1, %v1086_v7 }
 0x13c   : > { %v1559_v48 = vadd.f32 %v1558_v6, %v1530_v4  ;;  %v1975_v35 = vpack.c.b16 %v1913_v26, %v1911_v10  ;;  %v5066_v38 = vunpack.c.l.b16 %v2255_v62  ;;  %v1869_v39 = vor.u32 %v1868_v34, %v1864_v58  ;;  %v4181_v4 = vld [vmem:[%s5424_s3 + $0x188] sm:$0xff]  ;;  %v4203_v58 = vld [vmem:[%s5424_s3 + $0x238] sm:$0xff] }
 0x13d   : > { %v1827_v42 = vunpack.c.l.b16 %v1795_v57  ;;  %3071 = vmatpush.bf16.msra.mxu3 %v4183_v25  ;;  %v2252_v10 = vpack.c.bf16 %v2236_v14, %v2236_v14  ;;  %v1124_v34 = vadd.f32 %v1115_v37, %v675_v43  ;;  %v2250_v57 = vpack.c.bf16 %v2234_v9, %v2234_v9  ;;  %3101 = vmatpush.bf16.msra.mxu0 %v4190_v44 }
 0x13e   : > { %v1571_v27 = vadd.f32 %v1559_v48, %v1122_v53  ;;  %2209 = vmatmul.bf16.gmra.mxu3 %v1975_v35  ;;  %v2437_v17 = vpack.c.b16 %v5066_v38, %v5030_v52  ;;  %v1912_v33 = vunpack.c.l.b16 %v1869_v39  ;;  %v1503_v13 = vpop.f32.mrf.mxu2  ;;  %v4174_v53 = vld [vmem:[%s5424_s3 + $0x150] sm:$0xff]  ;;  %v4189_v39 = vld [vmem:[%s5424_s3 + $0x1c8] sm:$0xff]  ;;  %3125 = vmatpush.bf16.msra.mxu1 %v4203_v58  ;;  %v2715_v9 = vpack.c.bf16 %v2699_v21, %v2699_v21 }
 0x13f   : > { %v5079_v49 = vpack.c.b16 %v1827_v42, %v5066_v38  ;;  %2665 = vmatpush.bf16.msra.mxu2 %v4174_v53  ;;  %v2284_v32 = vunpack.c.l.b16 %v2252_v10  ;;  %v2282_v0 = vunpack.c.l.b16 %v2250_v57  ;;  %v2703_v21 = vld [vmem:[#allocation2 + $0x48] sm:$0x3] }
 0x140   : > { %v1579_v51 = vmax.f32 %v1571_v27, 0.0  ;;  %2615 = vmatmul.bf16.gmra.mxu0 %v2437_v17  ;;  %v1974_v59 = vpack.c.b16 %v1912_v33, %v1910_v23  ;;  %v2747_v58 = vunpack.c.l.b16 %v2715_v9  ;;  %v2719_v9 = vpack.c.bf16 %v2703_v21, %v2703_v21 }
 0x141   : > { %v1532_v45 = vpop.f32.mrf.mxu3  ;;  %v1780_v40 = vld [vmem:[#allocation2 + $0x50] sm:$0xff]  ;;  %v1781_v30 = vld [vmem:[#allocation2 + $0x58] sm:$0x3]  ;;  %v1873_v3 = vshll.u32 %v5079_v49, 16  ;;  %v1902_v16 = vrot.slane %v5079_v49, 1  ;;  %3072 = vmatpush.bf16.msra.mxu3 %v4182_v19  ;;  %v1871_v48 = vshrl.u32 %v5079_v49, 16  ;;  %v1563_v15 = vpop.f32.mrf.mxu0  ;;  %3102 = vmatpush.bf16.msra.mxu0 %v4189_v39  ;;  %v5151_v44 = vpack.c.b16 %v2282_v0, %v4989_v20 }
 0x142   : > { %1608 = vst [vmem:[#allocation2 + $0x61] sm:$0xff] %v1579_v51  ;;  %v1533_v31 = vadd.f32 %v1532_v45, %v1503_v13  ;;  %v1796_v6 = vpack.c.bf16 %v1780_v40, %v1780_v40  ;;  %v1797_v41 = vpack.c.bf16 %v1781_v30, %v1781_v30  ;;  %2180 = vmatmul.bf16.gmra.mxu2 %v1974_v59  ;;  %v2701_v40 = vld [vmem:[#allocation2 + $0x38] sm:$0x3]  ;;  %v4172_v30 = vld [vmem:[%s5424_s3 + $0x140] sm:$0xff]  ;;  %v4202_v19 = vld [vmem:[%s5424_s3 + $0x230] sm:$0xff] }
 0x143   : > { %v1875_v11 = vrot.slane %v1873_v3, 1  ;;  %v1915_v18 = vunpack.c.l.b16 %v1902_v16  ;;  %2666 = vmatpush.bf16.msra.mxu2 %v4173_v63  ;;  %v2717_v43 = vpack.c.bf16 %v2701_v40, %v2701_v40  ;;  %3126 = vmatpush.bf16.msra.mxu1 %v4202_v19 }
 0x144   : > { %v1562_v47 = vadd.f32 %v1561_v60, %v1533_v31  ;;  %v5101_v12 = vunpack.c.l.b16 %v1796_v6  ;;  %v1829_v24 = vunpack.c.l.b16 %v1797_v41  ;;  %v4188_v60 = vld [vmem:[%s5424_s3 + $0x1c0] sm:$0xff]  ;;  %v5145_v41 = vpack.c.b16 %v2284_v32, %v5001_v8 }
 0x145   : > { %v1876_v23 = vor.u32 %v1875_v11, %v1871_v48  ;;  %3073 = vmatpush.bf16.msra.mxu3 %v4181_v4  ;;  %3103 = vmatpush.bf16.msra.mxu0 %v4188_v60  ;;  %v2749_v10 = vunpack.c.l.b16 %v2717_v43  ;;  %v2238_v48 = vld [vmem:[#allocation2 + $0x38] sm:$0x3] }
 0x146   : > { %v1572_v61 = vadd.f32 %v1562_v47, %v1123_v56  ;;  %v1839_v22 = vpack.c.b16 %v1829_v24, %v5101_v12  ;;  %v5113_v2 = vpack.c.b16 %v5101_v12, %v5066_v38  ;;  %v1505_v62 = vpop.f32.mrf.mxu2  ;;  %v2315_v16 = vshll.u32 %v5145_v41, 16 }
 0x147   : > { %v1914_v1 = vunpack.c.l.b16 %v1876_v23  ;;  %2667 = vmatpush.bf16.msra.mxu2 %v4172_v30 }
 0x148   : > { %v1580_v26 = vmax.f32 %v1572_v61, 0.0  ;;  %2156 = vmatmul.bf16.gmra.mxu1 %v5113_v2  ;;  %v1903_v29 = vrot.slane %v1839_v22, 1  ;;  %v1880_v54 = vshll.u32 %v1839_v22, 16  ;;  %v1878_v33 = vshrl.u32 %v1839_v22, 16 }
 0x149   : > { %v1534_v36 = vpop.f32.mrf.mxu3  ;;  %v2243_v28 = vld [vmem:[#allocation2 + $0x60] sm:$0xff]  ;;  %v1783_v35 = vld [vmem:[#allocation2 + $0x68] sm:$0x3]  ;;  %3074 = vmatpush.bf16.msra.mxu3 %v4180_v46  ;;  %v2254_v46 = vpack.c.bf16 %v2238_v48, %v2238_v48 }
 0x14a   : > { %1609 = vst [vmem:[#allocation2 + $0x71] sm:$0xff] %v1580_v26  ;;  %v1535_v42 = vadd.f32 %v1534_v36, %v1505_v62  ;;  %v1917_v27 = vunpack.c.l.b16 %v1903_v29  ;;  %v2259_v17 = vpack.c.bf16 %v2243_v28, %v2243_v28  ;;  %v1882_v49 = vrot.slane %v1880_v54, 1  ;;  %v2240_v26 = vld [vmem:[#allocation2 + $0x48] sm:$0x3] }
 0x14b   : > { %v1799_v25 = vpack.c.bf16 %v1783_v35, %v1783_v35  ;;  %v2308_v54 = vshll.u32 %v5151_v44, 16  ;;  %v2317_v36 = vrot.slane %v2315_v16, 1  ;;  %v4201_v28 = vld [vmem:[%s5424_s3 + $0x228] sm:$0xff]  ;;  %v2256_v35 = vpack.c.bf16 %v2240_v26, %v2240_v26 }
 0x14c   : > { %v1564_v51 = vadd.f32 %v1563_v15, %v1535_v42  ;;  %v1978_v13 = vpack.c.b16 %v1917_v27, %v1915_v18  ;;  %v5133_v50 = vunpack.c.l.b16 %v2259_v17  ;;  %v1883_v55 = vor.u32 %v1882_v49, %v1878_v33  ;;  %3127 = vmatpush.bf16.msra.mxu1 %v4201_v28  ;;  %v2244_v16 = vld [vmem:[#allocation2 + $0x68] sm:$0x3] }
 0x14d   : > { %v1831_v7 = vunpack.c.l.b16 %v1799_v25  ;;  %v5167_v27 = vpack.c.b16 %v2749_v10, %v5030_v52  ;;  %v2310_v33 = vrot.slane %v2308_v54, 1  ;;  %v2313_v49 = vshrl.u32 %v5145_v41, 16 }
 0x14e   : > { %v1573_v45 = vadd.f32 %v1564_v51, %v1124_v34  ;;  %2214 = vmatmul.bf16.gmra.mxu3 %v1978_v13  ;;  %v2440_v59 = vpack.c.b16 %v5133_v50, %v5101_v12  ;;  %v1916_v31 = vunpack.c.l.b16 %v1883_v55  ;;  %v5171_v25 = vpack.c.b16 %v2747_v58, %v5001_v8  ;;  %v2705_v8 = vld [vmem:[#allocation2 + $0x58] sm:$0x3] }
 0x14f   : > { %v1840_v6 = vpack.c.b16 %v1831_v7, %v5133_v50  ;;  %v2288_v55 = vunpack.c.l.b16 %v2256_v35  ;;  %v2306_v7 = vshrl.u32 %v5151_v44, 16  ;;  %v2318_v60 = vor.u32 %v2317_v36, %v2313_v49 }
 0x150   : > { %v1581_v3 = vmax.f32 %v1573_v45, 0.0  ;;  %2620 = vmatmul.bf16.gmra.mxu0 %v2440_v59  ;;  %v1977_v56 = vpack.c.b16 %v1916_v31, %v1914_v1  ;;  %v2780_v30 = vshll.u32 %v5167_v27, 16  ;;  %v2286_v1 = vunpack.c.l.b16 %v2254_v46 }
 0x151   : > { %v1784_v47 = vld [vmem:[#allocation2 + $0x70] sm:$0xff]  ;;  %v1785_v24 = vld [vmem:[#allocation2 + $0x78] sm:$0x3]  ;;  %v1887_v53 = vshll.u32 %v1840_v6, 16  ;;  %v1904_v11 = vrot.slane %v1840_v6, 1  ;;  %v1885_v20 = vshrl.u32 %v1840_v6, 16  ;;  %v2311_v0 = vor.u32 %v2310_v33, %v2306_v7 }
 0x152   : > { %1610 = vst [vmem:[#allocation2 + $0x81] sm:$0xff] %v1581_v3  ;;  %v1800_v37 = vpack.c.bf16 %v1784_v47, %v1784_v47  ;;  %v1801_v14 = vpack.c.bf16 %v1785_v24, %v1785_v24  ;;  %2185 = vmatmul.bf16.gmra.mxu2 %v1977_v56  ;;  %v2773_v6 = vshll.u32 %v5171_v25, 16  ;;  %v4200_v3 = vld [vmem:[%s5424_s3 + $0x220] sm:$0xff]  ;;  %v5184_v19 = vpack.c.b16 %v2288_v55, %v5066_v38 }
 0x153   : > { %v1889_v4 = vrot.slane %v1887_v53, 1  ;;  %v1919_v39 = vunpack.c.l.b16 %v1904_v11  ;;  %v2371_v56 = vunpack.c.l.b16 %v2318_v60  ;;  %v2782_v47 = vrot.slane %v2780_v30, 1  ;;  %3128 = vmatpush.bf16.msra.mxu1 %v4200_v3 }
 0x154   : > { %v5153_v61 = vunpack.c.l.b16 %v1800_v37  ;;  %v1833_v22 = vunpack.c.l.b16 %v1801_v14  ;;  %v2721_v24 = vpack.c.bf16 %v2705_v8, %v2705_v8  ;;  %v2369_v43 = vunpack.c.l.b16 %v2311_v0 }
 0x155   : > { %v1890_v18 = vor.u32 %v1889_v4, %v1885_v20  ;;  %v5187_v37 = vpack.c.b16 %v2286_v1, %v5030_v52  ;;  %v2775_v14 = vrot.slane %v2773_v6, 1  ;;  %v2778_v53 = vshrl.u32 %v5167_v27, 16  ;;  %v4199_v52 = vld [vmem:[%s5424_s3 + $0x218] sm:$0xff] }
 0x156   : > { %v1841_v62 = vpack.c.b16 %v1833_v22, %v5153_v61  ;;  %v5159_v29 = vpack.c.b16 %v5153_v61, %v5133_v50  ;;  %v2771_v22 = vshrl.u32 %v5171_v25, 16  ;;  %v2435_v11 = vpack.c.b16 %v2371_v56, %v2369_v43 }
 0x157   : > { %v1918_v59 = vunpack.c.l.b16 %v1890_v18  ;;  %v2783_v4 = vor.u32 %v2782_v47, %v2778_v53  ;;  %v2329_v10 = vshll.u32 %v5184_v19, 16  ;;  %v2753_v26 = vunpack.c.l.b16 %v2721_v24  ;;  %3129 = vmatpush.bf16.msra.mxu1 %v4199_v52 }
 0x158   : > { %2161 = vmatmul.bf16.gmra.mxu1 %v5159_v29  ;;  %v1905_v34 = vrot.slane %v1841_v62, 1  ;;  %v1894_v57 = vshll.u32 %v1841_v62, 16  ;;  %v1892_v15 = vshrl.u32 %v1841_v62, 16  ;;  %v2242_v62 = vld [vmem:[#allocation2 + $0x58] sm:$0x3]  ;;  %v2776_v20 = vor.u32 %v2775_v14, %v2771_v22 }
 0x159   : > { %v2247_v42 = vld [vmem:[#allocation2 + $0x80] sm:$0xff]  ;;  %v2322_v54 = vshll.u32 %v5187_v37, 16  ;;  %v2751_v58 = vunpack.c.l.b16 %v2719_v9  ;;  %v2836_v36 = vunpack.c.l.b16 %v2783_v4  ;;  %v2331_v28 = vrot.slane %v2329_v10, 1  ;;  %v2248_v21 = vld [vmem:[#allocation2 + $0x88] sm:$0x3] }
 0x15a   : > { %v1921_v17 = vunpack.c.l.b16 %v1905_v34  ;;  %v2263_v63 = vpack.c.bf16 %v2247_v42, %v2247_v42  ;;  %v1896_v23 = vrot.slane %v1894_v57, 1  ;;  %v2260_v34 = vpack.c.bf16 %v2244_v16, %v2244_v16  ;;  %v4197_v9 = vld [vmem:[%s5424_s3 + $0x208] sm:$0xff]  ;;  %v2246_v22 = vld [vmem:[#allocation2 + $0x78] sm:$0x3] }
 0x15b   : > { %v2362_v57 = vrot.slane %v5145_v41, 1  ;;  %v5198_v48 = vpack.c.b16 %v2753_v26, %v5101_v12  ;;  %v2258_v35 = vpack.c.bf16 %v2242_v62, %v2242_v62  ;;  %v2834_v42 = vunpack.c.l.b16 %v2776_v20 }
 0x15c   : > { %v1981_v32 = vpack.c.b16 %v1921_v17, %v1919_v39  ;;  %v5173_v51 = vunpack.c.l.b16 %v2263_v63  ;;  %v1897_v13 = vor.u32 %v1896_v23, %v1892_v15  ;;  %v2361_v39 = vrot.slane %v5151_v44, 1  ;;  %v2709_v44 = vld [vmem:[#allocation2 + $0x78] sm:$0x3] }
 0x15d   : > { %v2324_v18 = vrot.slane %v2322_v54, 1  ;;  %v2327_v17 = vshrl.u32 %v5184_v19, 16  ;;  %v5203_v63 = vpack.c.b16 %v2751_v58, %v5066_v38  ;;  %v2292_v15 = vunpack.c.l.b16 %v2260_v34  ;;  %v4198_v38 = vld [vmem:[%s5424_s3 + $0x210] sm:$0xff] }
 0x15e   : > { %2219 = vmatmul.bf16.gmra.mxu3 %v1981_v32  ;;  %v2443_v45 = vpack.c.b16 %v5173_v51, %v5153_v61  ;;  %v1920_v40 = vunpack.c.l.b16 %v1897_v13  ;;  %v2372_v23 = vunpack.c.l.b16 %v2362_v57  ;;  %v2900_v41 = vpack.c.b16 %v2836_v36, %v2834_v42  ;;  %3130 = vmatpush.bf16.msra.mxu1 %v4198_v38 }
 0x15f   : > { %v2320_v33 = vshrl.u32 %v5187_v37, 16  ;;  %v2332_v49 = vor.u32 %v2331_v28, %v2327_v17  ;;  %v2794_v46 = vshll.u32 %v5198_v48, 16  ;;  %v2290_v32 = vunpack.c.l.b16 %v2258_v35  ;;  %v2713_v17 = vld [vmem:[#allocation2 + $0x98] sm:$0x3] }
 0x160   : > { %2625 = vmatmul.bf16.gmra.mxu0 %v2443_v45  ;;  %v1980_v31 = vpack.c.b16 %v1920_v40, %v1918_v59  ;;  %v2370_v13 = vunpack.c.l.b16 %v2361_v39  ;;  %v2787_v7 = vshll.u32 %v5203_v63, 16  ;;  %v5213_v60 = vpack.c.b16 %v2292_v15, %v5133_v50  ;;  %v2707_v45 = vld [vmem:[#allocation2 + $0x68] sm:$0x3] }
 0x161   : > { %v2325_v55 = vor.u32 %v2324_v18, %v2320_v33  ;;  %v2375_v59 = vunpack.c.l.b16 %v2332_v49  ;;  %v2796_v40 = vrot.slane %v2794_v46, 1  ;;  %v2725_v30 = vpack.c.bf16 %v2709_v44, %v2709_v44  ;;  %v2711_v18 = vld [vmem:[#allocation2 + $0x88] sm:$0x3] }
 0x162   : > { %2190 = vmatmul.bf16.gmra.mxu2 %v1980_v31  ;;  %v5216_v0 = vpack.c.b16 %v2290_v32, %v5101_v12  ;;  %v2789_v1 = vrot.slane %v2787_v7, 1  ;;  %v2792_v31 = vshrl.u32 %v5198_v48, 16  ;;  %v2723_v6 = vpack.c.bf16 %v2707_v45, %v2707_v45  ;;  %3131 = vmatpush.bf16.msra.mxu1 %v4197_v9  ;;  %v4255_v32 = vld [vmem:[#allocation2] sm:$0xff] }
 0x163   : > { %v2373_v8 = vunpack.c.l.b16 %v2325_v55  ;;  %v2343_v3 = vshll.u32 %v5213_v60, 16  ;;  %v2785_v47 = vshrl.u32 %v5203_v63, 16  ;;  %v2757_v43 = vunpack.c.l.b16 %v2725_v30 }
 0x164   : > { %v2797_v24 = vor.u32 %v2796_v40, %v2792_v31  ;;  %v2336_v14 = vshll.u32 %v5216_v0, 16  ;;  %v2755_v12 = vunpack.c.l.b16 %v2723_v6  ;;  %v2264_v16 = vpack.c.bf16 %v2248_v21, %v2248_v21 }
 0x165   : > { %v2438_v56 = vpack.c.b16 %v2375_v59, %v2373_v8  ;;  %v2790_v53 = vor.u32 %v2789_v1, %v2785_v47  ;;  %v2345_v4 = vrot.slane %v2343_v3, 1  ;;  %v5227_v26 = vpack.c.b16 %v2757_v43, %v5153_v61 }
 0x166   : > { %v2840_v10 = vunpack.c.l.b16 %v2797_v24  ;;  %v2363_v62 = vrot.slane %v5187_v37, 1  ;;  %v2338_v20 = vrot.slane %v2336_v14, 1  ;;  %v2341_v54 = vshrl.u32 %v5213_v60, 16 }
 0x167   : > { %v2262_v58 = vpack.c.bf16 %v2246_v22, %v2246_v22  ;;  %v2838_v52 = vunpack.c.l.b16 %v2790_v53  ;;  %v5232_v34 = vpack.c.b16 %v2755_v12, %v5133_v50  ;;  %v2296_v57 = vunpack.c.l.b16 %v2264_v16  ;;  %v4196_v50 = vld [vmem:[%s5424_s3 + $0x200] sm:$0xff] }
 0x168   : > { %2639 = vmatmul.bf16.vlgmr.msrb.gmra.mxu1 %v2435_v11  ;;  %v2364_v11 = vrot.slane %v5184_v19, 1  ;;  %v2334_v19 = vshrl.u32 %v5216_v0, 16  ;;  %v2346_v28 = vor.u32 %v2345_v4, %v2341_v54  ;;  %v2808_v39 = vshll.u32 %v5227_v26, 16 }
 0x169   : > { %v2903_v35 = vpack.c.b16 %v2840_v10, %v2838_v52  ;;  %v2374_v42 = vunpack.c.l.b16 %v2363_v62  ;;  %v2294_v15 = vunpack.c.l.b16 %v2262_v58  ;;  %v2727_v46 = vpack.c.bf16 %v2711_v18, %v2711_v18  ;;  %3132 = vmatpush.bf16.msra.mxu1 %v4196_v50 }
 0x16a   : > { %v2376_v36 = vunpack.c.l.b16 %v2364_v11  ;;  %v2339_v37 = vor.u32 %v2338_v20, %v2334_v19  ;;  %v2379_v49 = vunpack.c.l.b16 %v2346_v28  ;;  %v2729_v44 = vpack.c.bf16 %v2713_v17, %v2713_v17 }
 0x16b   : > { %v2303_v7 = vpack.c.b16 %v2294_v15, %v5153_v61  ;;  %v2799_v59 = vshrl.u32 %v5232_v34, 16  ;;  %v2759_v8 = vunpack.c.l.b16 %v2727_v46  ;;  %v2366_v21 = vrot.slane %v5213_v60, 1 }
 0x16c   : > { %v2439_v33 = vpack.c.b16 %v2376_v36, %v2374_v42  ;;  %v2377_v55 = vunpack.c.l.b16 %v2339_v37  ;;  %v2761_v31 = vunpack.c.l.b16 %v2729_v44  ;;  %v2365_v43 = vrot.slane %v5216_v0, 1 }
 0x16d   : > { %v2350_v3 = vshll.u32 %v2303_v7, 16  ;;  %v5247_v61 = vpack.c.b16 %v2759_v8, %v5173_v51  ;;  %v2380_v9 = vunpack.c.l.b16 %v2366_v21  ;;  %v2348_v22 = vshrl.u32 %v2303_v7, 16 }
 0x16e   : > { %3075 = vmatmul.bf16.vlgmr.msra.gmra.mxu3 %v5042_v5  ;;  %v2436_v5 = vpack.c.b16 %v2372_v23, %v2370_v13  ;;  %v2801_v23 = vshll.u32 %v5232_v34, 16  ;;  %v2728_v13 = vpack.c.bf16 %v4255_v32, %v4255_v32  ;;  %v2441_v45 = vpack.c.b16 %v2379_v49, %v2377_v55 }
 0x16f   : > { %v2352_v53 = vrot.slane %v2350_v3, 1  ;;  %v2815_v60 = vshll.u32 %v5247_v61, 16  ;;  %v2378_v10 = vunpack.c.l.b16 %v2365_v43  ;;  %v2813_v36 = vshrl.u32 %v5247_v61, 16 }
 0x170   : > { %3104 = vmatmul.bf16.vlgmr.msra.gmra.mxu0 %v2900_v41  ;;  %v2304_v41 = vpack.c.b16 %v2296_v57, %v5173_v51  ;;  %v2803_v38 = vrot.slane %v2801_v23, 1  ;;  %v2760_v1 = vunpack.c.l.b16 %v2728_v13  ;;  %v2367_v37 = vrot.slane %v2303_v7, 1 }
 0x171   : > { %v2353_v62 = vor.u32 %v2352_v53, %v2348_v22  ;;  %v2442_v20 = vpack.c.b16 %v2380_v9, %v2378_v10  ;;  %v2817_v58 = vrot.slane %v2815_v60, 1  ;;  %v2827_v23 = vrot.slane %v5167_v27, 1 }
 0x172   : > { %2668 = vmatmul.bf16.vlgmr.msra.gmra.mxu2 %v2436_v5  ;;  %v2806_v5 = vshrl.u32 %v5227_v26, 16  ;;  %v2357_v40 = vshll.u32 %v2304_v41, 16  ;;  %v2804_v6 = vor.u32 %v2803_v38, %v2799_v59  ;;  %v5249_v24 = vpack.c.b16 %v2761_v31, %v2760_v1 }
 0x173   : > { %v2355_v12 = vshrl.u32 %v2304_v41, 16  ;;  %v2381_v57 = vunpack.c.l.b16 %v2353_v62  ;;  %v2818_v19 = vor.u32 %v2817_v58, %v2813_v36  ;;  %v2908_v18 = vpack.c.b16 %v2760_v1, %v5173_v51 }
 0x174   : > { %v2359_v47 = vrot.slane %v2357_v40, 1  ;;  %v2842_v14 = vunpack.c.l.b16 %v2804_v6  ;;  %v2822_v4 = vshll.u32 %v5249_v24, 16  ;;  %v2820_v0 = vshrl.u32 %v5249_v24, 16 }
 0x175   : > { %v2382_v50 = vunpack.c.l.b16 %v2367_v37  ;;  %v2829_v51 = vrot.slane %v5198_v48, 1  ;;  %v2828_v44 = vrot.slane %v5203_v63, 1  ;;  %v2831_v48 = vrot.slane %v5227_v26, 1 }
 0x176   : > { %v2360_v11 = vor.u32 %v2359_v47, %v2355_v12  ;;  %v2824_v52 = vrot.slane %v2822_v4, 1  ;;  %v2830_v63 = vrot.slane %v5232_v34, 1  ;;  %v2832_v26 = vrot.slane %v5247_v61, 1 }
 0x177   : > { %v2841_v7 = vunpack.c.l.b16 %v2829_v51  ;;  %v2839_v27 = vunpack.c.l.b16 %v2828_v44  ;;  %v2845_v31 = vunpack.c.l.b16 %v2831_v48  ;;  %v2833_v34 = vrot.slane %v5249_v24, 1 }
 0x178   : > { %2644 = vmatmul.bf16.gmra.mxu1 %v2438_v56  ;;  %v2383_v54 = vunpack.c.l.b16 %v2360_v11  ;;  %v2825_v28 = vor.u32 %v2824_v52, %v2820_v0  ;;  %v2843_v6 = vunpack.c.l.b16 %v2830_v63  ;;  %v3657_v0 = vld [vmem:[%s4328_s10 + $0x8] sm:$0xf] }
 0x179   : > { %v2849_v11 = vunpack.c.l.b16 %v2833_v34  ;;  %v1631_v52 = vshrl.u32 %v3657_v0, 16 }
 0x17a   : > { %v2848_v42 = vunpack.c.l.b16 %v2825_v28  ;;  %v2907_v47 = vpack.c.b16 %v2845_v31, %v2843_v6  ;;  %v3658_v28 = vld [vmem:[%s4328_s10 + $0xc] sm:$0x1] }
 0x17e   : > { %3080 = vmatmul.bf16.gmra.mxu3 %v5113_v2  ;;  %v2810_v2 = vrot.slane %v2808_v39, 1  ;;  %v2846_v39 = vunpack.c.l.b16 %v2818_v19 }
 0x180   : > { %3109 = vmatmul.bf16.gmra.mxu0 %v2903_v35  ;;  %v2811_v30 = vor.u32 %v2810_v2, %v2806_v5  ;;  %v2368_v35 = vrot.slane %v2304_v41, 1  ;;  %v2909_v15 = vpack.c.b16 %v2848_v42, %v2846_v39  ;;  %v2837_v2 = vunpack.c.l.b16 %v2827_v23 }
 0x181   : > { %v1640_v42 = vshll.u32 %v3658_v28, 16 }
 0x182   : > { %2673 = vmatmul.bf16.gmra.mxu2 %v2439_v33  ;;  %v2844_v56 = vunpack.c.l.b16 %v2811_v30  ;;  %v2384_v17 = vunpack.c.l.b16 %v2368_v35  ;;  %v2826_v33 = vrot.slane %v5171_v25, 1 }
 0x184   : > { %v2906_v16 = vpack.c.b16 %v2844_v56, %v2842_v14  ;;  %v2445_v49 = vpack.c.b16 %v2384_v17, %v2382_v50  ;;  %v2835_v46 = vunpack.c.l.b16 %v2826_v33  ;;  %v1642_v33 = vrot.slane %v1640_v42, 5 }
 0x186   : > { %v2901_v41 = vpack.c.b16 %v2837_v2, %v2835_v46  ;;  %v3661_v46 = vld [vmem:[%s4328_s10 + $0x18] sm:$0xf] }
 0x187   : > { %v1662_v51 = vshll.u32 %v3661_v46, 16 }
 0x188   : > { %2649 = vmatmul.bf16.gmra.mxu1 %v2441_v45  ;;  %v2904_v45 = vpack.c.b16 %v2841_v7, %v2839_v27 }
 0x18e   : > { %3085 = vmatmul.bf16.gmra.mxu3 %v5159_v29  ;;  %v2444_v29 = vpack.c.b16 %v2383_v54, %v2381_v57  ;;  %v1634_v57 = vshll.u32 %v3657_v0, 16 }
 0x190   : > { %3114 = vmatmul.bf16.gmra.mxu0 %v2906_v16  ;;  %v2847_v16 = vunpack.c.l.b16 %v2832_v26  ;;  %v1636_v19 = vrot.slane %v1634_v57, 5 }
 0x192   : > { %2678 = vmatmul.bf16.gmra.mxu2 %v2442_v20  ;;  %v2910_v62 = vpack.c.b16 %v2849_v11, %v2847_v16  ;;  %v3665_v16 = vld [vmem:[%s4328_s10 + $0x28] sm:$0xf] }
 0x198   : > { %2654 = vmatmul.bf16.gmra.mxu1 %v2444_v29  ;;  %v1633_v29 = vrot.slane %v1631_v52, 4  ;;  %v3666_v52 = vld [vmem:[%s4328_s10 + $0x2c] sm:$0x1] }
 0x19a   : > { %v1637_v39 = vor.u32 %v1636_v19, %v1633_v29  ;;  %v1696_v19 = vshll.u32 %v3666_v52, 16 }
 0x19c   : > { %v1638_v50 = vrot.slane %v1637_v39, 4 }
 0x19e   : > { %3090 = vmatmul.bf16.gmra.mxu3 %v2908_v18 }
 0x1a0   : > { %3119 = vmatmul.bf16.gmra.mxu0 %v2909_v15 }
 0x1a2   : > { %2683 = vmatmul.bf16.gmra.mxu2 %v2445_v49 }
 0x1a5   : > { %v2147_v32 = vpop.f32.mrf.mxu1 }
 0x1a8   : > { %3133 = vmatmul.bf16.vlgmr.msra.gmra.mxu1 %v2901_v41  ;;  %v1659_v41 = vshrl.u32 %v3661_v46, 16 }
 0x1ad   : > { %v5260_v13 = vpop.f32.mrf.mxu1  ;;  %v2611_v3 = vpop.f32.mrf.mxu0 }
 0x1b1   : > { %v2205_v55 = vpop.f32.mrf.mxu3 }
 0x1b5   : > { %v2152_v38 = vpop.f32.mrf.mxu1  ;;  %v2176_v5 = vpop.f32.mrf.mxu2 }
 0x1b6   : > { %v2177_v25 = vadd.f32 %v2176_v5, %v2147_v32  ;;  %v5284_v22 = vpop.f32.mrf.mxu0  ;;  %v1643_v32 = vsel %vm5300_vm2, %v1638_v50, %v1642_v33  ;;  %v1661_v5 = vrot.slane %v1659_v41, 4  ;;  %v3669_v33 = vld [vmem:[%s4328_s10 + $0x38] sm:$0xf] }
 0x1b7   : > { %v1750_v27 = vunpack.c.l.bf16 %v1643_v32  ;;  %v1715_v41 = vshrl.u32 %v3669_v33, 16 }
 0x1b8   : > { %3138 = vmatmul.bf16.gmra.mxu1 %v2904_v45  ;;  %v5264_v59 = vadd.f32 %v2205_v55, %v2177_v25  ;;  %v1664_v45 = vrot.slane %v1662_v51, 5  ;;  %v3662_v25 = vld [vmem:[%s4328_s10 + $0x1c] sm:$0x1]  ;;  %v1718_v51 = vshll.u32 %v3669_v33, 16 }
 0x1b9   : > { %v5266_v40 = vpop.f32.mrf.mxu3 }
 0x1ba   : > { %v1665_v63 = vor.u32 %v1664_v45, %v1661_v5  ;;  %v1717_v45 = vrot.slane %v1715_v41, 4 }
 0x1bd   : > { %v5268_v30 = vpop.f32.mrf.mxu1  ;;  %v5270_v8 = vpop.f32.mrf.mxu2 }
 0x1be   : > { %v2616_v54 = vpop.f32.mrf.mxu0 }
 0x1c1   : > { %v2210_v1 = vpop.f32.mrf.mxu3 }
 0x1c5   : > { %v2157_v21 = vpop.f32.mrf.mxu1  ;;  %v2181_v56 = vpop.f32.mrf.mxu2 }
 0x1c6   : > { %v2182_v43 = vadd.f32 %v2181_v56, %v2152_v38  ;;  %v5296_v35 = vpop.f32.mrf.mxu0  ;;  %v5314_v38 = vld [vmem:[%s5425_s4] ss:$0 sm:$0xff] }
 0x1c7   : > { %v1762_v48 = vadd.f32 %v5314_v38, %v1750_v27  ;;  %v3659_v27 = vld [vmem:[%s4328_s10 + $0x10] sm:$0xf] }
 0x1c8   : > { %3143 = vmatmul.bf16.gmra.mxu1 %v2907_v47  ;;  %v5274_v14 = vadd.f32 %v2210_v1, %v2182_v43  ;;  %v1668_v1 = vshll.u32 %v3662_v25, 16  ;;  %v1666_v43 = vrot.slane %v1665_v63, 4  ;;  %v1720_v25 = vrot.slane %v1718_v51, 5 }
 0x1c9   : > { %v5276_v53 = vpop.f32.mrf.mxu3  ;;  %v2225_v56 = vadd.f32 %v5264_v59, %v1762_v48  ;;  %v1645_v48 = vshrl.u32 %v3659_v27, 16  ;;  %v1648_v63 = vshll.u32 %v3659_v27, 16  ;;  %v2179_v27 = vadd.f32 %v5270_v8, %v5260_v13 }
 0x1ca   : > { %v1670_v26 = vrot.slane %v1668_v1, 5  ;;  %v3670_v1 = vld [vmem:[%s4328_s10 + $0x3c] sm:$0x1] }
 0x1cc   : > { %v1671_v11 = vsel %vm5300_vm2, %v1666_v43, %v1670_v26  ;;  %v1647_v43 = vrot.slane %v1645_v48, 4  ;;  %v1650_v26 = vrot.slane %v1648_v63, 5  ;;  %v3664_v63 = vld [vmem:[%s4328_s10 + $0x24] sm:$0x1] }
 0x1cd   : > { %v5278_v12 = vpop.f32.mrf.mxu1  ;;  %v5280_v9 = vpop.f32.mrf.mxu2 }
 0x1ce   : > { %v2621_v44 = vpop.f32.mrf.mxu0 }
 0x1d1   : > { %v2215_v60 = vpop.f32.mrf.mxu3 }
 0x1d5   : > { %v2162_v4 = vpop.f32.mrf.mxu1  ;;  %v2186_v10 = vpop.f32.mrf.mxu2 }
 0x1d6   : > { %v2187_v20 = vadd.f32 %v2186_v10, %v2157_v21  ;;  %v5318_v21 = vpop.f32.mrf.mxu0 }
 0x1d8   : > { %3148 = vmatmul.bf16.gmra.mxu1 %v2910_v62  ;;  %v5286_v58 = vadd.f32 %v2215_v60, %v2187_v20  ;;  %v1687_v60 = vshrl.u32 %v3665_v16, 16  ;;  %v1752_v20 = vunpack.c.l.bf16 %v1671_v11  ;;  %v3660_v11 = vld [vmem:[%s4328_s10 + $0x14] sm:$0x1] }
 0x1d9   : > { %v5291_v24 = vpop.f32.mrf.mxu3 }
 0x1da   : > { %v1764_v57 = vadd.f32 %v5314_v38, %v1752_v20 }
 0x1dd   : > { %v5289_v61 = vpop.f32.mrf.mxu1  ;;  %v5293_v36 = vpop.f32.mrf.mxu2 }
 0x1de   : > { %v2626_v59 = vpop.f32.mrf.mxu0 }
 0x1e1   : > { %v2220_v23 = vpop.f32.mrf.mxu3 }
 0x1e5   : > { %v2640_v37 = vpop.f32.mrf.mxu1  ;;  %v2191_v18 = vpop.f32.mrf.mxu2 }
 0x1e6   : > { %v2641_v17 = vadd.f32 %v2640_v37, %v2611_v3  ;;  %v2192_v15 = vadd.f32 %v2191_v18, %v2162_v4  ;;  %v1690_v4 = vshll.u32 %v3665_v16, 16  ;;  %v2227_v37 = vadd.f32 %v5274_v14, %v1764_v57  ;;  %v5338_v46 = vpop.f32.mrf.mxu0 }
 0x1e7   : > { %v1651_v57 = vor.u32 %v1650_v26, %v1647_v43  ;;  %v2208_v43 = vadd.f32 %v5266_v40, %v2179_v27 }
 0x1e8   : > { %v5298_v49 = vadd.f32 %v2220_v23, %v2192_v15  ;;  %v1692_v0 = vrot.slane %v1690_v4, 5  ;;  %v1698_v15 = vrot.slane %v1696_v19, 5 }
 0x1e9   : > { %v5333_v23 = vpop.f32.mrf.mxu3 }
 0x1ed   : > { %v5307_v55 = vpop.f32.mrf.mxu1  ;;  %v5309_v7 = vpop.f32.mrf.mxu2 }
 0x1ee   : > { %v2643_v26 = vadd.f32 %v5307_v55, %v5284_v22 }
 0x1f5   : > { %v2645_v31 = vpop.f32.mrf.mxu1  ;;  %v2669_v3 = vpop.f32.mrf.mxu2 }
 0x1f6   : > { %v2646_v6 = vadd.f32 %v2645_v31, %v2616_v54  ;;  %v2670_v47 = vadd.f32 %v2669_v3, %v2641_v17  ;;  %v1689_v54 = vrot.slane %v1687_v60, 4  ;;  %v3076_v31 = vpop.f32.mrf.mxu3  ;;  %v1721_v3 = vor.u32 %v1720_v25, %v1717_v45 }
 0x1f8   : > { %v5321_v34 = vadd.f32 %v2670_v47, %v2225_v56  ;;  %v1693_v29 = vor.u32 %v1692_v0, %v1689_v54  ;;  %v1724_v56 = vshll.u32 %v3670_v1, 16  ;;  %v3105_v47 = vpop.f32.mrf.mxu0  ;;  %v1722_v0 = vrot.slane %v1721_v3, 4 }
 0x1fa   : > { %v1694_v17 = vrot.slane %v1693_v29, 4  ;;  %v1726_v52 = vrot.slane %v1724_v56, 5  ;;  %v1654_v29 = vshll.u32 %v3660_v11, 16  ;;  %v1682_v11 = vshll.u32 %v3664_v63, 16 }
 0x1fc   : > { %v1699_v32 = vsel %vm5300_vm2, %v1694_v17, %v1698_v15  ;;  %v1684_v40 = vrot.slane %v1682_v11, 5 }
 0x1fd   : > { %v5326_v10 = vpop.f32.mrf.mxu1  ;;  %v5328_v62 = vpop.f32.mrf.mxu2  ;;  %v1754_v5 = vunpack.c.l.bf16 %v1699_v32 }
 0x1fe   : > { %v2648_v27 = vadd.f32 %v5326_v10, %v5296_v35 }
 0x205   : > { %v2650_v28 = vpop.f32.mrf.mxu1  ;;  %v2674_v42 = vpop.f32.mrf.mxu2 }
 0x206   : > { %v2651_v39 = vadd.f32 %v2650_v28, %v2621_v44  ;;  %v2675_v18 = vadd.f32 %v2674_v42, %v2646_v6  ;;  %v1766_v6 = vadd.f32 %v5314_v38, %v1754_v5  ;;  %v1727_v28 = vsel %vm5300_vm2, %v1722_v0, %v1726_v52  ;;  %v3078_v42 = vpop.f32.mrf.mxu3 }
 0x208   : > { %v5335_v50 = vadd.f32 %v2675_v18, %v2227_v37  ;;  %v2229_v20 = vadd.f32 %v5286_v58, %v1766_v6  ;;  %v1652_v37 = vrot.slane %v1651_v57, 4  ;;  %v1656_v18 = vrot.slane %v1654_v29, 5  ;;  %v3107_v58 = vpop.f32.mrf.mxu0 }
 0x209   : > { %v3108_v0 = vadd.f32 %v3107_v58, %v3078_v42  ;;  %v2184_v58 = vadd.f32 %v5280_v9, %v5268_v30 }
 0x20a   : > { %v1657_v33 = vsel %vm5300_vm2, %v1652_v37, %v1656_v18 }
 0x20b   : > { %v1751_v5 = vunpack.c.l.bf16 %v1657_v33 }
 0x20d   : > { %v5342_v44 = vpop.f32.mrf.mxu1  ;;  %v5345_v14 = vpop.f32.mrf.mxu2 }
 0x20e   : > { %v3081_v6 = vpop.f32.mrf.mxu3  ;;  %v2677_v63 = vadd.f32 %v5345_v14, %v2648_v27 }
 0x210   : > { %v3110_v13 = vpop.f32.mrf.mxu0 }
 0x215   : > { %v2655_v16 = vpop.f32.mrf.mxu1  ;;  %v2679_v4 = vpop.f32.mrf.mxu2 }
 0x216   : > { %v2656_v60 = vadd.f32 %v2655_v16, %v2626_v59  ;;  %v2680_v54 = vadd.f32 %v2679_v4, %v2651_v39  ;;  %v3663_v59 = vld [vmem:[%s4328_s10 + $0x20] sm:$0xf]  ;;  %v1756_v39 = vunpack.c.l.bf16 %v1727_v28  ;;  %v1763_v16 = vadd.f32 %v5314_v38, %v1751_v5  ;;  %v3667_v28 = vld [vmem:[%s4328_s10 + $0x30] sm:$0xf]  ;;  %v3083_v18 = vpop.f32.mrf.mxu3 }
 0x217   : > { %v1673_v32 = vshrl.u32 %v3663_v59, 16  ;;  %v1676_v41 = vshll.u32 %v3663_v59, 16 }
 0x218   : > { %v5351_v19 = vadd.f32 %v2680_v54, %v2229_v20  ;;  %v1768_v51 = vadd.f32 %v5314_v38, %v1756_v39  ;;  %v3106_v20 = vadd.f32 %v3105_v47, %v3076_v31  ;;  %v2672_v54 = vadd.f32 %v5328_v62, %v2643_v26  ;;  %v3112_v59 = vpop.f32.mrf.mxu0 }
 0x219   : > { %v1675_v45 = vrot.slane %v1673_v32, 4  ;;  %v1678_v25 = vrot.slane %v1676_v41, 5  ;;  %v1701_v47 = vshrl.u32 %v3667_v28, 16  ;;  %v1704_v62 = vshll.u32 %v3667_v28, 16  ;;  %v3668_v41 = vld [vmem:[%s4328_s10 + $0x34] sm:$0x1] }
 0x21a   : > { %v2231_v3 = vadd.f32 %v5298_v49, %v1768_v51  ;;  %v2226_v49 = vadd.f32 %v2208_v43, %v1763_v16  ;;  %v2213_v51 = vadd.f32 %v5276_v53, %v2184_v58  ;;  %v3113_v9 = vadd.f32 %v3112_v59, %v3083_v18 }
 0x21b   : > { %v1679_v8 = vor.u32 %v1678_v25, %v1675_v45  ;;  %v1706_v33 = vrot.slane %v1704_v62, 5  ;;  %v1710_v25 = vshll.u32 %v3668_v41, 16  ;;  %v2653_v28 = vadd.f32 %v5342_v44, %v5318_v21 }
 0x21c   : > { %v2690_v29 = vadd.f32 %v2672_v54, %v2226_v49  ;;  %v2189_v54 = vadd.f32 %v5293_v36, %v5278_v12 }
 0x21d   : > { %v5355_v17 = vpop.f32.mrf.mxu1  ;;  %v5358_v15 = vpop.f32.mrf.mxu2  ;;  %v1680_v52 = vrot.slane %v1679_v8, 4  ;;  %v1712_v26 = vrot.slane %v1710_v25, 5  ;;  %v3671_v8 = vld [vmem:[%s4328_s10 + $0x40] sm:$0xf] }
 0x21e   : > { %v3086_v30 = vpop.f32.mrf.mxu3  ;;  %v1729_v14 = vshrl.u32 %v3671_v8, 16  ;;  %v2682_v12 = vadd.f32 %v5358_v15, %v2653_v28  ;;  %v2194_v15 = vadd.f32 %v5309_v7, %v5289_v61 }
 0x21f   : > { %v1685_v31 = vsel %vm5300_vm2, %v1680_v52, %v1684_v40 }
 0x220   : > { %v1753_v39 = vunpack.c.l.bf16 %v1685_v31 }
 0x222   : > { %v1765_v5 = vadd.f32 %v5314_v38, %v1753_v39 }
 0x225   : > { %v3134_v48 = vpop.f32.mrf.mxu1  ;;  %v2684_v1 = vpop.f32.mrf.mxu2 }
 0x226   : > { %v2685_v56 = vadd.f32 %v2684_v1, %v2656_v60  ;;  %v3135_v60 = vadd.f32 %v3134_v48, %v3106_v20  ;;  %v3111_v48 = vadd.f32 %v3110_v13, %v3081_v6  ;;  %v2228_v1 = vadd.f32 %v2213_v51, %v1765_v5  ;;  %v3088_v49 = vpop.f32.mrf.mxu3 }
 0x227   : > { %v1732_v13 = vshll.u32 %v3671_v8, 16  ;;  %v2223_v5 = vadd.f32 %v5333_v23, %v2194_v15 }
 0x228   : > { %v5371_v4 = vadd.f32 %v2685_v56, %v2231_v3  ;;  %v3154_v55 = vadd.f32 %v3135_v60, %v5321_v34  ;;  %v1703_v34 = vrot.slane %v1701_v47, 4  ;;  %v3115_v56 = vpop.f32.mrf.mxu0  ;;  %v2692_v16 = vadd.f32 %v2677_v63, %v2228_v1 }
 0x229   : > { %v1731_v60 = vrot.slane %v1729_v14, 4  ;;  %v1734_v52 = vrot.slane %v1732_v13, 5  ;;  %v3116_v18 = vadd.f32 %v3115_v56, %v3086_v30 }
 0x22a   : > { %v1707_v45 = vor.u32 %v1706_v33, %v1703_v34 }
 0x22c   : > { %v1708_v43 = vrot.slane %v1707_v45, 4  ;;  %v2658_v45 = vadd.f32 %v5355_v17, %v5338_v46 }
 0x22d   : > { %v3136_v57 = vpop.f32.mrf.mxu1  ;;  %v2686_v27 = vpop.f32.mrf.mxu2 }
 0x22e   : > { %v3137_v22 = vadd.f32 %v3136_v57, %v3108_v0  ;;  %v1713_v6 = vsel %vm5300_vm2, %v1708_v43, %v1712_v26  ;;  %v3672_v57 = vld [vmem:[%s4328_s10 + $0x44] sm:$0x1]  ;;  %v2687_v2 = vadd.f32 %v2686_v27, %v2658_v45 }
 0x22f   : > { %v1755_v0 = vunpack.c.l.bf16 %v1713_v6 }
 0x230   : > { %v3155_v37 = vadd.f32 %v3137_v22, %v2690_v29  ;;  %v3117_v29 = vpop.f32.mrf.mxu0 }
 0x231   : > { %v1767_v22 = vadd.f32 %v5314_v38, %v1755_v0  ;;  %v3118_v36 = vadd.f32 %v3117_v29, %v3088_v49 }
 0x232   : > { %v4207_v42 = vpack.c.bf16 %v3155_v37, %v3154_v55  ;;  %v1735_v55 = vor.u32 %v1734_v52, %v1731_v60  ;;  %v1738_v37 = vshll.u32 %v3672_v57, 16 }
 0x234   : > { %4208 = vst [vmem:[%s5382_s7] sm:$0xff] %v4207_v42   ;;  %v1736_v62 = vrot.slane %v1735_v55, 4  ;;  %v1740_v42 = vrot.slane %v1738_v37, 5 }
 0x235   : > { %v3139_v32 = vpop.f32.mrf.mxu1 }
 0x236   : > { %v3140_v3 = vadd.f32 %v3139_v32, %v3111_v48  ;;  %v1741_v33 = vsel %vm5300_vm2, %v1736_v62, %v1740_v42 }
 0x237   : > { %v1757_v41 = vunpack.c.l.bf16 %v1741_v33 }
 0x238   : > { %v3156_v10 = vadd.f32 %v3140_v3, %v5335_v50  ;;  %v2218_v50 = vadd.f32 %v5291_v24, %v2189_v54  ;;  %v3091_v24 = vpop.f32.mrf.mxu3  ;;  %v3120_v44 = vpop.f32.mrf.mxu0 }
 0x239   : > { %v3121_v48 = vadd.f32 %v3120_v44, %v3091_v24 }
 0x23a   : > { %v2230_v31 = vadd.f32 %v2218_v50, %v1767_v22 }
 0x23c   : > { %v2694_v58 = vadd.f32 %v2682_v12, %v2230_v31 }
 0x23d   : > { %v3141_v53 = vpop.f32.mrf.mxu1 }
 0x23e   : > { %v3142_v35 = vadd.f32 %v3141_v53, %v3113_v9 }
 0x240   : > { %v3157_v11 = vadd.f32 %v3142_v35, %v2692_v16  ;;  %v3093_v25 = vpop.f32.mrf.mxu3  ;;  %v3122_v63 = vpop.f32.mrf.mxu0 }
 0x241   : > { %v3123_v30 = vadd.f32 %v3122_v63, %v3093_v25 }
 0x242   : > { %v4212_v20 = vpack.c.bf16 %v3157_v11, %v3156_v10 }
 0x244   : > { %4224 = vst [vmem:[%s5382_s7 + $0x8] sm:$0xff] %v4212_v20  }
 0x245   : > { %v3144_v40 = vpop.f32.mrf.mxu1 }
 0x246   : > { %v3145_v47 = vadd.f32 %v3144_v40, %v3116_v18 }
 0x248   : > { %v3158_v34 = vadd.f32 %v3145_v47, %v5351_v19  ;;  %v1769_v19 = vadd.f32 %v5314_v38, %v1757_v41 }
 0x24a   : > { %v2232_v9 = vadd.f32 %v2223_v5, %v1769_v19 }
 0x24c   : > { %v2696_v7 = vadd.f32 %v2687_v2, %v2232_v9 }
 0x24d   : > { %v3146_v59 = vpop.f32.mrf.mxu1 }
 0x24e   : > { %v3147_v39 = vadd.f32 %v3146_v59, %v3118_v36 }
 0x250   : > { %v3159_v21 = vadd.f32 %v3147_v39, %v2694_v58 }
 0x252   : > { %v4217_v32 = vpack.c.bf16 %v3159_v21, %v3158_v34 }
 0x254   : > { %4225 = vst [vmem:[%s5382_s7 + $0x10] sm:$0xff] %v4217_v32  }
 0x255   : > { %v3149_v51 = vpop.f32.mrf.mxu1 }
 0x256   : > { %v3150_v1 = vadd.f32 %v3149_v51, %v3121_v48 }
 0x258   : > { %v3160_v56 = vadd.f32 %v3150_v1, %v5371_v4 }
 0x25d   : > { %v3151_v61 = vpop.f32.mrf.mxu1 }
 0x25e   : > { %v3152_v3 = vadd.f32 %v3151_v61, %v3123_v30 }
 0x260   : > { %v3161_v43 = vadd.f32 %v3152_v3, %v2696_v7 }
 0x262   : > { %v4222_v23 = vpack.c.bf16 %v3161_v43, %v3160_v56 }
 0x264   : > { %4226 = vst [vmem:[%s5382_s7 + $0x18] sm:$0xff] %v4222_v23  }
 0x265 PF: > { %s15_s18 = sadd.s32 1, %s4262_s18  }
 0x266   : > { %p12_p4 = scmp.ge.s32.totalorder %s15_s18, 4  }
 0x268   :  { %14 = sbr.rel (!%p12_p4) target bundleno = 1 (0x1), region = 78 }

</bundles_post_ra>
